<compile_context>
chip_gen: v7x
topology: tpu7x:2x2x1
jax: 0.10.0
libtpu: 0.0.40
codegen_flags: <defaults>
</compile_context>

<pallas_src>
import functools

import numpy as np
import jax
import jax.numpy as jnp
from jax import lax
from jax.experimental import pallas as pl
from jax.experimental.pallas import tpu as pltpu


# ---------------------------------------------------------------------------
# Small helpers
# ---------------------------------------------------------------------------

def _vmem_limit():
    # ~75% of physical VMEM: ~48 MiB on v7x (64 MiB phys), ~96 MiB on v5e/v6e.
    try:
        cap = pltpu.get_tpu_info().vmem_capacity_bytes
    except Exception:
        cap = 64 * 1024 * 1024
    return max(int(cap) * 3 // 4, 32 * 1024 * 1024)


_VMEM_LIMIT = _vmem_limit()


def _cparams(*sem):
    return pltpu.CompilerParams(dimension_semantics=tuple(sem),
                                vmem_limit_bytes=_VMEM_LIMIT)


def _const_spec(shape):
    """Full-array block, constant index across the grid, single-buffered."""
    nd = len(shape)
    idx = lambda *_: (0,) * nd
    try:
        return pl.BlockSpec(shape, idx, pipeline_mode=pl.Buffered(1))
    except Exception:                       # older jax without pipeline_mode
        return pl.BlockSpec(shape, idx)


def _pick_row_tile(m, target=512):
    """Largest multiple of 8 <= target that divides m; fall back to full m."""
    if m % 8 != 0:
        return m
    tm = min(target, m)
    tm -= tm % 8
    while m % tm:
        tm -= 8
    return max(tm, 8)


def _pick_batch_tile(B, N, target_rows=512):
    """Images per grid step: fill the MXU M dim; keep (bt*N) tile-legal."""
    valid = [bt for bt in range(1, B + 1)
             if B % bt == 0 and (bt == B or (bt * N) % 8 == 0)]
    under = [bt for bt in valid if bt * N <= target_rows]
    return max(under) if under else min(valid)


def _mm(a, b):
    """MXU matmul: bf16 operands, f32 accumulation (weights arrive bf16)."""
    return jnp.dot(a.astype(jnp.bfloat16), b.astype(jnp.bfloat16),
                   preferred_element_type=jnp.float32)


def _mm_nt(a, b):
    """a @ b.T (contract last dims) without materializing a transpose."""
    return lax.dot_general(a.astype(jnp.bfloat16), b.astype(jnp.bfloat16),
                           (((1,), (1,)), ((), ())),
                           preferred_element_type=jnp.float32)


def _gelu(x):
    # tanh-approx GELU (EUP tanh slot); tiny deviation vs torch exact-erf GELU.
    return 0.5 * x * (1.0 + jnp.tanh(0.7978845608028654 *
                                     (x + 0.044715 * x * x * x)))


def _ln(x, g, b, eps=1e-5):
    """torch nn.LayerNorm semantics (biased var, eps=1e-5). x must be f32."""
    mu = jnp.mean(x, axis=-1, keepdims=True)
    xc = x - mu
    var = jnp.mean(xc * xc, axis=-1, keepdims=True)
    return xc * lax.rsqrt(var + eps) * g + b


# ---------------------------------------------------------------------------
# Pallas kernels
# ---------------------------------------------------------------------------

def _linear_kernel(act, x_ref, w_ref, b_ref, o_ref):
    y = _mm(x_ref[...], w_ref[...]) + b_ref[...]
    if act == "gelu":
        y = _gelu(y)
    o_ref[...] = y.astype(o_ref.dtype)


def linear(x, w, b, act=None, out_dtype=jnp.float32):
    """x:(M,K) @ w:(K,N) + b, row-tiled grid, weights VMEM-resident (bf16)."""
    M, K = x.shape
    N = w.shape[1]
    tm = _pick_row_tile(M)
    return pl.pallas_call(
        functools.partial(_linear_kernel, act),
        grid=(M // tm,),
        in_specs=[pl.BlockSpec((tm, K), lambda i: (i, 0)),
                  _const_spec((K, N)),
                  _const_spec((1, N))],
        out_specs=pl.BlockSpec((tm, N), lambda i: (i, 0)),
        out_shape=jax.ShapeDtypeStruct((M, N), out_dtype),
        compiler_params=_cparams("parallel"),
    )(x, w, b.reshape(1, N))


def _norm_linear_kernel(x_ref, g_ref, be_ref, w_ref, b_ref, o_ref):
    h = _ln(x_ref[...].astype(jnp.float32), g_ref[...], be_ref[...])
    o_ref[...] = (_mm(h, w_ref[...]) + b_ref[...]).astype(o_ref.dtype)


def norm_linear(x, g, be, w, b, out_dtype=jnp.float32):
    """Fused LayerNorm + Linear: x:(M,K) -> (M,N), row-tiled grid."""
    M, K = x.shape
    N = w.shape[1]
    tm = _pick_row_tile(M)
    return pl.pallas_call(
        _norm_linear_kernel,
        grid=(M // tm,),
        in_specs=[pl.BlockSpec((tm, K), lambda i: (i, 0)),
                  _const_spec((1, K)), _const_spec((1, K)),
                  _const_spec((K, N)), _const_spec((1, N))],
        out_specs=pl.BlockSpec((tm, N), lambda i: (i, 0)),
        out_shape=jax.ShapeDtypeStruct((M, N), out_dtype),
        compiler_params=_cparams("parallel"),
    )(x, g.reshape(1, K), be.reshape(1, K), w, b.reshape(1, N))


def _block_kernel(num_heads, bt,
                  x_ref,
                  n1w, n1b, qkv_w, qkv_b, proj_w, proj_b, ls1,
                  n2w, n2b, fc1_w, fc1_b, fc2_w, fc2_b, ls2,
                  o_ref):
    """Full timm Block on a (bt*N, D) token slab (bt images per grid step)."""
    x = x_ref[...].astype(jnp.float32)           # (bt*N, D)
    M, D = x.shape
    N = M // bt
    Dh = D // num_heads

    # ---- attention half: LN1 -> qkv -> per-image/head softmax -> proj ----
    h = _ln(x, n1w[...], n1b[...])
    qkv = _mm(h, qkv_w[...]) + qkv_b[...]        # (M, 3D); q already scaled
    pw = proj_w[...]                             # (D, D) bf16, loaded once
    rows = []
    for b in range(bt):                          # static unroll over images
        qb = qkv[b * N:(b + 1) * N, :]
        acc = jnp.zeros((N, D), jnp.float32)
        for hh in range(num_heads):              # static unroll over heads
            lo = hh * Dh
            q = qb[:, lo:lo + Dh]
            k = qb[:, D + lo:D + lo + Dh]
            v = qb[:, 2 * D + lo:2 * D + lo + Dh]
            s = _mm_nt(q, k)                     # (N, N) scores
            m = jnp.max(s, axis=-1, keepdims=True)
            e = jnp.exp(s - m)
            p = e * pl.reciprocal(jnp.sum(e, axis=-1, keepdims=True), approx=True)
            ho = _mm(p, v)                       # (N, Dh)
            # accumulate head directly into proj output (no lane concat,
            # no separate full proj pass)
            acc = acc + _mm(ho, pw[lo:lo + Dh, :])
        rows.append(acc)
    attn = (rows[0] if bt == 1 else jnp.concatenate(rows, axis=0)) + proj_b[...]
    x = x + attn * ls1[...]                      # LayerScale + residual

    # ---- mlp half: LN2 -> fc1 + GELU -> fc2 ----
    h = _ln(x, n2w[...], n2b[...])
    h = _gelu(_mm(h, fc1_w[...]) + fc1_b[...])
    h = _mm(h, fc2_w[...]) + fc2_b[...]
    o_ref[...] = (x + h * ls2[...]).astype(o_ref.dtype)


def block_forward(bp, x, num_heads):
    """One transformer block as a single Pallas call, packing bt images/step."""
    B, N, D = x.shape
    hidden = bp["fc1_w"].shape[1]
    bt = _pick_batch_tile(B, N)
    rows = bt * N
    xf = x.reshape(B * N, D)
    out = pl.pallas_call(
        functools.partial(_block_kernel, num_heads, bt),
        grid=(B // bt,),
        in_specs=[pl.BlockSpec((rows, D), lambda i: (i, 0)),
                  _const_spec((1, D)), _const_spec((1, D)),
                  _const_spec((D, 3 * D)), _const_spec((1, 3 * D)),
                  _const_spec((D, D)), _const_spec((1, D)),
                  _const_spec((1, D)),
                  _const_spec((1, D)), _const_spec((1, D)),
                  _const_spec((D, hidden)), _const_spec((1, hidden)),
                  _const_spec((hidden, D)), _const_spec((1, D)),
                  _const_spec((1, D))],
        out_specs=pl.BlockSpec((rows, D), lambda i: (i, 0)),
        out_shape=jax.ShapeDtypeStruct((B * N, D), jnp.bfloat16),
        compiler_params=_cparams("parallel"),
    )(xf,
      bp["norm1_w"].reshape(1, D), bp["norm1_b"].reshape(1, D),
      bp["qkv_w"], bp["qkv_b"].reshape(1, 3 * D),
      bp["proj_w"], bp["proj_b"].reshape(1, D),
      bp["ls1"].reshape(1, D),
      bp["norm2_w"].reshape(1, D), bp["norm2_b"].reshape(1, D),
      bp["fc1_w"], bp["fc1_b"].reshape(1, hidden),
      bp["fc2_w"], bp["fc2_b"].reshape(1, D),
      bp["ls2"].reshape(1, D))
    return out.reshape(B, N, D)


def _loss_kernel(norm_pix, on_all, pred_ref, tgt_ref, mask_ref, num_ref, den_ref):
    pred = pred_ref[...]                         # (L, P)
    tgt = tgt_ref[...]
    L, P = tgt.shape
    if norm_pix:
        mean = jnp.mean(tgt, axis=-1, keepdims=True)
        var = jnp.sum((tgt - mean) ** 2, axis=-1, keepdims=True) / (P - 1)
        tgt = (tgt - mean) / jnp.sqrt(var + 1e-6)
    d2 = (pred - tgt) ** 2
    if on_all:
        num_ref[...] = (jnp.sum(d2, keepdims=True) / P).reshape(1, 1)
        den_ref[...] = jnp.full((1, 1), float(L), jnp.float32)
    else:
        m = mask_ref[...]                        # (L, 1) — tiny, lane-sparse OK
        num_ref[...] = (jnp.sum(d2 * m, keepdims=True) / P).reshape(1, 1)
        den_ref[...] = jnp.sum(m, keepdims=True).reshape(1, 1)


def masked_mse_loss(pred, target, mask, norm_pix=False, on_all=False):
    """Per-batch partial sums in Pallas (parallel grid), final divide in JAX."""
    B, L, P = pred.shape
    num, den = pl.pallas_call(
        functools.partial(_loss_kernel, norm_pix, on_all),
        grid=(B,),
        in_specs=[pl.BlockSpec((None, L, P), lambda b: (b, 0, 0)),
                  pl.BlockSpec((None, L, P), lambda b: (b, 0, 0)),
                  pl.BlockSpec((None, L, 1), lambda b: (b, 0, 0))],
        out_specs=[pl.BlockSpec((None, 1, 1), lambda b: (b, 0, 0)),
                   pl.BlockSpec((None, 1, 1), lambda b: (b, 0, 0))],
        out_shape=[jax.ShapeDtypeStruct((B, 1, 1), jnp.float32),
                   jax.ShapeDtypeStruct((B, 1, 1), jnp.float32)],
        compiler_params=_cparams("parallel"),
    )(pred, target, mask.reshape(B, L, 1))
    return jnp.sum(num) / jnp.maximum(jnp.sum(den), 1e-8)


# ---------------------------------------------------------------------------
# Parameter init (deterministic, synthetic; mirrors module __init__ shapes)
# ---------------------------------------------------------------------------

def get_1d_sincos_pos_embed_from_grid(embed_dim, pos):
    assert embed_dim % 2 == 0
    omega = np.arange(embed_dim // 2, dtype=np.float64)
    omega /= embed_dim / 2.0
    omega = 1.0 / 10000 ** omega
    out = np.einsum("m,d->md", pos.reshape(-1), omega)
    return np.concatenate([np.sin(out), np.cos(out)], axis=1)


def get_2d_sincos_pos_embed(embed_dim, grid_size, cls_token=False):
    gh, gw = grid_size
    grid_h = np.arange(gh, dtype=np.float32)
    grid_w = np.arange(gw, dtype=np.float32)
    grid = np.meshgrid(grid_w, grid_h)           # w goes first (as in MAE)
    grid = np.stack(grid, axis=0).reshape([2, 1, gh, gw])
    emb_h = get_1d_sincos_pos_embed_from_grid(embed_dim // 2, grid[0])
    emb_w = get_1d_sincos_pos_embed_from_grid(embed_dim // 2, grid[1])
    pos = np.concatenate([emb_h, emb_w], axis=1)
    if cls_token:
        pos = np.concatenate([np.zeros([1, embed_dim]), pos], axis=0)
    return pos.astype(np.float32)


def xavier_uniform(key, fan_in, fan_out):
    bound = float(np.sqrt(6.0 / (fan_in + fan_out)))
    return jax.random.uniform(key, (fan_in, fan_out), jnp.float32, -bound, bound)


def init_linear(key, fan_in, fan_out):
    return {"w": xavier_uniform(key, fan_in, fan_out),
            "b": jnp.zeros((fan_out,), jnp.float32)}


def init_block(key, dim, mlp_ratio, init_values):
    ks = jax.random.split(key, 4)
    hidden = int(dim * mlp_ratio)
    ls = (jnp.full((dim,), init_values, jnp.float32) if init_values is not None
          else jnp.ones((dim,), jnp.float32))    # Identity == scale of ones
    return {
        "norm1_w": jnp.ones((dim,), jnp.float32), "norm1_b": jnp.zeros((dim,), jnp.float32),
        "qkv": init_linear(ks[0], dim, 3 * dim),
        "proj": init_linear(ks[1], dim, dim),
        "ls1": ls,
        "norm2_w": jnp.ones((dim,), jnp.float32), "norm2_b": jnp.zeros((dim,), jnp.float32),
        "fc1": init_linear(ks[2], dim, hidden),
        "fc2": init_linear(ks[3], hidden, dim),
        "ls2": ls,
    }


def init_params(key, cfg):
    gh = cfg["img_size"] // cfg["patch_size"]
    grid_size = (gh, gh)
    E, De = cfg["embed_dim"], cfg["decoder_embed_dim"]
    patch_dim = cfg["patch_size"] ** 2 * cfg["in_chans"]
    keys = jax.random.split(key, 8 + cfg["depth"] + cfg["decoder_depth"])
    return {
        # patch_embed conv (kernel==stride) folded into a (p*p*C, E) matrix
        "patch_embed": init_linear(keys[0], patch_dim, E),
        "cls_token": 0.02 * jax.random.normal(keys[1], (1, 1, E), jnp.float32),
        "pos_embed": jnp.asarray(get_2d_sincos_pos_embed(E, grid_size, True))[None],
        "blocks": [init_block(keys[8 + i], E, cfg["mlp_ratio"], 1e-5)
                   for i in range(cfg["depth"])],
        "norm_w": jnp.ones((E,), jnp.float32), "norm_b": jnp.zeros((E,), jnp.float32),
        "decoder_embed": init_linear(keys[2], E, De),
        "mask_token": 0.02 * jax.random.normal(keys[3], (1, 1, De), jnp.float32),
        "decoder_pos_embed": jnp.asarray(get_2d_sincos_pos_embed(De, grid_size, True))[None],
        "decoder_blocks": [init_block(keys[8 + cfg["depth"] + i], De, cfg["mlp_ratio"], None)
                           for i in range(cfg["decoder_depth"])],
        "decoder_norm_w": jnp.ones((De,), jnp.float32),
        "decoder_norm_b": jnp.zeros((De,), jnp.float32),
        "decoder_pred": init_linear(keys[4], De, patch_dim),
    }


def prepare_params(params, cfg):
    """Wrapper-level prep: bf16 matmul weights; fold Dh^-0.5 into q columns."""
    def prep_block(bp, dim, num_heads):
        scale = (dim // num_heads) ** -0.5
        qkv_w = jnp.concatenate([bp["qkv"]["w"][:, :dim] * scale,
                                 bp["qkv"]["w"][:, dim:]], axis=1)
        qkv_b = jnp.concatenate([bp["qkv"]["b"][:dim] * scale,
                                 bp["qkv"]["b"][dim:]], axis=0)
        return {
            "norm1_w": bp["norm1_w"], "norm1_b": bp["norm1_b"],
            "qkv_w": qkv_w.astype(jnp.bfloat16), "qkv_b": qkv_b,
            "proj_w": bp["proj"]["w"].astype(jnp.bfloat16), "proj_b": bp["proj"]["b"],
            "ls1": bp["ls1"],
            "norm2_w": bp["norm2_w"], "norm2_b": bp["norm2_b"],
            "fc1_w": bp["fc1"]["w"].astype(jnp.bfloat16), "fc1_b": bp["fc1"]["b"],
            "fc2_w": bp["fc2"]["w"].astype(jnp.bfloat16), "fc2_b": bp["fc2"]["b"],
            "ls2": bp["ls2"],
        }

    E, De = cfg["embed_dim"], cfg["decoder_embed_dim"]
    return {
        "patch_embed_w": params["patch_embed"]["w"].astype(jnp.bfloat16),
        "patch_embed_b": params["patch_embed"]["b"],
        "cls_token": params["cls_token"],
        "pos_embed": params["pos_embed"],
        "blocks": [prep_block(bp, E, cfg["num_heads"]) for bp in params["blocks"]],
        "norm_w": params["norm_w"], "norm_b": params["norm_b"],
        "decoder_embed_w": params["decoder_embed"]["w"].astype(jnp.bfloat16),
        "decoder_embed_b": params["decoder_embed"]["b"],
        "mask_token": params["mask_token"],
        "decoder_pos_embed": params["decoder_pos_embed"],
        "decoder_blocks": [prep_block(bp, De, cfg["decoder_num_heads"])
                           for bp in params["decoder_blocks"]],
        "decoder_norm_w": params["decoder_norm_w"],
        "decoder_norm_b": params["decoder_norm_b"],
        "decoder_pred_w": params["decoder_pred"]["w"].astype(jnp.bfloat16),
        "decoder_pred_b": params["decoder_pred"]["b"],
    }


# ---------------------------------------------------------------------------
# Forward pass (glue in JAX, compute in Pallas kernels)
# ---------------------------------------------------------------------------

def patchify(imgs, p, c):
    n, _, H, W = imgs.shape
    h, w = H // p, W // p
    x = imgs.reshape(n, c, h, p, w, p)
    x = jnp.transpose(x, (0, 2, 4, 3, 5, 1))     # n h w p q c
    return x.reshape(n, h * w, p * p * c)


def random_masking(x, mask_ratio, rng):
    # TODO(synk): argsort-based random shuffle + gather has no clean Pallas TPU
    # equivalent; done in plain JAX.
    N, L, D = x.shape
    len_keep = int(L * (1 - mask_ratio))
    noise = jax.random.uniform(rng, (N, L))
    ids_shuffle = jnp.argsort(noise, axis=1)
    ids_restore = jnp.argsort(ids_shuffle, axis=1)
    ids_keep = ids_shuffle[:, :len_keep]
    x_masked = jnp.take_along_axis(x, ids_keep[:, :, None], axis=1)
    mask = jnp.ones((N, L), jnp.float32).at[:, :len_keep].set(0.0)
    mask = jnp.take_along_axis(mask, ids_restore, axis=1)
    return x_masked, mask, ids_restore


def forward_encoder(fp, cfg, imgs, mask_ratio, rng):
    p, c = cfg["patch_size"], cfg["in_chans"]
    E, heads = cfg["embed_dim"], cfg["num_heads"]
    B = imgs.shape[0]
    patches = patchify(imgs, p, c)                                   # (B, L, p*p*c)
    L = patches.shape[1]
    x = linear(patches.reshape(B * L, -1), fp["patch_embed_w"], fp["patch_embed_b"],
               out_dtype=jnp.bfloat16).reshape(B, L, E)
    x = x + fp["pos_embed"][:, 1:, :].astype(jnp.bfloat16)
    x, mask, ids_restore = random_masking(x, mask_ratio, rng)
    cls = (fp["cls_token"] + fp["pos_embed"][:, :1, :]).astype(jnp.bfloat16)
    cls = jnp.broadcast_to(cls, (B, 1, E))
    x = jnp.concatenate([cls, x], axis=1)
    for bp in fp["blocks"]:
        x = block_forward(bp, x, heads)
    # NOTE: encoder-final LayerNorm is fused with decoder_embed in forward_decoder.
    return x, mask, ids_restore


def forward_decoder(fp, cfg, x, ids_restore):
    De, heads = cfg["decoder_embed_dim"], cfg["decoder_num_heads"]
    B, N, E = x.shape
    # fused: encoder norm + decoder_embed
    x = norm_linear(x.reshape(B * N, E), fp["norm_w"], fp["norm_b"],
                    fp["decoder_embed_w"], fp["decoder_embed_b"],
                    out_dtype=jnp.bfloat16).reshape(B, N, De)
    L = ids_restore.shape[1]
    mask_tokens = jnp.broadcast_to(fp["mask_token"].astype(jnp.bfloat16),
                                   (B, L + 1 - N, De))
    x_ = jnp.concatenate([x[:, 1:, :], mask_tokens], axis=1)
    x_ = jnp.take_along_axis(x_, ids_restore[:, :, None], axis=1)    # unshuffle (JAX gather)
    x = jnp.concatenate([x[:, :1, :], x_], axis=1)
    x = x + fp["decoder_pos_embed"].astype(jnp.bfloat16)
    for bp in fp["decoder_blocks"]:
        x = block_forward(bp, x, heads)
    B2, N2, _ = x.shape
    # fused: decoder norm + decoder_pred (f32 output for the loss)
    h = norm_linear(x.reshape(B2 * N2, De),
                    fp["decoder_norm_w"], fp["decoder_norm_b"],
                    fp["decoder_pred_w"], fp["decoder_pred_b"],
                    out_dtype=jnp.float32).reshape(B2, N2, -1)
    return h[:, 1:, :]


def mae_forward(fp, cfg, imgs, rng, mask_ratio=0.75, on_all_patches=False):
    latent, mask, ids_restore = forward_encoder(fp, cfg, imgs, mask_ratio, rng)
    pred = forward_decoder(fp, cfg, latent, ids_restore)
    target = patchify(imgs, cfg["patch_size"], cfg["in_chans"])
    loss = masked_mse_loss(pred, target, mask,
                           norm_pix=cfg["norm_pix_loss"], on_all=on_all_patches)
    return loss, pred, mask


# ---------------------------------------------------------------------------
# Main
# ---------------------------------------------------------------------------

if __name__ == "__main__":
    # NOTE: demo config is tiny (D=32 << 128 lanes) so tiles are lane-padded;
    # the kernel structure targets real ViT-B/L dims where last dims >= 128.
    cfg = dict(img_size=16, patch_size=4, in_chans=3,
               embed_dim=32, depth=2, num_heads=4,
               decoder_embed_dim=32, decoder_depth=2, decoder_num_heads=4,
               mlp_ratio=4.0, norm_pix_loss=False)

    key = jax.random.PRNGKey(0)
    pkey, ikey, mkey = jax.random.split(key, 3)
    params = init_params(pkey, cfg)
    fast_params = prepare_params(params, cfg)    # bf16 weights, scale folded
    imgs = jax.random.normal(
        ikey, (2, cfg["in_chans"], cfg["img_size"], cfg["img_size"]), jnp.float32)

    fwd = jax.jit(lambda fp_, imgs_, rng_: mae_forward(
        fp_, cfg, imgs_, rng_, mask_ratio=0.75, on_all_patches=False))

    loss, pred, mask = fwd(fast_params, imgs, mkey)
    jax.block_until_ready((loss, pred, mask))

    L = (cfg["img_size"] // cfg["patch_size"]) ** 2
    assert pred.shape == (2, L, cfg["patch_size"] ** 2 * cfg["in_chans"])
    assert mask.shape == (2, L)
    assert bool(jnp.isfinite(loss))
    print("KERNEL_OK")
</pallas_src>

<mosaic_0001>
module attributes {stable_mosaic.version = 11 : i64} {
  func.func @_linear_kernel(%arg0: i32, %arg1: memref<32x48xf32, #tpu.memory_space<vmem>>, %arg2: memref<48x32xbf16, #tpu.memory_space<vmem>>, %arg3: memref<1x32xf32, #tpu.memory_space<vmem>>, %arg4: memref<32x32xbf16, #tpu.memory_space<vmem>>) attributes {dimension_semantics = [#tpu.dimension_semantics<parallel>], iteration_bounds = array<i64: 1>, scalar_prefetch = 0 : i64, scratch_operands = 0 : i64, tpu.core_type = #tpu.core_type<tc>, window_params = [{transform_indices = @transform_0, window_bounds = array<i64: 32, 48>}, {pipeline_mode = #tpu.pipeline_mode<synchronous>, transform_indices = @transform_1, window_bounds = array<i64: 48, 32>}, {pipeline_mode = #tpu.pipeline_mode<synchronous>, transform_indices = @transform_2, window_bounds = array<i64: 1, 32>}, {transform_indices = @transform_3, window_bounds = array<i64: 32, 32>}]} {
    %c0 = arith.constant 0 : index
    %c0_0 = arith.constant 0 : index
    %0 = vector.load %arg1[%c0, %c0_0] : memref<32x48xf32, #tpu.memory_space<vmem>>, vector<32x48xf32>
    %c0_1 = arith.constant 0 : index
    %c0_2 = arith.constant 0 : index
    %1 = vector.load %arg2[%c0_1, %c0_2] : memref<48x32xbf16, #tpu.memory_space<vmem>>, vector<48x32xbf16>
    %2 = arith.truncf %0 : vector<32x48xf32> to vector<32x48xbf16>
    %cst = arith.constant dense<0.000000e+00> : vector<32x32xf32>
    %3 = tpu.matmul %2, %1, %cst {dimension_numbers = #tpu.dot_dimension_numbers<[1], [0], [0], [1], [0, 0, 1, 1], [], []>} : vector<32x48xbf16>, vector<48x32xbf16>, vector<32x32xf32> -> vector<32x32xf32>
    %c0_3 = arith.constant 0 : index
    %c0_4 = arith.constant 0 : index
    %4 = vector.load %arg3[%c0_3, %c0_4] : memref<1x32xf32, #tpu.memory_space<vmem>>, vector<1x32xf32>
    %5 = vector.broadcast %4 : vector<1x32xf32> to vector<32x32xf32>
    %6 = arith.addf %3, %5 : vector<32x32xf32>
    %7 = arith.truncf %6 : vector<32x32xf32> to vector<32x32xbf16>
    %c0_5 = arith.constant 0 : index
    %c0_6 = arith.constant 0 : index
    %8 = vector.load %arg4[%c0_5, %c0_6] : memref<32x32xbf16, #tpu.memory_space<vmem>>, vector<32x32xbf16>
    tpu.vector_store %arg4[%c0_5, %c0_6], %7 {strides = array<i32>} : memref<32x32xbf16, #tpu.memory_space<vmem>>, vector<32x32xbf16>,
    return
  }
  func.func @transform_0(%arg0: i32) -> (i32, i32) {
    %c0_i32 = arith.constant 0 : i32
    %c0_i32_0 = arith.constant 0 : i32
    return %arg0, %c0_i32 : i32, i32
  }
  func.func @transform_1(%arg0: i32) -> (i32, i32) {
    %c0_i32 = arith.constant 0 : i32
    %c0_i32_0 = arith.constant 0 : i32
    %c0_i32_1 = arith.constant 0 : i32
    return %c0_i32, %c0_i32_0 : i32, i32
  }
  func.func @transform_2(%arg0: i32) -> (i32, i32) {
    %c0_i32 = arith.constant 0 : i32
    %c0_i32_0 = arith.constant 0 : i32
    %c0_i32_1 = arith.constant 0 : i32
    return %c0_i32, %c0_i32_0 : i32, i32
  }
  func.func @transform_3(%arg0: i32) -> (i32, i32) {
    %c0_i32 = arith.constant 0 : i32
    %c0_i32_0 = arith.constant 0 : i32
    return %arg0, %c0_i32 : i32, i32
  }
}

module attributes {stable_mosaic.version = 11 : i64} {
  func.func @_block_kernel(%arg0: i32, %arg1: memref<10x32xbf16, #tpu.memory_space<vmem>>, %arg2: memref<1x32xf32, #tpu.memory_space<vmem>>, %arg3: memref<1x32xf32, #tpu.memory_space<vmem>>, %arg4: memref<32x96xbf16, #tpu.memory_space<vmem>>, %arg5: memref<1x96xf32, #tpu.memory_space<vmem>>, %arg6: memref<32x32xbf16, #tpu.memory_space<vmem>>, %arg7: memref<1x32xf32, #tpu.memory_space<vmem>>, %arg8: memref<1x32xf32, #tpu.memory_space<vmem>>, %arg9: memref<1x32xf32, #tpu.memory_space<vmem>>, %arg10: memref<1x32xf32, #tpu.memory_space<vmem>>, %arg11: memref<32x128xbf16, #tpu.memory_space<vmem>>, %arg12: memref<1x128xf32, #tpu.memory_space<vmem>>, %arg13: memref<128x32xbf16, #tpu.memory_space<vmem>>, %arg14: memref<1x32xf32, #tpu.memory_space<vmem>>, %arg15: memref<1x32xf32, #tpu.memory_space<vmem>>, %arg16: memref<10x32xbf16, #tpu.memory_space<vmem>>) attributes {dimension_semantics = [#tpu.dimension_semantics<parallel>], iteration_bounds = array<i64: 1>, scalar_prefetch = 0 : i64, scratch_operands = 0 : i64, tpu.core_type = #tpu.core_type<tc>, window_params = [{transform_indices = @transform_0, window_bounds = array<i64: 10, 32>}, {pipeline_mode = #tpu.pipeline_mode<synchronous>, transform_indices = @transform_1, window_bounds = array<i64: 1, 32>}, {pipeline_mode = #tpu.pipeline_mode<synchronous>, transform_indices = @transform_2, window_bounds = array<i64: 1, 32>}, {pipeline_mode = #tpu.pipeline_mode<synchronous>, transform_indices = @transform_3, window_bounds = array<i64: 32, 96>}, {pipeline_mode = #tpu.pipeline_mode<synchronous>, transform_indices = @transform_4, window_bounds = array<i64: 1, 96>}, {pipeline_mode = #tpu.pipeline_mode<synchronous>, transform_indices = @transform_5, window_bounds = array<i64: 32, 32>}, {pipeline_mode = #tpu.pipeline_mode<synchronous>, transform_indices = @transform_6, window_bounds = array<i64: 1, 32>}, {pipeline_mode = #tpu.pipeline_mode<synchronous>, transform_indices = @transform_7, window_bounds = array<i64: 1, 32>}, {pipeline_mode = #tpu.pipeline_mode<synchronous>, transform_indices = @transform_8, window_bounds = array<i64: 1, 32>}, {pipeline_mode = #tpu.pipeline_mode<synchronous>, transform_indices = @transform_9, window_bounds = array<i64: 1, 32>}, {pipeline_mode = #tpu.pipeline_mode<synchronous>, transform_indices = @transform_10, window_bounds = array<i64: 32, 128>}, {pipeline_mode = #tpu.pipeline_mode<synchronous>, transform_indices = @transform_11, window_bounds = array<i64: 1, 128>}, {pipeline_mode = #tpu.pipeline_mode<synchronous>, transform_indices = @transform_12, window_bounds = array<i64: 128, 32>}, {pipeline_mode = #tpu.pipeline_mode<synchronous>, transform_indices = @transform_13, window_bounds = array<i64: 1, 32>}, {pipeline_mode = #tpu.pipeline_mode<synchronous>, transform_indices = @transform_14, window_bounds = array<i64: 1, 32>}, {transform_indices = @transform_15, window_bounds = array<i64: 10, 32>}]} {
    %c0 = arith.constant 0 : index
    %c0_0 = arith.constant 0 : index
    %0 = vector.load %arg1[%c0, %c0_0] : memref<10x32xbf16, #tpu.memory_space<vmem>>, vector<10x32xbf16>
    %1 = arith.extf %0 : vector<10x32xbf16> to vector<10x32xf32>
    %c0_1 = arith.constant 0 : index
    %c0_2 = arith.constant 0 : index
    %2 = vector.load %arg2[%c0_1, %c0_2] : memref<1x32xf32, #tpu.memory_space<vmem>>, vector<1x32xf32>
    %c0_3 = arith.constant 0 : index
    %c0_4 = arith.constant 0 : index
    %3 = vector.load %arg3[%c0_3, %c0_4] : memref<1x32xf32, #tpu.memory_space<vmem>>, vector<1x32xf32>
    %cst = arith.constant dense<0.000000e+00> : vector<10xf32>
    %4 = vector.multi_reduction <add>, %1, %cst [1] : vector<10x32xf32> to vector<10xf32>
    %5 = vector.shape_cast %4 : vector<10xf32> to vector<10x1xf32>
    %cst_5 = arith.constant 3.200000e+01 : f32
    %6 = vector.broadcast %cst_5 : f32 to vector<10x1xf32>
    %7 = arith.divf %5, %6 : vector<10x1xf32>
    %8 = vector.broadcast %7 : vector<10x1xf32> to vector<10x32xf32>
    %9 = arith.subf %1, %8 : vector<10x32xf32>
    %10 = arith.mulf %9, %9 : vector<10x32xf32>
    %cst_6 = arith.constant dense<0.000000e+00> : vector<10xf32>
    %11 = vector.multi_reduction <add>, %10, %cst_6 [1] : vector<10x32xf32> to vector<10xf32>
    %12 = vector.shape_cast %11 : vector<10xf32> to vector<10x1xf32>
    %cst_7 = arith.constant 3.200000e+01 : f32
    %13 = vector.broadcast %cst_7 : f32 to vector<10x1xf32>
    %14 = arith.divf %12, %13 : vector<10x1xf32>
    %cst_8 = arith.constant 9.99999974E-6 : f32
    %15 = vector.broadcast %cst_8 : f32 to vector<10x1xf32>
    %16 = arith.addf %14, %15 : vector<10x1xf32>
    %17 = math.rsqrt %16 : vector<10x1xf32>
    %18 = vector.broadcast %17 : vector<10x1xf32> to vector<10x32xf32>
    %19 = arith.mulf %9, %18 : vector<10x32xf32>
    %20 = vector.broadcast %2 : vector<1x32xf32> to vector<10x32xf32>
    %21 = arith.mulf %19, %20 : vector<10x32xf32>
    %22 = vector.broadcast %3 : vector<1x32xf32> to vector<10x32xf32>
    %23 = arith.addf %21, %22 : vector<10x32xf32>
    %c0_9 = arith.constant 0 : index
    %c0_10 = arith.constant 0 : index
    %24 = vector.load %arg4[%c0_9, %c0_10] : memref<32x96xbf16, #tpu.memory_space<vmem>>, vector<32x96xbf16>
    %25 = arith.truncf %23 : vector<10x32xf32> to vector<10x32xbf16>
    %cst_11 = arith.constant dense<0.000000e+00> : vector<10x96xf32>
    %26 = tpu.matmul %25, %24, %cst_11 {dimension_numbers = #tpu.dot_dimension_numbers<[1], [0], [0], [1], [0, 0, 1, 1], [], []>} : vector<10x32xbf16>, vector<32x96xbf16>, vector<10x96xf32> -> vector<10x96xf32>
    %c0_12 = arith.constant 0 : index
    %c0_13 = arith.constant 0 : index
    %27 = vector.load %arg5[%c0_12, %c0_13] : memref<1x96xf32, #tpu.memory_space<vmem>>, vector<1x96xf32>
    %28 = vector.broadcast %27 : vector<1x96xf32> to vector<10x96xf32>
    %29 = arith.addf %26, %28 : vector<10x96xf32>
    %c0_14 = arith.constant 0 : index
    %c0_15 = arith.constant 0 : index
    %30 = vector.load %arg6[%c0_14, %c0_15] : memref<32x32xbf16, #tpu.memory_space<vmem>>, vector<32x32xbf16>
    %31 = vector.extract_strided_slice %29 {offsets = [0, 0], sizes = [5, 96], strides = [1, 1]} : vector<10x96xf32> to vector<5x96xf32>
    %cst_16 = arith.constant 0.000000e+00 : f32
    %32 = vector.broadcast %cst_16 : f32 to vector<5x32xf32>
    %33 = vector.extract_strided_slice %31 {offsets = [0, 0], sizes = [5, 8], strides = [1, 1]} : vector<5x96xf32> to vector<5x8xf32>
    %34 = vector.extract_strided_slice %31 {offsets = [0, 32], sizes = [5, 8], strides = [1, 1]} : vector<5x96xf32> to vector<5x8xf32>
    %35 = vector.extract_strided_slice %31 {offsets = [0, 64], sizes = [5, 8], strides = [1, 1]} : vector<5x96xf32> to vector<5x8xf32>
    %36 = arith.truncf %33 : vector<5x8xf32> to vector<5x8xbf16>
    %37 = arith.truncf %34 : vector<5x8xf32> to vector<5x8xbf16>
    %cst_17 = arith.constant dense<0.000000e+00> : vector<5x5xf32>
    %38 = tpu.matmul %36, %37, %cst_17 {dimension_numbers = #tpu.dot_dimension_numbers<[1], [1], [0], [0], [0, 0, 1, 0], [], []>} : vector<5x8xbf16>, vector<5x8xbf16>, vector<5x5xf32> -> vector<5x5xf32>
    %cst_18 = arith.constant dense<0xFF800000> : vector<5xf32>
    %39 = vector.multi_reduction <maximumf>, %38, %cst_18 [1] : vector<5x5xf32> to vector<5xf32>
    %40 = vector.shape_cast %39 : vector<5xf32> to vector<5x1xf32>
    %41 = vector.broadcast %40 : vector<5x1xf32> to vector<5x5xf32>
    %42 = arith.subf %38, %41 : vector<5x5xf32>
    %43 = math.exp %42 : vector<5x5xf32>
    %cst_19 = arith.constant dense<0.000000e+00> : vector<5xf32>
    %44 = vector.multi_reduction <add>, %43, %cst_19 [1] : vector<5x5xf32> to vector<5xf32>
    %45 = vector.shape_cast %44 : vector<5xf32> to vector<5x1xf32>
    %46 = tpu.reciprocal %45 {approx = true} : vector<5x1xf32> -> vector<5x1xf32>
    %47 = vector.broadcast %46 : vector<5x1xf32> to vector<5x5xf32>
    %48 = arith.mulf %43, %47 : vector<5x5xf32>
    %49 = arith.truncf %48 : vector<5x5xf32> to vector<5x5xbf16>
    %50 = arith.truncf %35 : vector<5x8xf32> to vector<5x8xbf16>
    %cst_20 = arith.constant dense<0.000000e+00> : vector<5x8xf32>
    %51 = tpu.matmul %49, %50, %cst_20 {dimension_numbers = #tpu.dot_dimension_numbers<[1], [0], [0], [1], [0, 0, 1, 1], [], []>} : vector<5x5xbf16>, vector<5x8xbf16>, vector<5x8xf32> -> vector<5x8xf32>
    %52 = vector.extract_strided_slice %30 {offsets = [0, 0], sizes = [8, 32], strides = [1, 1]} : vector<32x32xbf16> to vector<8x32xbf16>
    %53 = arith.truncf %51 : vector<5x8xf32> to vector<5x8xbf16>
    %cst_21 = arith.constant dense<0.000000e+00> : vector<5x32xf32>
    %54 = tpu.matmul %53, %52, %cst_21 {dimension_numbers = #tpu.dot_dimension_numbers<[1], [0], [0], [1], [0, 0, 1, 1], [], []>} : vector<5x8xbf16>, vector<8x32xbf16>, vector<5x32xf32> -> vector<5x32xf32>
    %55 = arith.addf %32, %54 : vector<5x32xf32>
    %56 = vector.extract_strided_slice %31 {offsets = [0, 8], sizes = [5, 8], strides = [1, 1]} : vector<5x96xf32> to vector<5x8xf32>
    %57 = vector.extract_strided_slice %31 {offsets = [0, 40], sizes = [5, 8], strides = [1, 1]} : vector<5x96xf32> to vector<5x8xf32>
    %58 = vector.extract_strided_slice %31 {offsets = [0, 72], sizes = [5, 8], strides = [1, 1]} : vector<5x96xf32> to vector<5x8xf32>
    %59 = arith.truncf %56 : vector<5x8xf32> to vector<5x8xbf16>
    %60 = arith.truncf %57 : vector<5x8xf32> to vector<5x8xbf16>
    %cst_22 = arith.constant dense<0.000000e+00> : vector<5x5xf32>
    %61 = tpu.matmul %59, %60, %cst_22 {dimension_numbers = #tpu.dot_dimension_numbers<[1], [1], [0], [0], [0, 0, 1, 0], [], []>} : vector<5x8xbf16>, vector<5x8xbf16>, vector<5x5xf32> -> vector<5x5xf32>
    %cst_23 = arith.constant dense<0xFF800000> : vector<5xf32>
    %62 = vector.multi_reduction <maximumf>, %61, %cst_23 [1] : vector<5x5xf32> to vector<5xf32>
    %63 = vector.shape_cast %62 : vector<5xf32> to vector<5x1xf32>
    %64 = vector.broadcast %63 : vector<5x1xf32> to vector<5x5xf32>
    %65 = arith.subf %61, %64 : vector<5x5xf32>
    %66 = math.exp %65 : vector<5x5xf32>
    %cst_24 = arith.constant dense<0.000000e+00> : vector<5xf32>
    %67 = vector.multi_reduction <add>, %66, %cst_24 [1] : vector<5x5xf32> to vector<5xf32>
    %68 = vector.shape_cast %67 : vector<5xf32> to vector<5x1xf32>
    %69 = tpu.reciprocal %68 {approx = true} : vector<5x1xf32> -> vector<5x1xf32>
    %70 = vector.broadcast %69 : vector<5x1xf32> to vector<5x5xf32>
    %71 = arith.mulf %66, %70 : vector<5x5xf32>
    %72 = arith.truncf %71 : vector<5x5xf32> to vector<5x5xbf16>
    %73 = arith.truncf %58 : vector<5x8xf32> to vector<5x8xbf16>
    %cst_25 = arith.constant dense<0.000000e+00> : vector<5x8xf32>
    %74 = tpu.matmul %72, %73, %cst_25 {dimension_numbers = #tpu.dot_dimension_numbers<[1], [0], [0], [1], [0, 0, 1, 1], [], []>} : vector<5x5xbf16>, vector<5x8xbf16>, vector<5x8xf32> -> vector<5x8xf32>
    %75 = vector.extract_strided_slice %30 {offsets = [8, 0], sizes = [8, 32], strides = [1, 1]} : vector<32x32xbf16> to vector<8x32xbf16>
    %76 = arith.truncf %74 : vector<5x8xf32> to vector<5x8xbf16>
    %cst_26 = arith.constant dense<0.000000e+00> : vector<5x32xf32>
    %77 = tpu.matmul %76, %75, %cst_26 {dimension_numbers = #tpu.dot_dimension_numbers<[1], [0], [0], [1], [0, 0, 1, 1], [], []>} : vector<5x8xbf16>, vector<8x32xbf16>, vector<5x32xf32> -> vector<5x32xf32>
    %78 = arith.addf %55, %77 : vector<5x32xf32>
    %79 = vector.extract_strided_slice %31 {offsets = [0, 16], sizes = [5, 8], strides = [1, 1]} : vector<5x96xf32> to vector<5x8xf32>
    %80 = vector.extract_strided_slice %31 {offsets = [0, 48], sizes = [5, 8], strides = [1, 1]} : vector<5x96xf32> to vector<5x8xf32>
    %81 = vector.extract_strided_slice %31 {offsets = [0, 80], sizes = [5, 8], strides = [1, 1]} : vector<5x96xf32> to vector<5x8xf32>
    %82 = arith.truncf %79 : vector<5x8xf32> to vector<5x8xbf16>
    %83 = arith.truncf %80 : vector<5x8xf32> to vector<5x8xbf16>
    %cst_27 = arith.constant dense<0.000000e+00> : vector<5x5xf32>
    %84 = tpu.matmul %82, %83, %cst_27 {dimension_numbers = #tpu.dot_dimension_numbers<[1], [1], [0], [0], [0, 0, 1, 0], [], []>} : vector<5x8xbf16>, vector<5x8xbf16>, vector<5x5xf32> -> vector<5x5xf32>
    %cst_28 = arith.constant dense<0xFF800000> : vector<5xf32>
    %85 = vector.multi_reduction <maximumf>, %84, %cst_28 [1] : vector<5x5xf32> to vector<5xf32>
    %86 = vector.shape_cast %85 : vector<5xf32> to vector<5x1xf32>
    %87 = vector.broadcast %86 : vector<5x1xf32> to vector<5x5xf32>
    %88 = arith.subf %84, %87 : vector<5x5xf32>
    %89 = math.exp %88 : vector<5x5xf32>
    %cst_29 = arith.constant dense<0.000000e+00> : vector<5xf32>
    %90 = vector.multi_reduction <add>, %89, %cst_29 [1] : vector<5x5xf32> to vector<5xf32>
    %91 = vector.shape_cast %90 : vector<5xf32> to vector<5x1xf32>
    %92 = tpu.reciprocal %91 {approx = true} : vector<5x1xf32> -> vector<5x1xf32>
    %93 = vector.broadcast %92 : vector<5x1xf32> to vector<5x5xf32>
    %94 = arith.mulf %89, %93 : vector<5x5xf32>
    %95 = arith.truncf %94 : vector<5x5xf32> to vector<5x5xbf16>
    %96 = arith.truncf %81 : vector<5x8xf32> to vector<5x8xbf16>
    %cst_30 = arith.constant dense<0.000000e+00> : vector<5x8xf32>
    %97 = tpu.matmul %95, %96, %cst_30 {dimension_numbers = #tpu.dot_dimension_numbers<[1], [0], [0], [1], [0, 0, 1, 1], [], []>} : vector<5x5xbf16>, vector<5x8xbf16>, vector<5x8xf32> -> vector<5x8xf32>
    %98 = vector.extract_strided_slice %30 {offsets = [16, 0], sizes = [8, 32], strides = [1, 1]} : vector<32x32xbf16> to vector<8x32xbf16>
    %99 = arith.truncf %97 : vector<5x8xf32> to vector<5x8xbf16>
    %cst_31 = arith.constant dense<0.000000e+00> : vector<5x32xf32>
    %100 = tpu.matmul %99, %98, %cst_31 {dimension_numbers = #tpu.dot_dimension_numbers<[1], [0], [0], [1], [0, 0, 1, 1], [], []>} : vector<5x8xbf16>, vector<8x32xbf16>, vector<5x32xf32> -> vector<5x32xf32>
    %101 = arith.addf %78, %100 : vector<5x32xf32>
    %102 = vector.extract_strided_slice %31 {offsets = [0, 24], sizes = [5, 8], strides = [1, 1]} : vector<5x96xf32> to vector<5x8xf32>
    %103 = vector.extract_strided_slice %31 {offsets = [0, 56], sizes = [5, 8], strides = [1, 1]} : vector<5x96xf32> to vector<5x8xf32>
    %104 = vector.extract_strided_slice %31 {offsets = [0, 88], sizes = [5, 8], strides = [1, 1]} : vector<5x96xf32> to vector<5x8xf32>
    %105 = arith.truncf %102 : vector<5x8xf32> to vector<5x8xbf16>
    %106 = arith.truncf %103 : vector<5x8xf32> to vector<5x8xbf16>
    %cst_32 = arith.constant dense<0.000000e+00> : vector<5x5xf32>
    %107 = tpu.matmul %105, %106, %cst_32 {dimension_numbers = #tpu.dot_dimension_numbers<[1], [1], [0], [0], [0, 0, 1, 0], [], []>} : vector<5x8xbf16>, vector<5x8xbf16>, vector<5x5xf32> -> vector<5x5xf32>
    %cst_33 = arith.constant dense<0xFF800000> : vector<5xf32>
    %108 = vector.multi_reduction <maximumf>, %107, %cst_33 [1] : vector<5x5xf32> to vector<5xf32>
    %109 = vector.shape_cast %108 : vector<5xf32> to vector<5x1xf32>
    %110 = vector.broadcast %109 : vector<5x1xf32> to vector<5x5xf32>
    %111 = arith.subf %107, %110 : vector<5x5xf32>
    %112 = math.exp %111 : vector<5x5xf32>
    %cst_34 = arith.constant dense<0.000000e+00> : vector<5xf32>
    %113 = vector.multi_reduction <add>, %112, %cst_34 [1] : vector<5x5xf32> to vector<5xf32>
    %114 = vector.shape_cast %113 : vector<5xf32> to vector<5x1xf32>
    %115 = tpu.reciprocal %114 {approx = true} : vector<5x1xf32> -> vector<5x1xf32>
    %116 = vector.broadcast %115 : vector<5x1xf32> to vector<5x5xf32>
    %117 = arith.mulf %112, %116 : vector<5x5xf32>
    %118 = arith.truncf %117 : vector<5x5xf32> to vector<5x5xbf16>
    %119 = arith.truncf %104 : vector<5x8xf32> to vector<5x8xbf16>
    %cst_35 = arith.constant dense<0.000000e+00> : vector<5x8xf32>
    %120 = tpu.matmul %118, %119, %cst_35 {dimension_numbers = #tpu.dot_dimension_numbers<[1], [0], [0], [1], [0, 0, 1, 1], [], []>} : vector<5x5xbf16>, vector<5x8xbf16>, vector<5x8xf32> -> vector<5x8xf32>
    %121 = vector.extract_strided_slice %30 {offsets = [24, 0], sizes = [8, 32], strides = [1, 1]} : vector<32x32xbf16> to vector<8x32xbf16>
    %122 = arith.truncf %120 : vector<5x8xf32> to vector<5x8xbf16>
    %cst_36 = arith.constant dense<0.000000e+00> : vector<5x32xf32>
    %123 = tpu.matmul %122, %121, %cst_36 {dimension_numbers = #tpu.dot_dimension_numbers<[1], [0], [0], [1], [0, 0, 1, 1], [], []>} : vector<5x8xbf16>, vector<8x32xbf16>, vector<5x32xf32> -> vector<5x32xf32>
    %124 = arith.addf %101, %123 : vector<5x32xf32>
    %125 = vector.extract_strided_slice %29 {offsets = [5, 0], sizes = [5, 96], strides = [1, 1]} : vector<10x96xf32> to vector<5x96xf32>
    %cst_37 = arith.constant 0.000000e+00 : f32
    %126 = vector.broadcast %cst_37 : f32 to vector<5x32xf32>
    %127 = vector.extract_strided_slice %125 {offsets = [0, 0], sizes = [5, 8], strides = [1, 1]} : vector<5x96xf32> to vector<5x8xf32>
    %128 = vector.extract_strided_slice %125 {offsets = [0, 32], sizes = [5, 8], strides = [1, 1]} : vector<5x96xf32> to vector<5x8xf32>
    %129 = vector.extract_strided_slice %125 {offsets = [0, 64], sizes = [5, 8], strides = [1, 1]} : vector<5x96xf32> to vector<5x8xf32>
    %130 = arith.truncf %127 : vector<5x8xf32> to vector<5x8xbf16>
    %131 = arith.truncf %128 : vector<5x8xf32> to vector<5x8xbf16>
    %cst_38 = arith.constant dense<0.000000e+00> : vector<5x5xf32>
    %132 = tpu.matmul %130, %131, %cst_38 {dimension_numbers = #tpu.dot_dimension_numbers<[1], [1], [0], [0], [0, 0, 1, 0], [], []>} : vector<5x8xbf16>, vector<5x8xbf16>, vector<5x5xf32> -> vector<5x5xf32>
    %cst_39 = arith.constant dense<0xFF800000> : vector<5xf32>
    %133 = vector.multi_reduction <maximumf>, %132, %cst_39 [1] : vector<5x5xf32> to vector<5xf32>
    %134 = vector.shape_cast %133 : vector<5xf32> to vector<5x1xf32>
    %135 = vector.broadcast %134 : vector<5x1xf32> to vector<5x5xf32>
    %136 = arith.subf %132, %135 : vector<5x5xf32>
    %137 = math.exp %136 : vector<5x5xf32>
    %cst_40 = arith.constant dense<0.000000e+00> : vector<5xf32>
    %138 = vector.multi_reduction <add>, %137, %cst_40 [1] : vector<5x5xf32> to vector<5xf32>
    %139 = vector.shape_cast %138 : vector<5xf32> to vector<5x1xf32>
    %140 = tpu.reciprocal %139 {approx = true} : vector<5x1xf32> -> vector<5x1xf32>
    %141 = vector.broadcast %140 : vector<5x1xf32> to vector<5x5xf32>
    %142 = arith.mulf %137, %141 : vector<5x5xf32>
    %143 = arith.truncf %142 : vector<5x5xf32> to vector<5x5xbf16>
    %144 = arith.truncf %129 : vector<5x8xf32> to vector<5x8xbf16>
    %cst_41 = arith.constant dense<0.000000e+00> : vector<5x8xf32>
    %145 = tpu.matmul %143, %144, %cst_41 {dimension_numbers = #tpu.dot_dimension_numbers<[1], [0], [0], [1], [0, 0, 1, 1], [], []>} : vector<5x5xbf16>, vector<5x8xbf16>, vector<5x8xf32> -> vector<5x8xf32>
    %146 = vector.extract_strided_slice %30 {offsets = [0, 0], sizes = [8, 32], strides = [1, 1]} : vector<32x32xbf16> to vector<8x32xbf16>
    %147 = arith.truncf %145 : vector<5x8xf32> to vector<5x8xbf16>
    %cst_42 = arith.constant dense<0.000000e+00> : vector<5x32xf32>
    %148 = tpu.matmul %147, %146, %cst_42 {dimension_numbers = #tpu.dot_dimension_numbers<[1], [0], [0], [1], [0, 0, 1, 1], [], []>} : vector<5x8xbf16>, vector<8x32xbf16>, vector<5x32xf32> -> vector<5x32xf32>
    %149 = arith.addf %126, %148 : vector<5x32xf32>
    %150 = vector.extract_strided_slice %125 {offsets = [0, 8], sizes = [5, 8], strides = [1, 1]} : vector<5x96xf32> to vector<5x8xf32>
    %151 = vector.extract_strided_slice %125 {offsets = [0, 40], sizes = [5, 8], strides = [1, 1]} : vector<5x96xf32> to vector<5x8xf32>
    %152 = vector.extract_strided_slice %125 {offsets = [0, 72], sizes = [5, 8], strides = [1, 1]} : vector<5x96xf32> to vector<5x8xf32>
    %153 = arith.truncf %150 : vector<5x8xf32> to vector<5x8xbf16>
    %154 = arith.truncf %151 : vector<5x8xf32> to vector<5x8xbf16>
    %cst_43 = arith.constant dense<0.000000e+00> : vector<5x5xf32>
    %155 = tpu.matmul %153, %154, %cst_43 {dimension_numbers = #tpu.dot_dimension_numbers<[1], [1], [0], [0], [0, 0, 1, 0], [], []>} : vector<5x8xbf16>, vector<5x8xbf16>, vector<5x5xf32> -> vector<5x5xf32>
    %cst_44 = arith.constant dense<0xFF800000> : vector<5xf32>
    %156 = vector.multi_reduction <maximumf>, %155, %cst_44 [1] : vector<5x5xf32> to vector<5xf32>
    %157 = vector.shape_cast %156 : vector<5xf32> to vector<5x1xf32>
    %158 = vector.broadcast %157 : vector<5x1xf32> to vector<5x5xf32>
    %159 = arith.subf %155, %158 : vector<5x5xf32>
    %160 = math.exp %159 : vector<5x5xf32>
    %cst_45 = arith.constant dense<0.000000e+00> : vector<5xf32>
    %161 = vector.multi_reduction <add>, %160, %cst_45 [1] : vector<5x5xf32> to vector<5xf32>
    %162 = vector.shape_cast %161 : vector<5xf32> to vector<5x1xf32>
    %163 = tpu.reciprocal %162 {approx = true} : vector<5x1xf32> -> vector<5x1xf32>
    %164 = vector.broadcast %163 : vector<5x1xf32> to vector<5x5xf32>
    %165 = arith.mulf %160, %164 : vector<5x5xf32>
    %166 = arith.truncf %165 : vector<5x5xf32> to vector<5x5xbf16>
    %167 = arith.truncf %152 : vector<5x8xf32> to vector<5x8xbf16>
    %cst_46 = arith.constant dense<0.000000e+00> : vector<5x8xf32>
    %168 = tpu.matmul %166, %167, %cst_46 {dimension_numbers = #tpu.dot_dimension_numbers<[1], [0], [0], [1], [0, 0, 1, 1], [], []>} : vector<5x5xbf16>, vector<5x8xbf16>, vector<5x8xf32> -> vector<5x8xf32>
    %169 = vector.extract_strided_slice %30 {offsets = [8, 0], sizes = [8, 32], strides = [1, 1]} : vector<32x32xbf16> to vector<8x32xbf16>
    %170 = arith.truncf %168 : vector<5x8xf32> to vector<5x8xbf16>
    %cst_47 = arith.constant dense<0.000000e+00> : vector<5x32xf32>
    %171 = tpu.matmul %170, %169, %cst_47 {dimension_numbers = #tpu.dot_dimension_numbers<[1], [0], [0], [1], [0, 0, 1, 1], [], []>} : vector<5x8xbf16>, vector<8x32xbf16>, vector<5x32xf32> -> vector<5x32xf32>
    %172 = arith.addf %149, %171 : vector<5x32xf32>
    %173 = vector.extract_strided_slice %125 {offsets = [0, 16], sizes = [5, 8], strides = [1, 1]} : vector<5x96xf32> to vector<5x8xf32>
    %174 = vector.extract_strided_slice %125 {offsets = [0, 48], sizes = [5, 8], strides = [1, 1]} : vector<5x96xf32> to vector<5x8xf32>
    %175 = vector.extract_strided_slice %125 {offsets = [0, 80], sizes = [5, 8], strides = [1, 1]} : vector<5x96xf32> to vector<5x8xf32>
    %176 = arith.truncf %173 : vector<5x8xf32> to vector<5x8xbf16>
    %177 = arith.truncf %174 : vector<5x8xf32> to vector<5x8xbf16>
    %cst_48 = arith.constant dense<0.000000e+00> : vector<5x5xf32>
    %178 = tpu.matmul %176, %177, %cst_48 {dimension_numbers = #tpu.dot_dimension_numbers<[1], [1], [0], [0], [0, 0, 1, 0], [], []>} : vector<5x8xbf16>, vector<5x8xbf16>, vector<5x5xf32> -> vector<5x5xf32>
    %cst_49 = arith.constant dense<0xFF800000> : vector<5xf32>
    %179 = vector.multi_reduction <maximumf>, %178, %cst_49 [1] : vector<5x5xf32> to vector<5xf32>
    %180 = vector.shape_cast %179 : vector<5xf32> to vector<5x1xf32>
    %181 = vector.broadcast %180 : vector<5x1xf32> to vector<5x5xf32>
    %182 = arith.subf %178, %181 : vector<5x5xf32>
    %183 = math.exp %182 : vector<5x5xf32>
    %cst_50 = arith.constant dense<0.000000e+00> : vector<5xf32>
    %184 = vector.multi_reduction <add>, %183, %cst_50 [1] : vector<5x5xf32> to vector<5xf32>
    %185 = vector.shape_cast %184 : vector<5xf32> to vector<5x1xf32>
    %186 = tpu.reciprocal %185 {approx = true} : vector<5x1xf32> -> vector<5x1xf32>
    %187 = vector.broadcast %186 : vector<5x1xf32> to vector<5x5xf32>
    %188 = arith.mulf %183, %187 : vector<5x5xf32>
    %189 = arith.truncf %188 : vector<5x5xf32> to vector<5x5xbf16>
    %190 = arith.truncf %175 : vector<5x8xf32> to vector<5x8xbf16>
    %cst_51 = arith.constant dense<0.000000e+00> : vector<5x8xf32>
    %191 = tpu.matmul %189, %190, %cst_51 {dimension_numbers = #tpu.dot_dimension_numbers<[1], [0], [0], [1], [0, 0, 1, 1], [], []>} : vector<5x5xbf16>, vector<5x8xbf16>, vector<5x8xf32> -> vector<5x8xf32>
    %192 = vector.extract_strided_slice %30 {offsets = [16, 0], sizes = [8, 32], strides = [1, 1]} : vector<32x32xbf16> to vector<8x32xbf16>
    %193 = arith.truncf %191 : vector<5x8xf32> to vector<5x8xbf16>
    %cst_52 = arith.constant dense<0.000000e+00> : vector<5x32xf32>
    %194 = tpu.matmul %193, %192, %cst_52 {dimension_numbers = #tpu.dot_dimension_numbers<[1], [0], [0], [1], [0, 0, 1, 1], [], []>} : vector<5x8xbf16>, vector<8x32xbf16>, vector<5x32xf32> -> vector<5x32xf32>
    %195 = arith.addf %172, %194 : vector<5x32xf32>
    %196 = vector.extract_strided_slice %125 {offsets = [0, 24], sizes = [5, 8], strides = [1, 1]} : vector<5x96xf32> to vector<5x8xf32>
    %197 = vector.extract_strided_slice %125 {offsets = [0, 56], sizes = [5, 8], strides = [1, 1]} : vector<5x96xf32> to vector<5x8xf32>
    %198 = vector.extract_strided_slice %125 {offsets = [0, 88], sizes = [5, 8], strides = [1, 1]} : vector<5x96xf32> to vector<5x8xf32>
    %199 = arith.truncf %196 : vector<5x8xf32> to vector<5x8xbf16>
    %200 = arith.truncf %197 : vector<5x8xf32> to vector<5x8xbf16>
    %cst_53 = arith.constant dense<0.000000e+00> : vector<5x5xf32>
    %201 = tpu.matmul %199, %200, %cst_53 {dimension_numbers = #tpu.dot_dimension_numbers<[1], [1], [0], [0], [0, 0, 1, 0], [], []>} : vector<5x8xbf16>, vector<5x8xbf16>, vector<5x5xf32> -> vector<5x5xf32>
    %cst_54 = arith.constant dense<0xFF800000> : vector<5xf32>
    %202 = vector.multi_reduction <maximumf>, %201, %cst_54 [1] : vector<5x5xf32> to vector<5xf32>
    %203 = vector.shape_cast %202 : vector<5xf32> to vector<5x1xf32>
    %204 = vector.broadcast %203 : vector<5x1xf32> to vector<5x5xf32>
    %205 = arith.subf %201, %204 : vector<5x5xf32>
    %206 = math.exp %205 : vector<5x5xf32>
    %cst_55 = arith.constant dense<0.000000e+00> : vector<5xf32>
    %207 = vector.multi_reduction <add>, %206, %cst_55 [1] : vector<5x5xf32> to vector<5xf32>
    %208 = vector.shape_cast %207 : vector<5xf32> to vector<5x1xf32>
    %209 = tpu.reciprocal %208 {approx = true} : vector<5x1xf32> -> vector<5x1xf32>
    %210 = vector.broadcast %209 : vector<5x1xf32> to vector<5x5xf32>
    %211 = arith.mulf %206, %210 : vector<5x5xf32>
    %212 = arith.truncf %211 : vector<5x5xf32> to vector<5x5xbf16>
    %213 = arith.truncf %198 : vector<5x8xf32> to vector<5x8xbf16>
    %cst_56 = arith.constant dense<0.000000e+00> : vector<5x8xf32>
    %214 = tpu.matmul %212, %213, %cst_56 {dimension_numbers = #tpu.dot_dimension_numbers<[1], [0], [0], [1], [0, 0, 1, 1], [], []>} : vector<5x5xbf16>, vector<5x8xbf16>, vector<5x8xf32> -> vector<5x8xf32>
    %215 = vector.extract_strided_slice %30 {offsets = [24, 0], sizes = [8, 32], strides = [1, 1]} : vector<32x32xbf16> to vector<8x32xbf16>
    %216 = arith.truncf %214 : vector<5x8xf32> to vector<5x8xbf16>
    %cst_57 = arith.constant dense<0.000000e+00> : vector<5x32xf32>
    %217 = tpu.matmul %216, %215, %cst_57 {dimension_numbers = #tpu.dot_dimension_numbers<[1], [0], [0], [1], [0, 0, 1, 1], [], []>} : vector<5x8xbf16>, vector<8x32xbf16>, vector<5x32xf32> -> vector<5x32xf32>
    %218 = arith.addf %195, %217 : vector<5x32xf32>
    %219 = tpu.concatenate %124, %218 in 0 : vector<5x32xf32>, vector<5x32xf32> -> vector<10x32xf32>
    %c0_58 = arith.constant 0 : index
    %c0_59 = arith.constant 0 : index
    %220 = vector.load %arg7[%c0_58, %c0_59] : memref<1x32xf32, #tpu.memory_space<vmem>>, vector<1x32xf32>
    %221 = vector.broadcast %220 : vector<1x32xf32> to vector<10x32xf32>
    %222 = arith.addf %219, %221 : vector<10x32xf32>
    %c0_60 = arith.constant 0 : index
    %c0_61 = arith.constant 0 : index
    %223 = vector.load %arg8[%c0_60, %c0_61] : memref<1x32xf32, #tpu.memory_space<vmem>>, vector<1x32xf32>
    %224 = vector.broadcast %223 : vector<1x32xf32> to vector<10x32xf32>
    %225 = arith.mulf %222, %224 : vector<10x32xf32>
    %226 = arith.addf %1, %225 : vector<10x32xf32>
    %c0_62 = arith.constant 0 : index
    %c0_63 = arith.constant 0 : index
    %227 = vector.load %arg9[%c0_62, %c0_63] : memref<1x32xf32, #tpu.memory_space<vmem>>, vector<1x32xf32>
    %c0_64 = arith.constant 0 : index
    %c0_65 = arith.constant 0 : index
    %228 = vector.load %arg10[%c0_64, %c0_65] : memref<1x32xf32, #tpu.memory_space<vmem>>, vector<1x32xf32>
    %cst_66 = arith.constant dense<0.000000e+00> : vector<10xf32>
    %229 = vector.multi_reduction <add>, %226, %cst_66 [1] : vector<10x32xf32> to vector<10xf32>
    %230 = vector.shape_cast %229 : vector<10xf32> to vector<10x1xf32>
    %cst_67 = arith.constant 3.200000e+01 : f32
    %231 = vector.broadcast %cst_67 : f32 to vector<10x1xf32>
    %232 = arith.divf %230, %231 : vector<10x1xf32>
    %233 = vector.broadcast %232 : vector<10x1xf32> to vector<10x32xf32>
    %234 = arith.subf %226, %233 : vector<10x32xf32>
    %235 = arith.mulf %234, %234 : vector<10x32xf32>
    %cst_68 = arith.constant dense<0.000000e+00> : vector<10xf32>
    %236 = vector.multi_reduction <add>, %235, %cst_68 [1] : vector<10x32xf32> to vector<10xf32>
    %237 = vector.shape_cast %236 : vector<10xf32> to vector<10x1xf32>
    %cst_69 = arith.constant 3.200000e+01 : f32
    %238 = vector.broadcast %cst_69 : f32 to vector<10x1xf32>
    %239 = arith.divf %237, %238 : vector<10x1xf32>
    %cst_70 = arith.constant 9.99999974E-6 : f32
    %240 = vector.broadcast %cst_70 : f32 to vector<10x1xf32>
    %241 = arith.addf %239, %240 : vector<10x1xf32>
    %242 = math.rsqrt %241 : vector<10x1xf32>
    %243 = vector.broadcast %242 : vector<10x1xf32> to vector<10x32xf32>
    %244 = arith.mulf %234, %243 : vector<10x32xf32>
    %245 = vector.broadcast %227 : vector<1x32xf32> to vector<10x32xf32>
    %246 = arith.mulf %244, %245 : vector<10x32xf32>
    %247 = vector.broadcast %228 : vector<1x32xf32> to vector<10x32xf32>
    %248 = arith.addf %246, %247 : vector<10x32xf32>
    %c0_71 = arith.constant 0 : index
    %c0_72 = arith.constant 0 : index
    %249 = vector.load %arg11[%c0_71, %c0_72] : memref<32x128xbf16, #tpu.memory_space<vmem>>, vector<32x128xbf16>
    %250 = arith.truncf %248 : vector<10x32xf32> to vector<10x32xbf16>
    %cst_73 = arith.constant dense<0.000000e+00> : vector<10x128xf32>
    %251 = tpu.matmul %250, %249, %cst_73 {dimension_numbers = #tpu.dot_dimension_numbers<[1], [0], [0], [1], [0, 0, 1, 1], [], []>} : vector<10x32xbf16>, vector<32x128xbf16>, vector<10x128xf32> -> vector<10x128xf32>
    %c0_74 = arith.constant 0 : index
    %c0_75 = arith.constant 0 : index
    %252 = vector.load %arg12[%c0_74, %c0_75] : memref<1x128xf32, #tpu.memory_space<vmem>>, vector<1x128xf32>
    %253 = vector.broadcast %252 : vector<1x128xf32> to vector<10x128xf32>
    %254 = arith.addf %251, %253 : vector<10x128xf32>
    %cst_76 = arith.constant 5.000000e-01 : f32
    %255 = vector.broadcast %cst_76 : f32 to vector<10x128xf32>
    %256 = arith.mulf %255, %254 : vector<10x128xf32>
    %cst_77 = arith.constant 4.471500e-02 : f32
    %257 = vector.broadcast %cst_77 : f32 to vector<10x128xf32>
    %258 = arith.mulf %257, %254 : vector<10x128xf32>
    %259 = arith.mulf %258, %254 : vector<10x128xf32>
    %260 = arith.mulf %259, %254 : vector<10x128xf32>
    %261 = arith.addf %254, %260 : vector<10x128xf32>
    %cst_78 = arith.constant 0.797884583 : f32
    %262 = vector.broadcast %cst_78 : f32 to vector<10x128xf32>
    %263 = arith.mulf %262, %261 : vector<10x128xf32>
    %264 = math.tanh %263 : vector<10x128xf32>
    %cst_79 = arith.constant 1.000000e+00 : f32
    %265 = vector.broadcast %cst_79 : f32 to vector<10x128xf32>
    %266 = arith.addf %265, %264 : vector<10x128xf32>
    %267 = arith.mulf %256, %266 : vector<10x128xf32>
    %c0_80 = arith.constant 0 : index
    %c0_81 = arith.constant 0 : index
    %268 = vector.load %arg13[%c0_80, %c0_81] : memref<128x32xbf16, #tpu.memory_space<vmem>>, vector<128x32xbf16>
    %269 = arith.truncf %267 : vector<10x128xf32> to vector<10x128xbf16>
    %cst_82 = arith.constant dense<0.000000e+00> : vector<10x32xf32>
    %270 = tpu.matmul %269, %268, %cst_82 {dimension_numbers = #tpu.dot_dimension_numbers<[1], [0], [0], [1], [0, 0, 1, 1], [], []>} : vector<10x128xbf16>, vector<128x32xbf16>, vector<10x32xf32> -> vector<10x32xf32>
    %c0_83 = arith.constant 0 : index
    %c0_84 = arith.constant 0 : index
    %271 = vector.load %arg14[%c0_83, %c0_84] : memref<1x32xf32, #tpu.memory_space<vmem>>, vector<1x32xf32>
    %272 = vector.broadcast %271 : vector<1x32xf32> to vector<10x32xf32>
    %273 = arith.addf %270, %272 : vector<10x32xf32>
    %c0_85 = arith.constant 0 : index
    %c0_86 = arith.constant 0 : index
    %274 = vector.load %arg15[%c0_85, %c0_86] : memref<1x32xf32, #tpu.memory_space<vmem>>, vector<1x32xf32>
    %275 = vector.broadcast %274 : vector<1x32xf32> to vector<10x32xf32>
    %276 = arith.mulf %273, %275 : vector<10x32xf32>
    %277 = arith.addf %226, %276 : vector<10x32xf32>
    %278 = arith.truncf %277 : vector<10x32xf32> to vector<10x32xbf16>
    %c0_87 = arith.constant 0 : index
    %c0_88 = arith.constant 0 : index
    %279 = vector.load %arg16[%c0_87, %c0_88] : memref<10x32xbf16, #tpu.memory_space<vmem>>, vector<10x32xbf16>
    tpu.vector_store %arg16[%c0_87, %c0_88], %278 {strides = array<i32>} : memref<10x32xbf16, #tpu.memory_space<vmem>>, vector<10x32xbf16>,
    return
  }
  func.func @transform_0(%arg0: i32) -> (i32, i32) {
    %c0_i32 = arith.constant 0 : i32
    %c0_i32_0 = arith.constant 0 : i32
    return %arg0, %c0_i32 : i32, i32
  }
  func.func @transform_1(%arg0: i32) -> (i32, i32) {
    %c0_i32 = arith.constant 0 : i32
    %c0_i32_0 = arith.constant 0 : i32
    %c0_i32_1 = arith.constant 0 : i32
    return %c0_i32, %c0_i32_0 : i32, i32
  }
  func.func @transform_2(%arg0: i32) -> (i32, i32) {
    %c0_i32 = arith.constant 0 : i32
    %c0_i32_0 = arith.constant 0 : i32
    %c0_i32_1 = arith.constant 0 : i32
    return %c0_i32, %c0_i32_0 : i32, i32
  }
  func.func @transform_3(%arg0: i32) -> (i32, i32) {
    %c0_i32 = arith.constant 0 : i32
    %c0_i32_0 = arith.constant 0 : i32
    %c0_i32_1 = arith.constant 0 : i32
    return %c0_i32, %c0_i32_0 : i32, i32
  }
  func.func @transform_4(%arg0: i32) -> (i32, i32) {
    %c0_i32 = arith.constant 0 : i32
    %c0_i32_0 = arith.constant 0 : i32
    %c0_i32_1 = arith.constant 0 : i32
    return %c0_i32, %c0_i32_0 : i32, i32
  }
  func.func @transform_5(%arg0: i32) -> (i32, i32) {
    %c0_i32 = arith.constant 0 : i32
    %c0_i32_0 = arith.constant 0 : i32
    %c0_i32_1 = arith.constant 0 : i32
    return %c0_i32, %c0_i32_0 : i32, i32
  }
  func.func @transform_6(%arg0: i32) -> (i32, i32) {
    %c0_i32 = arith.constant 0 : i32
    %c0_i32_0 = arith.constant 0 : i32
    %c0_i32_1 = arith.constant 0 : i32
    return %c0_i32, %c0_i32_0 : i32, i32
  }
  func.func @transform_7(%arg0: i32) -> (i32, i32) {
    %c0_i32 = arith.constant 0 : i32
    %c0_i32_0 = arith.constant 0 : i32
    %c0_i32_1 = arith.constant 0 : i32
    return %c0_i32, %c0_i32_0 : i32, i32
  }
  func.func @transform_8(%arg0: i32) -> (i32, i32) {
    %c0_i32 = arith.constant 0 : i32
    %c0_i32_0 = arith.constant 0 : i32
    %c0_i32_1 = arith.constant 0 : i32
    return %c0_i32, %c0_i32_0 : i32, i32
  }
  func.func @transform_9(%arg0: i32) -> (i32, i32) {
    %c0_i32 = arith.constant 0 : i32
    %c0_i32_0 = arith.constant 0 : i32
    %c0_i32_1 = arith.constant 0 : i32
    return %c0_i32, %c0_i32_0 : i32, i32
  }
  func.func @transform_10(%arg0: i32) -> (i32, i32) {
    %c0_i32 = arith.constant 0 : i32
    %c0_i32_0 = arith.constant 0 : i32
    %c0_i32_1 = arith.constant 0 : i32
    return %c0_i32, %c0_i32_0 : i32, i32
  }
  func.func @transform_11(%arg0: i32) -> (i32, i32) {
    %c0_i32 = arith.constant 0 : i32
    %c0_i32_0 = arith.constant 0 : i32
    %c0_i32_1 = arith.constant 0 : i32
    return %c0_i32, %c0_i32_0 : i32, i32
  }
  func.func @transform_12(%arg0: i32) -> (i32, i32) {
    %c0_i32 = arith.constant 0 : i32
    %c0_i32_0 = arith.constant 0 : i32
    %c0_i32_1 = arith.constant 0 : i32
    return %c0_i32, %c0_i32_0 : i32, i32
  }
  func.func @transform_13(%arg0: i32) -> (i32, i32) {
    %c0_i32 = arith.constant 0 : i32
    %c0_i32_0 = arith.constant 0 : i32
    %c0_i32_1 = arith.constant 0 : i32
    return %c0_i32, %c0_i32_0 : i32, i32
  }
  func.func @transform_14(%arg0: i32) -> (i32, i32) {
    %c0_i32 = arith.constant 0 : i32
    %c0_i32_0 = arith.constant 0 : i32
    %c0_i32_1 = arith.constant 0 : i32
    return %c0_i32, %c0_i32_0 : i32, i32
  }
  func.func @transform_15(%arg0: i32) -> (i32, i32) {
    %c0_i32 = arith.constant 0 : i32
    %c0_i32_0 = arith.constant 0 : i32
    return %arg0, %c0_i32 : i32, i32
  }
}

module attributes {stable_mosaic.version = 11 : i64} {
  func.func @_norm_linear_kernel(%arg0: i32, %arg1: memref<10x32xbf16, #tpu.memory_space<vmem>>, %arg2: memref<1x32xf32, #tpu.memory_space<vmem>>, %arg3: memref<1x32xf32, #tpu.memory_space<vmem>>, %arg4: memref<32x32xbf16, #tpu.memory_space<vmem>>, %arg5: memref<1x32xf32, #tpu.memory_space<vmem>>, %arg6: memref<10x32xbf16, #tpu.memory_space<vmem>>) attributes {dimension_semantics = [#tpu.dimension_semantics<parallel>], iteration_bounds = array<i64: 1>, scalar_prefetch = 0 : i64, scratch_operands = 0 : i64, tpu.core_type = #tpu.core_type<tc>, window_params = [{transform_indices = @transform_0, window_bounds = array<i64: 10, 32>}, {pipeline_mode = #tpu.pipeline_mode<synchronous>, transform_indices = @transform_1, window_bounds = array<i64: 1, 32>}, {pipeline_mode = #tpu.pipeline_mode<synchronous>, transform_indices = @transform_2, window_bounds = array<i64: 1, 32>}, {pipeline_mode = #tpu.pipeline_mode<synchronous>, transform_indices = @transform_3, window_bounds = array<i64: 32, 32>}, {pipeline_mode = #tpu.pipeline_mode<synchronous>, transform_indices = @transform_4, window_bounds = array<i64: 1, 32>}, {transform_indices = @transform_5, window_bounds = array<i64: 10, 32>}]} {
    %c0 = arith.constant 0 : index
    %c0_0 = arith.constant 0 : index
    %0 = vector.load %arg1[%c0, %c0_0] : memref<10x32xbf16, #tpu.memory_space<vmem>>, vector<10x32xbf16>
    %1 = arith.extf %0 : vector<10x32xbf16> to vector<10x32xf32>
    %c0_1 = arith.constant 0 : index
    %c0_2 = arith.constant 0 : index
    %2 = vector.load %arg2[%c0_1, %c0_2] : memref<1x32xf32, #tpu.memory_space<vmem>>, vector<1x32xf32>
    %c0_3 = arith.constant 0 : index
    %c0_4 = arith.constant 0 : index
    %3 = vector.load %arg3[%c0_3, %c0_4] : memref<1x32xf32, #tpu.memory_space<vmem>>, vector<1x32xf32>
    %cst = arith.constant dense<0.000000e+00> : vector<10xf32>
    %4 = vector.multi_reduction <add>, %1, %cst [1] : vector<10x32xf32> to vector<10xf32>
    %5 = vector.shape_cast %4 : vector<10xf32> to vector<10x1xf32>
    %cst_5 = arith.constant 3.200000e+01 : f32
    %6 = vector.broadcast %cst_5 : f32 to vector<10x1xf32>
    %7 = arith.divf %5, %6 : vector<10x1xf32>
    %8 = vector.broadcast %7 : vector<10x1xf32> to vector<10x32xf32>
    %9 = arith.subf %1, %8 : vector<10x32xf32>
    %10 = arith.mulf %9, %9 : vector<10x32xf32>
    %cst_6 = arith.constant dense<0.000000e+00> : vector<10xf32>
    %11 = vector.multi_reduction <add>, %10, %cst_6 [1] : vector<10x32xf32> to vector<10xf32>
    %12 = vector.shape_cast %11 : vector<10xf32> to vector<10x1xf32>
    %cst_7 = arith.constant 3.200000e+01 : f32
    %13 = vector.broadcast %cst_7 : f32 to vector<10x1xf32>
    %14 = arith.divf %12, %13 : vector<10x1xf32>
    %cst_8 = arith.constant 9.99999974E-6 : f32
    %15 = vector.broadcast %cst_8 : f32 to vector<10x1xf32>
    %16 = arith.addf %14, %15 : vector<10x1xf32>
    %17 = math.rsqrt %16 : vector<10x1xf32>
    %18 = vector.broadcast %17 : vector<10x1xf32> to vector<10x32xf32>
    %19 = arith.mulf %9, %18 : vector<10x32xf32>
    %20 = vector.broadcast %2 : vector<1x32xf32> to vector<10x32xf32>
    %21 = arith.mulf %19, %20 : vector<10x32xf32>
    %22 = vector.broadcast %3 : vector<1x32xf32> to vector<10x32xf32>
    %23 = arith.addf %21, %22 : vector<10x32xf32>
    %c0_9 = arith.constant 0 : index
    %c0_10 = arith.constant 0 : index
    %24 = vector.load %arg4[%c0_9, %c0_10] : memref<32x32xbf16, #tpu.memory_space<vmem>>, vector<32x32xbf16>
    %25 = arith.truncf %23 : vector<10x32xf32> to vector<10x32xbf16>
    %cst_11 = arith.constant dense<0.000000e+00> : vector<10x32xf32>
    %26 = tpu.matmul %25, %24, %cst_11 {dimension_numbers = #tpu.dot_dimension_numbers<[1], [0], [0], [1], [0, 0, 1, 1], [], []>} : vector<10x32xbf16>, vector<32x32xbf16>, vector<10x32xf32> -> vector<10x32xf32>
    %c0_12 = arith.constant 0 : index
    %c0_13 = arith.constant 0 : index
    %27 = vector.load %arg5[%c0_12, %c0_13] : memref<1x32xf32, #tpu.memory_space<vmem>>, vector<1x32xf32>
    %28 = vector.broadcast %27 : vector<1x32xf32> to vector<10x32xf32>
    %29 = arith.addf %26, %28 : vector<10x32xf32>
    %30 = arith.truncf %29 : vector<10x32xf32> to vector<10x32xbf16>
    %c0_14 = arith.constant 0 : index
    %c0_15 = arith.constant 0 : index
    %31 = vector.load %arg6[%c0_14, %c0_15] : memref<10x32xbf16, #tpu.memory_space<vmem>>, vector<10x32xbf16>
    tpu.vector_store %arg6[%c0_14, %c0_15], %30 {strides = array<i32>} : memref<10x32xbf16, #tpu.memory_space<vmem>>, vector<10x32xbf16>,
    return
  }
  func.func @transform_0(%arg0: i32) -> (i32, i32) {
    %c0_i32 = arith.constant 0 : i32
    %c0_i32_0 = arith.constant 0 : i32
    return %arg0, %c0_i32 : i32, i32
  }
  func.func @transform_1(%arg0: i32) -> (i32, i32) {
    %c0_i32 = arith.constant 0 : i32
    %c0_i32_0 = arith.constant 0 : i32
    %c0_i32_1 = arith.constant 0 : i32
    return %c0_i32, %c0_i32_0 : i32, i32
  }
  func.func @transform_2(%arg0: i32) -> (i32, i32) {
    %c0_i32 = arith.constant 0 : i32
    %c0_i32_0 = arith.constant 0 : i32
    %c0_i32_1 = arith.constant 0 : i32
    return %c0_i32, %c0_i32_0 : i32, i32
  }
  func.func @transform_3(%arg0: i32) -> (i32, i32) {
    %c0_i32 = arith.constant 0 : i32
    %c0_i32_0 = arith.constant 0 : i32
    %c0_i32_1 = arith.constant 0 : i32
    return %c0_i32, %c0_i32_0 : i32, i32
  }
  func.func @transform_4(%arg0: i32) -> (i32, i32) {
    %c0_i32 = arith.constant 0 : i32
    %c0_i32_0 = arith.constant 0 : i32
    %c0_i32_1 = arith.constant 0 : i32
    return %c0_i32, %c0_i32_0 : i32, i32
  }
  func.func @transform_5(%arg0: i32) -> (i32, i32) {
    %c0_i32 = arith.constant 0 : i32
    %c0_i32_0 = arith.constant 0 : i32
    return %arg0, %c0_i32 : i32, i32
  }
}

module attributes {stable_mosaic.version = 11 : i64} {
  func.func @_norm_linear_kernel(%arg0: i32, %arg1: memref<34x32xbf16, #tpu.memory_space<vmem>>, %arg2: memref<1x32xf32, #tpu.memory_space<vmem>>, %arg3: memref<1x32xf32, #tpu.memory_space<vmem>>, %arg4: memref<32x48xbf16, #tpu.memory_space<vmem>>, %arg5: memref<1x48xf32, #tpu.memory_space<vmem>>, %arg6: memref<34x48xf32, #tpu.memory_space<vmem>>) attributes {dimension_semantics = [#tpu.dimension_semantics<parallel>], iteration_bounds = array<i64: 1>, scalar_prefetch = 0 : i64, scratch_operands = 0 : i64, tpu.core_type = #tpu.core_type<tc>, window_params = [{transform_indices = @transform_0, window_bounds = array<i64: 34, 32>}, {pipeline_mode = #tpu.pipeline_mode<synchronous>, transform_indices = @transform_1, window_bounds = array<i64: 1, 32>}, {pipeline_mode = #tpu.pipeline_mode<synchronous>, transform_indices = @transform_2, window_bounds = array<i64: 1, 32>}, {pipeline_mode = #tpu.pipeline_mode<synchronous>, transform_indices = @transform_3, window_bounds = array<i64: 32, 48>}, {pipeline_mode = #tpu.pipeline_mode<synchronous>, transform_indices = @transform_4, window_bounds = array<i64: 1, 48>}, {transform_indices = @transform_5, window_bounds = array<i64: 34, 48>}]} {
    %c0 = arith.constant 0 : index
    %c0_0 = arith.constant 0 : index
    %0 = vector.load %arg1[%c0, %c0_0] : memref<34x32xbf16, #tpu.memory_space<vmem>>, vector<34x32xbf16>
    %1 = arith.extf %0 : vector<34x32xbf16> to vector<34x32xf32>
    %c0_1 = arith.constant 0 : index
    %c0_2 = arith.constant 0 : index
    %2 = vector.load %arg2[%c0_1, %c0_2] : memref<1x32xf32, #tpu.memory_space<vmem>>, vector<1x32xf32>
    %c0_3 = arith.constant 0 : index
    %c0_4 = arith.constant 0 : index
    %3 = vector.load %arg3[%c0_3, %c0_4] : memref<1x32xf32, #tpu.memory_space<vmem>>, vector<1x32xf32>
    %cst = arith.constant dense<0.000000e+00> : vector<34xf32>
    %4 = vector.multi_reduction <add>, %1, %cst [1] : vector<34x32xf32> to vector<34xf32>
    %5 = vector.shape_cast %4 : vector<34xf32> to vector<34x1xf32>
    %cst_5 = arith.constant 3.200000e+01 : f32
    %6 = vector.broadcast %cst_5 : f32 to vector<34x1xf32>
    %7 = arith.divf %5, %6 : vector<34x1xf32>
    %8 = vector.broadcast %7 : vector<34x1xf32> to vector<34x32xf32>
    %9 = arith.subf %1, %8 : vector<34x32xf32>
    %10 = arith.mulf %9, %9 : vector<34x32xf32>
    %cst_6 = arith.constant dense<0.000000e+00> : vector<34xf32>
    %11 = vector.multi_reduction <add>, %10, %cst_6 [1] : vector<34x32xf32> to vector<34xf32>
    %12 = vector.shape_cast %11 : vector<34xf32> to vector<34x1xf32>
    %cst_7 = arith.constant 3.200000e+01 : f32
    %13 = vector.broadcast %cst_7 : f32 to vector<34x1xf32>
    %14 = arith.divf %12, %13 : vector<34x1xf32>
    %cst_8 = arith.constant 9.99999974E-6 : f32
    %15 = vector.broadcast %cst_8 : f32 to vector<34x1xf32>
    %16 = arith.addf %14, %15 : vector<34x1xf32>
    %17 = math.rsqrt %16 : vector<34x1xf32>
    %18 = vector.broadcast %17 : vector<34x1xf32> to vector<34x32xf32>
    %19 = arith.mulf %9, %18 : vector<34x32xf32>
    %20 = vector.broadcast %2 : vector<1x32xf32> to vector<34x32xf32>
    %21 = arith.mulf %19, %20 : vector<34x32xf32>
    %22 = vector.broadcast %3 : vector<1x32xf32> to vector<34x32xf32>
    %23 = arith.addf %21, %22 : vector<34x32xf32>
    %c0_9 = arith.constant 0 : index
    %c0_10 = arith.constant 0 : index
    %24 = vector.load %arg4[%c0_9, %c0_10] : memref<32x48xbf16, #tpu.memory_space<vmem>>, vector<32x48xbf16>
    %25 = arith.truncf %23 : vector<34x32xf32> to vector<34x32xbf16>
    %cst_11 = arith.constant dense<0.000000e+00> : vector<34x48xf32>
    %26 = tpu.matmul %25, %24, %cst_11 {dimension_numbers = #tpu.dot_dimension_numbers<[1], [0], [0], [1], [0, 0, 1, 1], [], []>} : vector<34x32xbf16>, vector<32x48xbf16>, vector<34x48xf32> -> vector<34x48xf32>
    %c0_12 = arith.constant 0 : index
    %c0_13 = arith.constant 0 : index
    %27 = vector.load %arg5[%c0_12, %c0_13] : memref<1x48xf32, #tpu.memory_space<vmem>>, vector<1x48xf32>
    %28 = vector.broadcast %27 : vector<1x48xf32> to vector<34x48xf32>
    %29 = arith.addf %26, %28 : vector<34x48xf32>
    %c0_14 = arith.constant 0 : index
    %c0_15 = arith.constant 0 : index
    %30 = vector.load %arg6[%c0_14, %c0_15] : memref<34x48xf32, #tpu.memory_space<vmem>>, vector<34x48xf32>
    tpu.vector_store %arg6[%c0_14, %c0_15], %29 {strides = array<i32>} : memref<34x48xf32, #tpu.memory_space<vmem>>, vector<34x48xf32>,
    return
  }
  func.func @transform_0(%arg0: i32) -> (i32, i32) {
    %c0_i32 = arith.constant 0 : i32
    %c0_i32_0 = arith.constant 0 : i32
    return %arg0, %c0_i32 : i32, i32
  }
  func.func @transform_1(%arg0: i32) -> (i32, i32) {
    %c0_i32 = arith.constant 0 : i32
    %c0_i32_0 = arith.constant 0 : i32
    %c0_i32_1 = arith.constant 0 : i32
    return %c0_i32, %c0_i32_0 : i32, i32
  }
  func.func @transform_2(%arg0: i32) -> (i32, i32) {
    %c0_i32 = arith.constant 0 : i32
    %c0_i32_0 = arith.constant 0 : i32
    %c0_i32_1 = arith.constant 0 : i32
    return %c0_i32, %c0_i32_0 : i32, i32
  }
  func.func @transform_3(%arg0: i32) -> (i32, i32) {
    %c0_i32 = arith.constant 0 : i32
    %c0_i32_0 = arith.constant 0 : i32
    %c0_i32_1 = arith.constant 0 : i32
    return %c0_i32, %c0_i32_0 : i32, i32
  }
  func.func @transform_4(%arg0: i32) -> (i32, i32) {
    %c0_i32 = arith.constant 0 : i32
    %c0_i32_0 = arith.constant 0 : i32
    %c0_i32_1 = arith.constant 0 : i32
    return %c0_i32, %c0_i32_0 : i32, i32
  }
  func.func @transform_5(%arg0: i32) -> (i32, i32) {
    %c0_i32 = arith.constant 0 : i32
    %c0_i32_0 = arith.constant 0 : i32
    return %arg0, %c0_i32 : i32, i32
  }
}

module attributes {stable_mosaic.version = 11 : i64} {
  func.func @_block_kernel(%arg0: i32, %arg1: memref<34x32xbf16, #tpu.memory_space<vmem>>, %arg2: memref<1x32xf32, #tpu.memory_space<vmem>>, %arg3: memref<1x32xf32, #tpu.memory_space<vmem>>, %arg4: memref<32x96xbf16, #tpu.memory_space<vmem>>, %arg5: memref<1x96xf32, #tpu.memory_space<vmem>>, %arg6: memref<32x32xbf16, #tpu.memory_space<vmem>>, %arg7: memref<1x32xf32, #tpu.memory_space<vmem>>, %arg8: memref<1x32xf32, #tpu.memory_space<vmem>>, %arg9: memref<1x32xf32, #tpu.memory_space<vmem>>, %arg10: memref<1x32xf32, #tpu.memory_space<vmem>>, %arg11: memref<32x128xbf16, #tpu.memory_space<vmem>>, %arg12: memref<1x128xf32, #tpu.memory_space<vmem>>, %arg13: memref<128x32xbf16, #tpu.memory_space<vmem>>, %arg14: memref<1x32xf32, #tpu.memory_space<vmem>>, %arg15: memref<1x32xf32, #tpu.memory_space<vmem>>, %arg16: memref<34x32xbf16, #tpu.memory_space<vmem>>) attributes {dimension_semantics = [#tpu.dimension_semantics<parallel>], iteration_bounds = array<i64: 1>, scalar_prefetch = 0 : i64, scratch_operands = 0 : i64, tpu.core_type = #tpu.core_type<tc>, window_params = [{transform_indices = @transform_0, window_bounds = array<i64: 34, 32>}, {pipeline_mode = #tpu.pipeline_mode<synchronous>, transform_indices = @transform_1, window_bounds = array<i64: 1, 32>}, {pipeline_mode = #tpu.pipeline_mode<synchronous>, transform_indices = @transform_2, window_bounds = array<i64: 1, 32>}, {pipeline_mode = #tpu.pipeline_mode<synchronous>, transform_indices = @transform_3, window_bounds = array<i64: 32, 96>}, {pipeline_mode = #tpu.pipeline_mode<synchronous>, transform_indices = @transform_4, window_bounds = array<i64: 1, 96>}, {pipeline_mode = #tpu.pipeline_mode<synchronous>, transform_indices = @transform_5, window_bounds = array<i64: 32, 32>}, {pipeline_mode = #tpu.pipeline_mode<synchronous>, transform_indices = @transform_6, window_bounds = array<i64: 1, 32>}, {pipeline_mode = #tpu.pipeline_mode<synchronous>, transform_indices = @transform_7, window_bounds = array<i64: 1, 32>}, {pipeline_mode = #tpu.pipeline_mode<synchronous>, transform_indices = @transform_8, window_bounds = array<i64: 1, 32>}, {pipeline_mode = #tpu.pipeline_mode<synchronous>, transform_indices = @transform_9, window_bounds = array<i64: 1, 32>}, {pipeline_mode = #tpu.pipeline_mode<synchronous>, transform_indices = @transform_10, window_bounds = array<i64: 32, 128>}, {pipeline_mode = #tpu.pipeline_mode<synchronous>, transform_indices = @transform_11, window_bounds = array<i64: 1, 128>}, {pipeline_mode = #tpu.pipeline_mode<synchronous>, transform_indices = @transform_12, window_bounds = array<i64: 128, 32>}, {pipeline_mode = #tpu.pipeline_mode<synchronous>, transform_indices = @transform_13, window_bounds = array<i64: 1, 32>}, {pipeline_mode = #tpu.pipeline_mode<synchronous>, transform_indices = @transform_14, window_bounds = array<i64: 1, 32>}, {transform_indices = @transform_15, window_bounds = array<i64: 34, 32>}]} {
    %c0 = arith.constant 0 : index
    %c0_0 = arith.constant 0 : index
    %0 = vector.load %arg1[%c0, %c0_0] : memref<34x32xbf16, #tpu.memory_space<vmem>>, vector<34x32xbf16>
    %1 = arith.extf %0 : vector<34x32xbf16> to vector<34x32xf32>
    %c0_1 = arith.constant 0 : index
    %c0_2 = arith.constant 0 : index
    %2 = vector.load %arg2[%c0_1, %c0_2] : memref<1x32xf32, #tpu.memory_space<vmem>>, vector<1x32xf32>
    %c0_3 = arith.constant 0 : index
    %c0_4 = arith.constant 0 : index
    %3 = vector.load %arg3[%c0_3, %c0_4] : memref<1x32xf32, #tpu.memory_space<vmem>>, vector<1x32xf32>
    %cst = arith.constant dense<0.000000e+00> : vector<34xf32>
    %4 = vector.multi_reduction <add>, %1, %cst [1] : vector<34x32xf32> to vector<34xf32>
    %5 = vector.shape_cast %4 : vector<34xf32> to vector<34x1xf32>
    %cst_5 = arith.constant 3.200000e+01 : f32
    %6 = vector.broadcast %cst_5 : f32 to vector<34x1xf32>
    %7 = arith.divf %5, %6 : vector<34x1xf32>
    %8 = vector.broadcast %7 : vector<34x1xf32> to vector<34x32xf32>
    %9 = arith.subf %1, %8 : vector<34x32xf32>
    %10 = arith.mulf %9, %9 : vector<34x32xf32>
    %cst_6 = arith.constant dense<0.000000e+00> : vector<34xf32>
    %11 = vector.multi_reduction <add>, %10, %cst_6 [1] : vector<34x32xf32> to vector<34xf32>
    %12 = vector.shape_cast %11 : vector<34xf32> to vector<34x1xf32>
    %cst_7 = arith.constant 3.200000e+01 : f32
    %13 = vector.broadcast %cst_7 : f32 to vector<34x1xf32>
    %14 = arith.divf %12, %13 : vector<34x1xf32>
    %cst_8 = arith.constant 9.99999974E-6 : f32
    %15 = vector.broadcast %cst_8 : f32 to vector<34x1xf32>
    %16 = arith.addf %14, %15 : vector<34x1xf32>
    %17 = math.rsqrt %16 : vector<34x1xf32>
    %18 = vector.broadcast %17 : vector<34x1xf32> to vector<34x32xf32>
    %19 = arith.mulf %9, %18 : vector<34x32xf32>
    %20 = vector.broadcast %2 : vector<1x32xf32> to vector<34x32xf32>
    %21 = arith.mulf %19, %20 : vector<34x32xf32>
    %22 = vector.broadcast %3 : vector<1x32xf32> to vector<34x32xf32>
    %23 = arith.addf %21, %22 : vector<34x32xf32>
    %c0_9 = arith.constant 0 : index
    %c0_10 = arith.constant 0 : index
    %24 = vector.load %arg4[%c0_9, %c0_10] : memref<32x96xbf16, #tpu.memory_space<vmem>>, vector<32x96xbf16>
    %25 = arith.truncf %23 : vector<34x32xf32> to vector<34x32xbf16>
    %cst_11 = arith.constant dense<0.000000e+00> : vector<34x96xf32>
    %26 = tpu.matmul %25, %24, %cst_11 {dimension_numbers = #tpu.dot_dimension_numbers<[1], [0], [0], [1], [0, 0, 1, 1], [], []>} : vector<34x32xbf16>, vector<32x96xbf16>, vector<34x96xf32> -> vector<34x96xf32>
    %c0_12 = arith.constant 0 : index
    %c0_13 = arith.constant 0 : index
    %27 = vector.load %arg5[%c0_12, %c0_13] : memref<1x96xf32, #tpu.memory_space<vmem>>, vector<1x96xf32>
    %28 = vector.broadcast %27 : vector<1x96xf32> to vector<34x96xf32>
    %29 = arith.addf %26, %28 : vector<34x96xf32>
    %c0_14 = arith.constant 0 : index
    %c0_15 = arith.constant 0 : index
    %30 = vector.load %arg6[%c0_14, %c0_15] : memref<32x32xbf16, #tpu.memory_space<vmem>>, vector<32x32xbf16>
    %31 = vector.extract_strided_slice %29 {offsets = [0, 0], sizes = [17, 96], strides = [1, 1]} : vector<34x96xf32> to vector<17x96xf32>
    %cst_16 = arith.constant 0.000000e+00 : f32
    %32 = vector.broadcast %cst_16 : f32 to vector<17x32xf32>
    %33 = vector.extract_strided_slice %31 {offsets = [0, 0], sizes = [17, 8], strides = [1, 1]} : vector<17x96xf32> to vector<17x8xf32>
    %34 = vector.extract_strided_slice %31 {offsets = [0, 32], sizes = [17, 8], strides = [1, 1]} : vector<17x96xf32> to vector<17x8xf32>
    %35 = vector.extract_strided_slice %31 {offsets = [0, 64], sizes = [17, 8], strides = [1, 1]} : vector<17x96xf32> to vector<17x8xf32>
    %36 = arith.truncf %33 : vector<17x8xf32> to vector<17x8xbf16>
    %37 = arith.truncf %34 : vector<17x8xf32> to vector<17x8xbf16>
    %cst_17 = arith.constant dense<0.000000e+00> : vector<17x17xf32>
    %38 = tpu.matmul %36, %37, %cst_17 {dimension_numbers = #tpu.dot_dimension_numbers<[1], [1], [0], [0], [0, 0, 1, 0], [], []>} : vector<17x8xbf16>, vector<17x8xbf16>, vector<17x17xf32> -> vector<17x17xf32>
    %cst_18 = arith.constant dense<0xFF800000> : vector<17xf32>
    %39 = vector.multi_reduction <maximumf>, %38, %cst_18 [1] : vector<17x17xf32> to vector<17xf32>
    %40 = vector.shape_cast %39 : vector<17xf32> to vector<17x1xf32>
    %41 = vector.broadcast %40 : vector<17x1xf32> to vector<17x17xf32>
    %42 = arith.subf %38, %41 : vector<17x17xf32>
    %43 = math.exp %42 : vector<17x17xf32>
    %cst_19 = arith.constant dense<0.000000e+00> : vector<17xf32>
    %44 = vector.multi_reduction <add>, %43, %cst_19 [1] : vector<17x17xf32> to vector<17xf32>
    %45 = vector.shape_cast %44 : vector<17xf32> to vector<17x1xf32>
    %46 = tpu.reciprocal %45 {approx = true} : vector<17x1xf32> -> vector<17x1xf32>
    %47 = vector.broadcast %46 : vector<17x1xf32> to vector<17x17xf32>
    %48 = arith.mulf %43, %47 : vector<17x17xf32>
    %49 = arith.truncf %48 : vector<17x17xf32> to vector<17x17xbf16>
    %50 = arith.truncf %35 : vector<17x8xf32> to vector<17x8xbf16>
    %cst_20 = arith.constant dense<0.000000e+00> : vector<17x8xf32>
    %51 = tpu.matmul %49, %50, %cst_20 {dimension_numbers = #tpu.dot_dimension_numbers<[1], [0], [0], [1], [0, 0, 1, 1], [], []>} : vector<17x17xbf16>, vector<17x8xbf16>, vector<17x8xf32> -> vector<17x8xf32>
    %52 = vector.extract_strided_slice %30 {offsets = [0, 0], sizes = [8, 32], strides = [1, 1]} : vector<32x32xbf16> to vector<8x32xbf16>
    %53 = arith.truncf %51 : vector<17x8xf32> to vector<17x8xbf16>
    %cst_21 = arith.constant dense<0.000000e+00> : vector<17x32xf32>
    %54 = tpu.matmul %53, %52, %cst_21 {dimension_numbers = #tpu.dot_dimension_numbers<[1], [0], [0], [1], [0, 0, 1, 1], [], []>} : vector<17x8xbf16>, vector<8x32xbf16>, vector<17x32xf32> -> vector<17x32xf32>
    %55 = arith.addf %32, %54 : vector<17x32xf32>
    %56 = vector.extract_strided_slice %31 {offsets = [0, 8], sizes = [17, 8], strides = [1, 1]} : vector<17x96xf32> to vector<17x8xf32>
    %57 = vector.extract_strided_slice %31 {offsets = [0, 40], sizes = [17, 8], strides = [1, 1]} : vector<17x96xf32> to vector<17x8xf32>
    %58 = vector.extract_strided_slice %31 {offsets = [0, 72], sizes = [17, 8], strides = [1, 1]} : vector<17x96xf32> to vector<17x8xf32>
    %59 = arith.truncf %56 : vector<17x8xf32> to vector<17x8xbf16>
    %60 = arith.truncf %57 : vector<17x8xf32> to vector<17x8xbf16>
    %cst_22 = arith.constant dense<0.000000e+00> : vector<17x17xf32>
    %61 = tpu.matmul %59, %60, %cst_22 {dimension_numbers = #tpu.dot_dimension_numbers<[1], [1], [0], [0], [0, 0, 1, 0], [], []>} : vector<17x8xbf16>, vector<17x8xbf16>, vector<17x17xf32> -> vector<17x17xf32>
    %cst_23 = arith.constant dense<0xFF800000> : vector<17xf32>
    %62 = vector.multi_reduction <maximumf>, %61, %cst_23 [1] : vector<17x17xf32> to vector<17xf32>
    %63 = vector.shape_cast %62 : vector<17xf32> to vector<17x1xf32>
    %64 = vector.broadcast %63 : vector<17x1xf32> to vector<17x17xf32>
    %65 = arith.subf %61, %64 : vector<17x17xf32>
    %66 = math.exp %65 : vector<17x17xf32>
    %cst_24 = arith.constant dense<0.000000e+00> : vector<17xf32>
    %67 = vector.multi_reduction <add>, %66, %cst_24 [1] : vector<17x17xf32> to vector<17xf32>
    %68 = vector.shape_cast %67 : vector<17xf32> to vector<17x1xf32>
    %69 = tpu.reciprocal %68 {approx = true} : vector<17x1xf32> -> vector<17x1xf32>
    %70 = vector.broadcast %69 : vector<17x1xf32> to vector<17x17xf32>
    %71 = arith.mulf %66, %70 : vector<17x17xf32>
    %72 = arith.truncf %71 : vector<17x17xf32> to vector<17x17xbf16>
    %73 = arith.truncf %58 : vector<17x8xf32> to vector<17x8xbf16>
    %cst_25 = arith.constant dense<0.000000e+00> : vector<17x8xf32>
    %74 = tpu.matmul %72, %73, %cst_25 {dimension_numbers = #tpu.dot_dimension_numbers<[1], [0], [0], [1], [0, 0, 1, 1], [], []>} : vector<17x17xbf16>, vector<17x8xbf16>, vector<17x8xf32> -> vector<17x8xf32>
    %75 = vector.extract_strided_slice %30 {offsets = [8, 0], sizes = [8, 32], strides = [1, 1]} : vector<32x32xbf16> to vector<8x32xbf16>
    %76 = arith.truncf %74 : vector<17x8xf32> to vector<17x8xbf16>
    %cst_26 = arith.constant dense<0.000000e+00> : vector<17x32xf32>
    %77 = tpu.matmul %76, %75, %cst_26 {dimension_numbers = #tpu.dot_dimension_numbers<[1], [0], [0], [1], [0, 0, 1, 1], [], []>} : vector<17x8xbf16>, vector<8x32xbf16>, vector<17x32xf32> -> vector<17x32xf32>
    %78 = arith.addf %55, %77 : vector<17x32xf32>
    %79 = vector.extract_strided_slice %31 {offsets = [0, 16], sizes = [17, 8], strides = [1, 1]} : vector<17x96xf32> to vector<17x8xf32>
    %80 = vector.extract_strided_slice %31 {offsets = [0, 48], sizes = [17, 8], strides = [1, 1]} : vector<17x96xf32> to vector<17x8xf32>
    %81 = vector.extract_strided_slice %31 {offsets = [0, 80], sizes = [17, 8], strides = [1, 1]} : vector<17x96xf32> to vector<17x8xf32>
    %82 = arith.truncf %79 : vector<17x8xf32> to vector<17x8xbf16>
    %83 = arith.truncf %80 : vector<17x8xf32> to vector<17x8xbf16>
    %cst_27 = arith.constant dense<0.000000e+00> : vector<17x17xf32>
    %84 = tpu.matmul %82, %83, %cst_27 {dimension_numbers = #tpu.dot_dimension_numbers<[1], [1], [0], [0], [0, 0, 1, 0], [], []>} : vector<17x8xbf16>, vector<17x8xbf16>, vector<17x17xf32> -> vector<17x17xf32>
    %cst_28 = arith.constant dense<0xFF800000> : vector<17xf32>
    %85 = vector.multi_reduction <maximumf>, %84, %cst_28 [1] : vector<17x17xf32> to vector<17xf32>
    %86 = vector.shape_cast %85 : vector<17xf32> to vector<17x1xf32>
    %87 = vector.broadcast %86 : vector<17x1xf32> to vector<17x17xf32>
    %88 = arith.subf %84, %87 : vector<17x17xf32>
    %89 = math.exp %88 : vector<17x17xf32>
    %cst_29 = arith.constant dense<0.000000e+00> : vector<17xf32>
    %90 = vector.multi_reduction <add>, %89, %cst_29 [1] : vector<17x17xf32> to vector<17xf32>
    %91 = vector.shape_cast %90 : vector<17xf32> to vector<17x1xf32>
    %92 = tpu.reciprocal %91 {approx = true} : vector<17x1xf32> -> vector<17x1xf32>
    %93 = vector.broadcast %92 : vector<17x1xf32> to vector<17x17xf32>
    %94 = arith.mulf %89, %93 : vector<17x17xf32>
    %95 = arith.truncf %94 : vector<17x17xf32> to vector<17x17xbf16>
    %96 = arith.truncf %81 : vector<17x8xf32> to vector<17x8xbf16>
    %cst_30 = arith.constant dense<0.000000e+00> : vector<17x8xf32>
    %97 = tpu.matmul %95, %96, %cst_30 {dimension_numbers = #tpu.dot_dimension_numbers<[1], [0], [0], [1], [0, 0, 1, 1], [], []>} : vector<17x17xbf16>, vector<17x8xbf16>, vector<17x8xf32> -> vector<17x8xf32>
    %98 = vector.extract_strided_slice %30 {offsets = [16, 0], sizes = [8, 32], strides = [1, 1]} : vector<32x32xbf16> to vector<8x32xbf16>
    %99 = arith.truncf %97 : vector<17x8xf32> to vector<17x8xbf16>
    %cst_31 = arith.constant dense<0.000000e+00> : vector<17x32xf32>
    %100 = tpu.matmul %99, %98, %cst_31 {dimension_numbers = #tpu.dot_dimension_numbers<[1], [0], [0], [1], [0, 0, 1, 1], [], []>} : vector<17x8xbf16>, vector<8x32xbf16>, vector<17x32xf32> -> vector<17x32xf32>
    %101 = arith.addf %78, %100 : vector<17x32xf32>
    %102 = vector.extract_strided_slice %31 {offsets = [0, 24], sizes = [17, 8], strides = [1, 1]} : vector<17x96xf32> to vector<17x8xf32>
    %103 = vector.extract_strided_slice %31 {offsets = [0, 56], sizes = [17, 8], strides = [1, 1]} : vector<17x96xf32> to vector<17x8xf32>
    %104 = vector.extract_strided_slice %31 {offsets = [0, 88], sizes = [17, 8], strides = [1, 1]} : vector<17x96xf32> to vector<17x8xf32>
    %105 = arith.truncf %102 : vector<17x8xf32> to vector<17x8xbf16>
    %106 = arith.truncf %103 : vector<17x8xf32> to vector<17x8xbf16>
    %cst_32 = arith.constant dense<0.000000e+00> : vector<17x17xf32>
    %107 = tpu.matmul %105, %106, %cst_32 {dimension_numbers = #tpu.dot_dimension_numbers<[1], [1], [0], [0], [0, 0, 1, 0], [], []>} : vector<17x8xbf16>, vector<17x8xbf16>, vector<17x17xf32> -> vector<17x17xf32>
    %cst_33 = arith.constant dense<0xFF800000> : vector<17xf32>
    %108 = vector.multi_reduction <maximumf>, %107, %cst_33 [1] : vector<17x17xf32> to vector<17xf32>
    %109 = vector.shape_cast %108 : vector<17xf32> to vector<17x1xf32>
    %110 = vector.broadcast %109 : vector<17x1xf32> to vector<17x17xf32>
    %111 = arith.subf %107, %110 : vector<17x17xf32>
    %112 = math.exp %111 : vector<17x17xf32>
    %cst_34 = arith.constant dense<0.000000e+00> : vector<17xf32>
    %113 = vector.multi_reduction <add>, %112, %cst_34 [1] : vector<17x17xf32> to vector<17xf32>
    %114 = vector.shape_cast %113 : vector<17xf32> to vector<17x1xf32>
    %115 = tpu.reciprocal %114 {approx = true} : vector<17x1xf32> -> vector<17x1xf32>
    %116 = vector.broadcast %115 : vector<17x1xf32> to vector<17x17xf32>
    %117 = arith.mulf %112, %116 : vector<17x17xf32>
    %118 = arith.truncf %117 : vector<17x17xf32> to vector<17x17xbf16>
    %119 = arith.truncf %104 : vector<17x8xf32> to vector<17x8xbf16>
    %cst_35 = arith.constant dense<0.000000e+00> : vector<17x8xf32>
    %120 = tpu.matmul %118, %119, %cst_35 {dimension_numbers = #tpu.dot_dimension_numbers<[1], [0], [0], [1], [0, 0, 1, 1], [], []>} : vector<17x17xbf16>, vector<17x8xbf16>, vector<17x8xf32> -> vector<17x8xf32>
    %121 = vector.extract_strided_slice %30 {offsets = [24, 0], sizes = [8, 32], strides = [1, 1]} : vector<32x32xbf16> to vector<8x32xbf16>
    %122 = arith.truncf %120 : vector<17x8xf32> to vector<17x8xbf16>
    %cst_36 = arith.constant dense<0.000000e+00> : vector<17x32xf32>
    %123 = tpu.matmul %122, %121, %cst_36 {dimension_numbers = #tpu.dot_dimension_numbers<[1], [0], [0], [1], [0, 0, 1, 1], [], []>} : vector<17x8xbf16>, vector<8x32xbf16>, vector<17x32xf32> -> vector<17x32xf32>
    %124 = arith.addf %101, %123 : vector<17x32xf32>
    %125 = vector.extract_strided_slice %29 {offsets = [17, 0], sizes = [17, 96], strides = [1, 1]} : vector<34x96xf32> to vector<17x96xf32>
    %cst_37 = arith.constant 0.000000e+00 : f32
    %126 = vector.broadcast %cst_37 : f32 to vector<17x32xf32>
    %127 = vector.extract_strided_slice %125 {offsets = [0, 0], sizes = [17, 8], strides = [1, 1]} : vector<17x96xf32> to vector<17x8xf32>
    %128 = vector.extract_strided_slice %125 {offsets = [0, 32], sizes = [17, 8], strides = [1, 1]} : vector<17x96xf32> to vector<17x8xf32>
    %129 = vector.extract_strided_slice %125 {offsets = [0, 64], sizes = [17, 8], strides = [1, 1]} : vector<17x96xf32> to vector<17x8xf32>
    %130 = arith.truncf %127 : vector<17x8xf32> to vector<17x8xbf16>
    %131 = arith.truncf %128 : vector<17x8xf32> to vector<17x8xbf16>
    %cst_38 = arith.constant dense<0.000000e+00> : vector<17x17xf32>
    %132 = tpu.matmul %130, %131, %cst_38 {dimension_numbers = #tpu.dot_dimension_numbers<[1], [1], [0], [0], [0, 0, 1, 0], [], []>} : vector<17x8xbf16>, vector<17x8xbf16>, vector<17x17xf32> -> vector<17x17xf32>
    %cst_39 = arith.constant dense<0xFF800000> : vector<17xf32>
    %133 = vector.multi_reduction <maximumf>, %132, %cst_39 [1] : vector<17x17xf32> to vector<17xf32>
    %134 = vector.shape_cast %133 : vector<17xf32> to vector<17x1xf32>
    %135 = vector.broadcast %134 : vector<17x1xf32> to vector<17x17xf32>
    %136 = arith.subf %132, %135 : vector<17x17xf32>
    %137 = math.exp %136 : vector<17x17xf32>
    %cst_40 = arith.constant dense<0.000000e+00> : vector<17xf32>
    %138 = vector.multi_reduction <add>, %137, %cst_40 [1] : vector<17x17xf32> to vector<17xf32>
    %139 = vector.shape_cast %138 : vector<17xf32> to vector<17x1xf32>
    %140 = tpu.reciprocal %139 {approx = true} : vector<17x1xf32> -> vector<17x1xf32>
    %141 = vector.broadcast %140 : vector<17x1xf32> to vector<17x17xf32>
    %142 = arith.mulf %137, %141 : vector<17x17xf32>
    %143 = arith.truncf %142 : vector<17x17xf32> to vector<17x17xbf16>
    %144 = arith.truncf %129 : vector<17x8xf32> to vector<17x8xbf16>
    %cst_41 = arith.constant dense<0.000000e+00> : vector<17x8xf32>
    %145 = tpu.matmul %143, %144, %cst_41 {dimension_numbers = #tpu.dot_dimension_numbers<[1], [0], [0], [1], [0, 0, 1, 1], [], []>} : vector<17x17xbf16>, vector<17x8xbf16>, vector<17x8xf32> -> vector<17x8xf32>
    %146 = vector.extract_strided_slice %30 {offsets = [0, 0], sizes = [8, 32], strides = [1, 1]} : vector<32x32xbf16> to vector<8x32xbf16>
    %147 = arith.truncf %145 : vector<17x8xf32> to vector<17x8xbf16>
    %cst_42 = arith.constant dense<0.000000e+00> : vector<17x32xf32>
    %148 = tpu.matmul %147, %146, %cst_42 {dimension_numbers = #tpu.dot_dimension_numbers<[1], [0], [0], [1], [0, 0, 1, 1], [], []>} : vector<17x8xbf16>, vector<8x32xbf16>, vector<17x32xf32> -> vector<17x32xf32>
    %149 = arith.addf %126, %148 : vector<17x32xf32>
    %150 = vector.extract_strided_slice %125 {offsets = [0, 8], sizes = [17, 8], strides = [1, 1]} : vector<17x96xf32> to vector<17x8xf32>
    %151 = vector.extract_strided_slice %125 {offsets = [0, 40], sizes = [17, 8], strides = [1, 1]} : vector<17x96xf32> to vector<17x8xf32>
    %152 = vector.extract_strided_slice %125 {offsets = [0, 72], sizes = [17, 8], strides = [1, 1]} : vector<17x96xf32> to vector<17x8xf32>
    %153 = arith.truncf %150 : vector<17x8xf32> to vector<17x8xbf16>
    %154 = arith.truncf %151 : vector<17x8xf32> to vector<17x8xbf16>
    %cst_43 = arith.constant dense<0.000000e+00> : vector<17x17xf32>
    %155 = tpu.matmul %153, %154, %cst_43 {dimension_numbers = #tpu.dot_dimension_numbers<[1], [1], [0], [0], [0, 0, 1, 0], [], []>} : vector<17x8xbf16>, vector<17x8xbf16>, vector<17x17xf32> -> vector<17x17xf32>
    %cst_44 = arith.constant dense<0xFF800000> : vector<17xf32>
    %156 = vector.multi_reduction <maximumf>, %155, %cst_44 [1] : vector<17x17xf32> to vector<17xf32>
    %157 = vector.shape_cast %156 : vector<17xf32> to vector<17x1xf32>
    %158 = vector.broadcast %157 : vector<17x1xf32> to vector<17x17xf32>
    %159 = arith.subf %155, %158 : vector<17x17xf32>
    %160 = math.exp %159 : vector<17x17xf32>
    %cst_45 = arith.constant dense<0.000000e+00> : vector<17xf32>
    %161 = vector.multi_reduction <add>, %160, %cst_45 [1] : vector<17x17xf32> to vector<17xf32>
    %162 = vector.shape_cast %161 : vector<17xf32> to vector<17x1xf32>
    %163 = tpu.reciprocal %162 {approx = true} : vector<17x1xf32> -> vector<17x1xf32>
    %164 = vector.broadcast %163 : vector<17x1xf32> to vector<17x17xf32>
    %165 = arith.mulf %160, %164 : vector<17x17xf32>
    %166 = arith.truncf %165 : vector<17x17xf32> to vector<17x17xbf16>
    %167 = arith.truncf %152 : vector<17x8xf32> to vector<17x8xbf16>
    %cst_46 = arith.constant dense<0.000000e+00> : vector<17x8xf32>
    %168 = tpu.matmul %166, %167, %cst_46 {dimension_numbers = #tpu.dot_dimension_numbers<[1], [0], [0], [1], [0, 0, 1, 1], [], []>} : vector<17x17xbf16>, vector<17x8xbf16>, vector<17x8xf32> -> vector<17x8xf32>
    %169 = vector.extract_strided_slice %30 {offsets = [8, 0], sizes = [8, 32], strides = [1, 1]} : vector<32x32xbf16> to vector<8x32xbf16>
    %170 = arith.truncf %168 : vector<17x8xf32> to vector<17x8xbf16>
    %cst_47 = arith.constant dense<0.000000e+00> : vector<17x32xf32>
    %171 = tpu.matmul %170, %169, %cst_47 {dimension_numbers = #tpu.dot_dimension_numbers<[1], [0], [0], [1], [0, 0, 1, 1], [], []>} : vector<17x8xbf16>, vector<8x32xbf16>, vector<17x32xf32> -> vector<17x32xf32>
    %172 = arith.addf %149, %171 : vector<17x32xf32>
    %173 = vector.extract_strided_slice %125 {offsets = [0, 16], sizes = [17, 8], strides = [1, 1]} : vector<17x96xf32> to vector<17x8xf32>
    %174 = vector.extract_strided_slice %125 {offsets = [0, 48], sizes = [17, 8], strides = [1, 1]} : vector<17x96xf32> to vector<17x8xf32>
    %175 = vector.extract_strided_slice %125 {offsets = [0, 80], sizes = [17, 8], strides = [1, 1]} : vector<17x96xf32> to vector<17x8xf32>
    %176 = arith.truncf %173 : vector<17x8xf32> to vector<17x8xbf16>
    %177 = arith.truncf %174 : vector<17x8xf32> to vector<17x8xbf16>
    %cst_48 = arith.constant dense<0.000000e+00> : vector<17x17xf32>
    %178 = tpu.matmul %176, %177, %cst_48 {dimension_numbers = #tpu.dot_dimension_numbers<[1], [1], [0], [0], [0, 0, 1, 0], [], []>} : vector<17x8xbf16>, vector<17x8xbf16>, vector<17x17xf32> -> vector<17x17xf32>
    %cst_49 = arith.constant dense<0xFF800000> : vector<17xf32>
    %179 = vector.multi_reduction <maximumf>, %178, %cst_49 [1] : vector<17x17xf32> to vector<17xf32>
    %180 = vector.shape_cast %179 : vector<17xf32> to vector<17x1xf32>
    %181 = vector.broadcast %180 : vector<17x1xf32> to vector<17x17xf32>
    %182 = arith.subf %178, %181 : vector<17x17xf32>
    %183 = math.exp %182 : vector<17x17xf32>
    %cst_50 = arith.constant dense<0.000000e+00> : vector<17xf32>
    %184 = vector.multi_reduction <add>, %183, %cst_50 [1] : vector<17x17xf32> to vector<17xf32>
    %185 = vector.shape_cast %184 : vector<17xf32> to vector<17x1xf32>
    %186 = tpu.reciprocal %185 {approx = true} : vector<17x1xf32> -> vector<17x1xf32>
    %187 = vector.broadcast %186 : vector<17x1xf32> to vector<17x17xf32>
    %188 = arith.mulf %183, %187 : vector<17x17xf32>
    %189 = arith.truncf %188 : vector<17x17xf32> to vector<17x17xbf16>
    %190 = arith.truncf %175 : vector<17x8xf32> to vector<17x8xbf16>
    %cst_51 = arith.constant dense<0.000000e+00> : vector<17x8xf32>
    %191 = tpu.matmul %189, %190, %cst_51 {dimension_numbers = #tpu.dot_dimension_numbers<[1], [0], [0], [1], [0, 0, 1, 1], [], []>} : vector<17x17xbf16>, vector<17x8xbf16>, vector<17x8xf32> -> vector<17x8xf32>
    %192 = vector.extract_strided_slice %30 {offsets = [16, 0], sizes = [8, 32], strides = [1, 1]} : vector<32x32xbf16> to vector<8x32xbf16>
    %193 = arith.truncf %191 : vector<17x8xf32> to vector<17x8xbf16>
    %cst_52 = arith.constant dense<0.000000e+00> : vector<17x32xf32>
    %194 = tpu.matmul %193, %192, %cst_52 {dimension_numbers = #tpu.dot_dimension_numbers<[1], [0], [0], [1], [0, 0, 1, 1], [], []>} : vector<17x8xbf16>, vector<8x32xbf16>, vector<17x32xf32> -> vector<17x32xf32>
    %195 = arith.addf %172, %194 : vector<17x32xf32>
    %196 = vector.extract_strided_slice %125 {offsets = [0, 24], sizes = [17, 8], strides = [1, 1]} : vector<17x96xf32> to vector<17x8xf32>
    %197 = vector.extract_strided_slice %125 {offsets = [0, 56], sizes = [17, 8], strides = [1, 1]} : vector<17x96xf32> to vector<17x8xf32>
    %198 = vector.extract_strided_slice %125 {offsets = [0, 88], sizes = [17, 8], strides = [1, 1]} : vector<17x96xf32> to vector<17x8xf32>
    %199 = arith.truncf %196 : vector<17x8xf32> to vector<17x8xbf16>
    %200 = arith.truncf %197 : vector<17x8xf32> to vector<17x8xbf16>
    %cst_53 = arith.constant dense<0.000000e+00> : vector<17x17xf32>
    %201 = tpu.matmul %199, %200, %cst_53 {dimension_numbers = #tpu.dot_dimension_numbers<[1], [1], [0], [0], [0, 0, 1, 0], [], []>} : vector<17x8xbf16>, vector<17x8xbf16>, vector<17x17xf32> -> vector<17x17xf32>
    %cst_54 = arith.constant dense<0xFF800000> : vector<17xf32>
    %202 = vector.multi_reduction <maximumf>, %201, %cst_54 [1] : vector<17x17xf32> to vector<17xf32>
    %203 = vector.shape_cast %202 : vector<17xf32> to vector<17x1xf32>
    %204 = vector.broadcast %203 : vector<17x1xf32> to vector<17x17xf32>
    %205 = arith.subf %201, %204 : vector<17x17xf32>
    %206 = math.exp %205 : vector<17x17xf32>
    %cst_55 = arith.constant dense<0.000000e+00> : vector<17xf32>
    %207 = vector.multi_reduction <add>, %206, %cst_55 [1] : vector<17x17xf32> to vector<17xf32>
    %208 = vector.shape_cast %207 : vector<17xf32> to vector<17x1xf32>
    %209 = tpu.reciprocal %208 {approx = true} : vector<17x1xf32> -> vector<17x1xf32>
    %210 = vector.broadcast %209 : vector<17x1xf32> to vector<17x17xf32>
    %211 = arith.mulf %206, %210 : vector<17x17xf32>
    %212 = arith.truncf %211 : vector<17x17xf32> to vector<17x17xbf16>
    %213 = arith.truncf %198 : vector<17x8xf32> to vector<17x8xbf16>
    %cst_56 = arith.constant dense<0.000000e+00> : vector<17x8xf32>
    %214 = tpu.matmul %212, %213, %cst_56 {dimension_numbers = #tpu.dot_dimension_numbers<[1], [0], [0], [1], [0, 0, 1, 1], [], []>} : vector<17x17xbf16>, vector<17x8xbf16>, vector<17x8xf32> -> vector<17x8xf32>
    %215 = vector.extract_strided_slice %30 {offsets = [24, 0], sizes = [8, 32], strides = [1, 1]} : vector<32x32xbf16> to vector<8x32xbf16>
    %216 = arith.truncf %214 : vector<17x8xf32> to vector<17x8xbf16>
    %cst_57 = arith.constant dense<0.000000e+00> : vector<17x32xf32>
    %217 = tpu.matmul %216, %215, %cst_57 {dimension_numbers = #tpu.dot_dimension_numbers<[1], [0], [0], [1], [0, 0, 1, 1], [], []>} : vector<17x8xbf16>, vector<8x32xbf16>, vector<17x32xf32> -> vector<17x32xf32>
    %218 = arith.addf %195, %217 : vector<17x32xf32>
    %219 = tpu.concatenate %124, %218 in 0 : vector<17x32xf32>, vector<17x32xf32> -> vector<34x32xf32>
    %c0_58 = arith.constant 0 : index
    %c0_59 = arith.constant 0 : index
    %220 = vector.load %arg7[%c0_58, %c0_59] : memref<1x32xf32, #tpu.memory_space<vmem>>, vector<1x32xf32>
    %221 = vector.broadcast %220 : vector<1x32xf32> to vector<34x32xf32>
    %222 = arith.addf %219, %221 : vector<34x32xf32>
    %c0_60 = arith.constant 0 : index
    %c0_61 = arith.constant 0 : index
    %223 = vector.load %arg8[%c0_60, %c0_61] : memref<1x32xf32, #tpu.memory_space<vmem>>, vector<1x32xf32>
    %224 = vector.broadcast %223 : vector<1x32xf32> to vector<34x32xf32>
    %225 = arith.mulf %222, %224 : vector<34x32xf32>
    %226 = arith.addf %1, %225 : vector<34x32xf32>
    %c0_62 = arith.constant 0 : index
    %c0_63 = arith.constant 0 : index
    %227 = vector.load %arg9[%c0_62, %c0_63] : memref<1x32xf32, #tpu.memory_space<vmem>>, vector<1x32xf32>
    %c0_64 = arith.constant 0 : index
    %c0_65 = arith.constant 0 : index
    %228 = vector.load %arg10[%c0_64, %c0_65] : memref<1x32xf32, #tpu.memory_space<vmem>>, vector<1x32xf32>
    %cst_66 = arith.constant dense<0.000000e+00> : vector<34xf32>
    %229 = vector.multi_reduction <add>, %226, %cst_66 [1] : vector<34x32xf32> to vector<34xf32>
    %230 = vector.shape_cast %229 : vector<34xf32> to vector<34x1xf32>
    %cst_67 = arith.constant 3.200000e+01 : f32
    %231 = vector.broadcast %cst_67 : f32 to vector<34x1xf32>
    %232 = arith.divf %230, %231 : vector<34x1xf32>
    %233 = vector.broadcast %232 : vector<34x1xf32> to vector<34x32xf32>
    %234 = arith.subf %226, %233 : vector<34x32xf32>
    %235 = arith.mulf %234, %234 : vector<34x32xf32>
    %cst_68 = arith.constant dense<0.000000e+00> : vector<34xf32>
    %236 = vector.multi_reduction <add>, %235, %cst_68 [1] : vector<34x32xf32> to vector<34xf32>
    %237 = vector.shape_cast %236 : vector<34xf32> to vector<34x1xf32>
    %cst_69 = arith.constant 3.200000e+01 : f32
    %238 = vector.broadcast %cst_69 : f32 to vector<34x1xf32>
    %239 = arith.divf %237, %238 : vector<34x1xf32>
    %cst_70 = arith.constant 9.99999974E-6 : f32
    %240 = vector.broadcast %cst_70 : f32 to vector<34x1xf32>
    %241 = arith.addf %239, %240 : vector<34x1xf32>
    %242 = math.rsqrt %241 : vector<34x1xf32>
    %243 = vector.broadcast %242 : vector<34x1xf32> to vector<34x32xf32>
    %244 = arith.mulf %234, %243 : vector<34x32xf32>
    %245 = vector.broadcast %227 : vector<1x32xf32> to vector<34x32xf32>
    %246 = arith.mulf %244, %245 : vector<34x32xf32>
    %247 = vector.broadcast %228 : vector<1x32xf32> to vector<34x32xf32>
    %248 = arith.addf %246, %247 : vector<34x32xf32>
    %c0_71 = arith.constant 0 : index
    %c0_72 = arith.constant 0 : index
    %249 = vector.load %arg11[%c0_71, %c0_72] : memref<32x128xbf16, #tpu.memory_space<vmem>>, vector<32x128xbf16>
    %250 = arith.truncf %248 : vector<34x32xf32> to vector<34x32xbf16>
    %cst_73 = arith.constant dense<0.000000e+00> : vector<34x128xf32>
    %251 = tpu.matmul %250, %249, %cst_73 {dimension_numbers = #tpu.dot_dimension_numbers<[1], [0], [0], [1], [0, 0, 1, 1], [], []>} : vector<34x32xbf16>, vector<32x128xbf16>, vector<34x128xf32> -> vector<34x128xf32>
    %c0_74 = arith.constant 0 : index
    %c0_75 = arith.constant 0 : index
    %252 = vector.load %arg12[%c0_74, %c0_75] : memref<1x128xf32, #tpu.memory_space<vmem>>, vector<1x128xf32>
    %253 = vector.broadcast %252 : vector<1x128xf32> to vector<34x128xf32>
    %254 = arith.addf %251, %253 : vector<34x128xf32>
    %cst_76 = arith.constant 5.000000e-01 : f32
    %255 = vector.broadcast %cst_76 : f32 to vector<34x128xf32>
    %256 = arith.mulf %255, %254 : vector<34x128xf32>
    %cst_77 = arith.constant 4.471500e-02 : f32
    %257 = vector.broadcast %cst_77 : f32 to vector<34x128xf32>
    %258 = arith.mulf %257, %254 : vector<34x128xf32>
    %259 = arith.mulf %258, %254 : vector<34x128xf32>
    %260 = arith.mulf %259, %254 : vector<34x128xf32>
    %261 = arith.addf %254, %260 : vector<34x128xf32>
    %cst_78 = arith.constant 0.797884583 : f32
    %262 = vector.broadcast %cst_78 : f32 to vector<34x128xf32>
    %263 = arith.mulf %262, %261 : vector<34x128xf32>
    %264 = math.tanh %263 : vector<34x128xf32>
    %cst_79 = arith.constant 1.000000e+00 : f32
    %265 = vector.broadcast %cst_79 : f32 to vector<34x128xf32>
    %266 = arith.addf %265, %264 : vector<34x128xf32>
    %267 = arith.mulf %256, %266 : vector<34x128xf32>
    %c0_80 = arith.constant 0 : index
    %c0_81 = arith.constant 0 : index
    %268 = vector.load %arg13[%c0_80, %c0_81] : memref<128x32xbf16, #tpu.memory_space<vmem>>, vector<128x32xbf16>
    %269 = arith.truncf %267 : vector<34x128xf32> to vector<34x128xbf16>
    %cst_82 = arith.constant dense<0.000000e+00> : vector<34x32xf32>
    %270 = tpu.matmul %269, %268, %cst_82 {dimension_numbers = #tpu.dot_dimension_numbers<[1], [0], [0], [1], [0, 0, 1, 1], [], []>} : vector<34x128xbf16>, vector<128x32xbf16>, vector<34x32xf32> -> vector<34x32xf32>
    %c0_83 = arith.constant 0 : index
    %c0_84 = arith.constant 0 : index
    %271 = vector.load %arg14[%c0_83, %c0_84] : memref<1x32xf32, #tpu.memory_space<vmem>>, vector<1x32xf32>
    %272 = vector.broadcast %271 : vector<1x32xf32> to vector<34x32xf32>
    %273 = arith.addf %270, %272 : vector<34x32xf32>
    %c0_85 = arith.constant 0 : index
    %c0_86 = arith.constant 0 : index
    %274 = vector.load %arg15[%c0_85, %c0_86] : memref<1x32xf32, #tpu.memory_space<vmem>>, vector<1x32xf32>
    %275 = vector.broadcast %274 : vector<1x32xf32> to vector<34x32xf32>
    %276 = arith.mulf %273, %275 : vector<34x32xf32>
    %277 = arith.addf %226, %276 : vector<34x32xf32>
    %278 = arith.truncf %277 : vector<34x32xf32> to vector<34x32xbf16>
    %c0_87 = arith.constant 0 : index
    %c0_88 = arith.constant 0 : index
    %279 = vector.load %arg16[%c0_87, %c0_88] : memref<34x32xbf16, #tpu.memory_space<vmem>>, vector<34x32xbf16>
    tpu.vector_store %arg16[%c0_87, %c0_88], %278 {strides = array<i32>} : memref<34x32xbf16, #tpu.memory_space<vmem>>, vector<34x32xbf16>,
    return
  }
  func.func @transform_0(%arg0: i32) -> (i32, i32) {
    %c0_i32 = arith.constant 0 : i32
    %c0_i32_0 = arith.constant 0 : i32
    return %arg0, %c0_i32 : i32, i32
  }
  func.func @transform_1(%arg0: i32) -> (i32, i32) {
    %c0_i32 = arith.constant 0 : i32
    %c0_i32_0 = arith.constant 0 : i32
    %c0_i32_1 = arith.constant 0 : i32
    return %c0_i32, %c0_i32_0 : i32, i32
  }
  func.func @transform_2(%arg0: i32) -> (i32, i32) {
    %c0_i32 = arith.constant 0 : i32
    %c0_i32_0 = arith.constant 0 : i32
    %c0_i32_1 = arith.constant 0 : i32
    return %c0_i32, %c0_i32_0 : i32, i32
  }
  func.func @transform_3(%arg0: i32) -> (i32, i32) {
    %c0_i32 = arith.constant 0 : i32
    %c0_i32_0 = arith.constant 0 : i32
    %c0_i32_1 = arith.constant 0 : i32
    return %c0_i32, %c0_i32_0 : i32, i32
  }
  func.func @transform_4(%arg0: i32) -> (i32, i32) {
    %c0_i32 = arith.constant 0 : i32
    %c0_i32_0 = arith.constant 0 : i32
    %c0_i32_1 = arith.constant 0 : i32
    return %c0_i32, %c0_i32_0 : i32, i32
  }
  func.func @transform_5(%arg0: i32) -> (i32, i32) {
    %c0_i32 = arith.constant 0 : i32
    %c0_i32_0 = arith.constant 0 : i32
    %c0_i32_1 = arith.constant 0 : i32
    return %c0_i32, %c0_i32_0 : i32, i32
  }
  func.func @transform_6(%arg0: i32) -> (i32, i32) {
    %c0_i32 = arith.constant 0 : i32
    %c0_i32_0 = arith.constant 0 : i32
    %c0_i32_1 = arith.constant 0 : i32
    return %c0_i32, %c0_i32_0 : i32, i32
  }
  func.func @transform_7(%arg0: i32) -> (i32, i32) {
    %c0_i32 = arith.constant 0 : i32
    %c0_i32_0 = arith.constant 0 : i32
    %c0_i32_1 = arith.constant 0 : i32
    return %c0_i32, %c0_i32_0 : i32, i32
  }
  func.func @transform_8(%arg0: i32) -> (i32, i32) {
    %c0_i32 = arith.constant 0 : i32
    %c0_i32_0 = arith.constant 0 : i32
    %c0_i32_1 = arith.constant 0 : i32
    return %c0_i32, %c0_i32_0 : i32, i32
  }
  func.func @transform_9(%arg0: i32) -> (i32, i32) {
    %c0_i32 = arith.constant 0 : i32
    %c0_i32_0 = arith.constant 0 : i32
    %c0_i32_1 = arith.constant 0 : i32
    return %c0_i32, %c0_i32_0 : i32, i32
  }
  func.func @transform_10(%arg0: i32) -> (i32, i32) {
    %c0_i32 = arith.constant 0 : i32
    %c0_i32_0 = arith.constant 0 : i32
    %c0_i32_1 = arith.constant 0 : i32
    return %c0_i32, %c0_i32_0 : i32, i32
  }
  func.func @transform_11(%arg0: i32) -> (i32, i32) {
    %c0_i32 = arith.constant 0 : i32
    %c0_i32_0 = arith.constant 0 : i32
    %c0_i32_1 = arith.constant 0 : i32
    return %c0_i32, %c0_i32_0 : i32, i32
  }
  func.func @transform_12(%arg0: i32) -> (i32, i32) {
    %c0_i32 = arith.constant 0 : i32
    %c0_i32_0 = arith.constant 0 : i32
    %c0_i32_1 = arith.constant 0 : i32
    return %c0_i32, %c0_i32_0 : i32, i32
  }
  func.func @transform_13(%arg0: i32) -> (i32, i32) {
    %c0_i32 = arith.constant 0 : i32
    %c0_i32_0 = arith.constant 0 : i32
    %c0_i32_1 = arith.constant 0 : i32
    return %c0_i32, %c0_i32_0 : i32, i32
  }
  func.func @transform_14(%arg0: i32) -> (i32, i32) {
    %c0_i32 = arith.constant 0 : i32
    %c0_i32_0 = arith.constant 0 : i32
    %c0_i32_1 = arith.constant 0 : i32
    return %c0_i32, %c0_i32_0 : i32, i32
  }
  func.func @transform_15(%arg0: i32) -> (i32, i32) {
    %c0_i32 = arith.constant 0 : i32
    %c0_i32_0 = arith.constant 0 : i32
    return %arg0, %c0_i32 : i32, i32
  }
}

module attributes {stable_mosaic.version = 11 : i64} {
  func.func @_loss_kernel(%arg0: i32, %arg1: memref<1x16x48xf32, #tpu.memory_space<vmem>>, %arg2: memref<1x16x48xf32, #tpu.memory_space<vmem>>, %arg3: memref<1x16x1xf32, #tpu.memory_space<vmem>>, %arg4: memref<1x1x1xf32, #tpu.memory_space<vmem>>, %arg5: memref<1x1x1xf32, #tpu.memory_space<vmem>>) attributes {dimension_semantics = [#tpu.dimension_semantics<parallel>], iteration_bounds = array<i64: 2>, scalar_prefetch = 0 : i64, scratch_operands = 0 : i64, tpu.core_type = #tpu.core_type<tc>, window_params = [{transform_indices = @transform_0, window_bounds = array<i64: 1, 16, 48>}, {transform_indices = @transform_1, window_bounds = array<i64: 1, 16, 48>}, {transform_indices = @transform_2, window_bounds = array<i64: 1, 16, 1>}, {transform_indices = @transform_3, window_bounds = array<i64: 1, 1, 1>}, {transform_indices = @transform_4, window_bounds = array<i64: 1, 1, 1>}]} {
    %c0 = arith.constant 0 : index
    %c0_0 = arith.constant 0 : index
    %c0_1 = arith.constant 0 : index
    %0 = vector.load %arg1[%c0, %c0_0, %c0_1] : memref<1x16x48xf32, #tpu.memory_space<vmem>>, vector<1x16x48xf32>
    %1 = vector.shape_cast %0 : vector<1x16x48xf32> to vector<16x48xf32>
    %c0_2 = arith.constant 0 : index
    %c0_3 = arith.constant 0 : index
    %c0_4 = arith.constant 0 : index
    %2 = vector.load %arg2[%c0_2, %c0_3, %c0_4] : memref<1x16x48xf32, #tpu.memory_space<vmem>>, vector<1x16x48xf32>
    %3 = vector.shape_cast %2 : vector<1x16x48xf32> to vector<16x48xf32>
    %4 = arith.subf %1, %3 : vector<16x48xf32>
    %5 = arith.mulf %4, %4 : vector<16x48xf32>
    %c0_5 = arith.constant 0 : index
    %c0_6 = arith.constant 0 : index
    %c0_7 = arith.constant 0 : index
    %6 = vector.load %arg3[%c0_5, %c0_6, %c0_7] : memref<1x16x1xf32, #tpu.memory_space<vmem>>, vector<1x16x1xf32>
    %7 = vector.shape_cast %6 : vector<1x16x1xf32> to vector<16x1xf32>
    %8 = vector.broadcast %7 : vector<16x1xf32> to vector<16x48xf32>
    %9 = arith.mulf %5, %8 : vector<16x48xf32>
    %10 = vector.shape_cast %9 : vector<16x48xf32> to vector<1x16x48xf32>
    %cst = arith.constant dense<0.000000e+00> : vector<1xf32>
    %11 = vector.multi_reduction <add>, %10, %cst [1, 2] : vector<1x16x48xf32> to vector<1xf32>
    %12 = vector.shape_cast %11 : vector<1xf32> to vector<1x1x1xf32>
    %13 = vector.extract %12[0, 0, 0] : f32 from vector<1x1x1xf32>
    %14 = vector.broadcast %13 : f32 to vector<1x1xf32>
    %cst_8 = arith.constant 4.800000e+01 : f32
    %15 = vector.broadcast %cst_8 : f32 to vector<1x1xf32>
    %16 = arith.divf %14, %15 : vector<1x1xf32>
    %c0_9 = arith.constant 0 : index
    %c0_10 = arith.constant 0 : index
    %c0_11 = arith.constant 0 : index
    %17 = vector.load %arg4[%c0_9, %c0_10, %c0_11] : memref<1x1x1xf32, #tpu.memory_space<vmem>>, vector<1x1x1xf32>
    %18 = vector.shape_cast %17 : vector<1x1x1xf32> to vector<1x1xf32>
    %19 = vector.shape_cast %16 : vector<1x1xf32> to vector<1x1x1xf32>
    tpu.vector_store %arg4[%c0_9, %c0_10, %c0_11], %19 {strides = array<i32>} : memref<1x1x1xf32, #tpu.memory_space<vmem>>, vector<1x1x1xf32>,
    %20 = vector.shape_cast %7 : vector<16x1xf32> to vector<1x16x1xf32>
    %cst_12 = arith.constant dense<0.000000e+00> : vector<1xf32>
    %21 = vector.multi_reduction <add>, %20, %cst_12 [1, 2] : vector<1x16x1xf32> to vector<1xf32>
    %22 = vector.shape_cast %21 : vector<1xf32> to vector<1x1x1xf32>
    %23 = vector.extract %22[0, 0, 0] : f32 from vector<1x1x1xf32>
    %24 = vector.broadcast %23 : f32 to vector<1x1xf32>
    %c0_13 = arith.constant 0 : index
    %c0_14 = arith.constant 0 : index
    %c0_15 = arith.constant 0 : index
    %25 = vector.load %arg5[%c0_13, %c0_14, %c0_15] : memref<1x1x1xf32, #tpu.memory_space<vmem>>, vector<1x1x1xf32>
    %26 = vector.shape_cast %25 : vector<1x1x1xf32> to vector<1x1xf32>
    %27 = vector.shape_cast %24 : vector<1x1xf32> to vector<1x1x1xf32>
    tpu.vector_store %arg5[%c0_13, %c0_14, %c0_15], %27 {strides = array<i32>} : memref<1x1x1xf32, #tpu.memory_space<vmem>>, vector<1x1x1xf32>,
    return
  }
  func.func @transform_0(%arg0: i32) -> (i32, i32, i32) {
    %c0_i32 = arith.constant 0 : i32
    %c0_i32_0 = arith.constant 0 : i32
    %c0_i32_1 = arith.constant 0 : i32
    return %arg0, %c0_i32, %c0_i32_0 : i32, i32, i32
  }
  func.func @transform_1(%arg0: i32) -> (i32, i32, i32) {
    %c0_i32 = arith.constant 0 : i32
    %c0_i32_0 = arith.constant 0 : i32
    %c0_i32_1 = arith.constant 0 : i32
    return %arg0, %c0_i32, %c0_i32_0 : i32, i32, i32
  }
  func.func @transform_2(%arg0: i32) -> (i32, i32, i32) {
    %c0_i32 = arith.constant 0 : i32
    %c0_i32_0 = arith.constant 0 : i32
    %c0_i32_1 = arith.constant 0 : i32
    return %arg0, %c0_i32, %c0_i32_0 : i32, i32, i32
  }
  func.func @transform_3(%arg0: i32) -> (i32, i32, i32) {
    %c0_i32 = arith.constant 0 : i32
    %c0_i32_0 = arith.constant 0 : i32
    %c0_i32_1 = arith.constant 0 : i32
    return %arg0, %c0_i32, %c0_i32_0 : i32, i32, i32
  }
  func.func @transform_4(%arg0: i32) -> (i32, i32, i32) {
    %c0_i32 = arith.constant 0 : i32
    %c0_i32_0 = arith.constant 0 : i32
    %c0_i32_1 = arith.constant 0 : i32
    return %arg0, %c0_i32, %c0_i32_0 : i32, i32, i32
  }
}

</mosaic_0001>

<bundles_post_ra>
// kernel: _lambda_.8
= control target key start
LH: loop header
LB: loop body
LE: loop exit
PB: predicated region body
PF: predicated region fallthrough
CT: control target
= control target key end

     0   :  { %vm52_vm0 = vcmask 392192   ;;  %vm124_vm1 = vcmask 257024   ;;  %s221_s1 = inlined_call_operand.vmem [shape: bf16[48,32], index: 1, kind: input, shape index: {}]   ;;  %s222_s0 = inlined_call_operand.vmem [shape: f32[32,48], index: 0, kind: input, shape index: {}]   ;;  %s223_s2 = inlined_call_operand.vmem [shape: f32[1,32], index: 2, kind: input, shape index: {}]   ;;  %s224_s3 = inlined_call_operand.vmem [shape: bf16[32,32], index: 3, kind: output, shape index: {}]  }
   0x1   :  { %v162_v0 = vld [vmem:[%s221_s1] sm:$0xff]   ;;  %v163_v1 = vld [vmem:[%s221_s1 + $0x8] sm:$0xff]   ;;  %v164_v4 = vld [vmem:[%s221_s1 + $0x10] sm:$0xff]  }
   0x2   :  { %152 = vmatprep.subr.bf16.mxu0 %v162_v0  ;;  %v15_v2 = vld [vmem:[%s222_s0] sm:$0xff]  ;;  %v16_v3 = vld [vmem:[%s222_s0 + $0x8] sm:$0xff]  ;;  %v17_v6 = vld [vmem:[%s222_s0 + $0x10] sm:$0xff] }
   0x3   :  { %153 = vmatpush3.bf16.msra.mxu0 %v162_v0  ;;  %v25_v5 = vpack.c.bf16 %v16_v3, %v15_v2  ;;  %v18_v7 = vld [vmem:[%s222_s0 + $0x18] sm:$0xff]  ;;  %v133_v9 = vld [vmem:[%s223_s2] ss:$0 sm:$0xff] }
   0x4   :  { %154 = vmatprep.subr.bf16.mxu0 %v163_v1  ;;  %v26_v8 = vpack.c.bf16 %v18_v7, %v17_v6 }
   0x5   :  { %158 = vmatprep.mubr.msk.bf16.mxu0 %vm52_vm0, %v25_v5 }
   0x7   :  { %155 = vmatpush3.bf16.msra.mxu0 %v163_v1 }
   0x8   :  { %156 = vmatprep.subr.bf16.mxu0 %v164_v4 }
   0xb   :  { %157 = vmatpush3.bf16.msra.mxu0 %v164_v4 }
   0xe   :  { %159 = vmatmul.mubr.msk.bf16.vlgmr.msra.gmra.mrb[0].mxu0 %vm52_vm0, %v26_v8 }
  0xe1   :  { %v160_v10 = vpop.f32.mrb[0].mxu0 }
  0xe2   :  { %v102_v11 = vadd.f32 %v160_v10, %v133_v9  ;;  %v93_v12 = vpop.f32.mrb[1].mxu0 }
  0xe3   :  { %v94_v13 = vadd.f32 %v133_v9, %v93_v12  ;;  %v161_v14 = vpop.f32.mrb[2].mxu0 }
  0xe4   :  { %v145_v15 = vpack.c.bf16 %v102_v11, %v102_v11  ;;  %v105_v16 = vadd.f32 %v161_v14, %v133_v9  ;;  %v96_v17 = vpop.f32.mrb[3].mxu0 }
  0xe5   :  { %v143_v18 = vpack.c.bf16 %v94_v13, %v94_v13  ;;  %v97_v19 = vadd.f32 %v133_v9, %v96_v17 }
  0xe6   :  { %127 = vst.msk [vmem:[%s224_s3 + $0x8] sm:$0xf] %vm124_vm1, %v145_v15  ;;  %v146_v20 = vpack.c.bf16 %v105_v16, %v105_v16 }
  0xe7   :  { %125 = vst.msk [vmem:[%s224_s3] sm:$0xf] %vm124_vm1, %v143_v18  ;;  %v144_v21 = vpack.c.bf16 %v97_v19, %v97_v19 }
  0xe8   :  { %128 = vst.msk [vmem:[%s224_s3 + $0xc] sm:$0xf] %vm124_vm1, %v146_v20 }
  0xe9   :  { %126 = vst.msk [vmem:[%s224_s3 + $0x4] sm:$0xf] %vm124_vm1, %v144_v21 }

// kernel: _lambda_.11
= control target key start
LH: loop header
LB: loop body
LE: loop exit
PB: predicated region body
PF: predicated region fallthrough
CT: control target
= control target key end

     0   :  { %vm27_vm0 = vcmask 261120   ;;  %vm31_vm1 = vcmask 254976   ;;  %v185_v17 = vmov 0.0   ;;  %vm186_vm2 = vmmov 0   ;;  %s247_s0 = inlined_call_operand.vmem [shape: bf16[10,32], index: 0, kind: input, shape index: {}]   ;;  %s248_s3 = inlined_call_operand.vmem [shape: bf16[32,32], index: 3, kind: input, shape index: {}]   ;;  %s249_s1 = inlined_call_operand.vmem [shape: f32[1,32], index: 1, kind: input, shape index: {}]   ;;  %s250_s2 = inlined_call_operand.vmem [shape: f32[1,32], index: 2, kind: input, shape index: {}]   ;;  %s251_s4 = inlined_call_operand.vmem [shape: f32[1,32], index: 4, kind: input, shape index: {}]   ;;  %s252_s5 = inlined_call_operand.vmem [shape: bf16[10,32], index: 5, kind: output, shape index: {}]  }
   0x1   :  { %v21_v0 = vld [vmem:[%s247_s0] sm:$0xf]  ;;  %v22_v1 = vld [vmem:[%s247_s0 + $0x4] sm:$0x1]  ;;  %169 = vmatprep.subr.bf16.mxu0 %v185_v17  ;;  %v180_v18 = vld [vmem:[%s248_s3 + $0x8] sm:$0xff]   ;;  %173 = vmatprep.mubr.msk.bf16.mxu0 %vm186_vm2, %v185_v17  ;;  %vm148_vm3 = vcmask 257024  }
   0x2   :  { %v23_v2 = vunpack.c.l.bf16 %v21_v0  ;;  %v24_v3 = vunpack.c.l.bf16 %v22_v1  ;;  %v179_v16 = vld [vmem:[%s248_s3] sm:$0xff]   ;;  %vm150_vm4 = vcmask 253952  }
   0x3   :  { %170 = vmatpush3.bf16.msra.mxu0 %v179_v16  ;;  %v156_v27 = vld [vmem:[%s249_s1] ss:$0 sm:$0xff] }
   0x4   :  { %v28_v4 = vsel %vm27_vm0, %v23_v2, 0.0  ;;  %v32_v5 = vsel %vm31_vm1, %v24_v3, 0.0  ;;  %171 = vmatprep.subr.bf16.mxu0 %v185_v17  ;;  %v157_v31 = vld [vmem:[%s250_s2] ss:$0 sm:$0xff] }
   0x5   :  { %29 = vadd.xlane.f32.xlu0 %v28_v4  ;;  %v158_v36 = vld [vmem:[%s251_s4] ss:$0 sm:$0xff] }
   0x7   :  { %172 = vmatpush3.bf16.msra.mxu0 %v180_v18 }
   0x9   :  { %33 = vadd.xlane.f32.xlu0 %v32_v5 }
  0x92   :  { %v30_v6 = vpop.xlane.xlu0 %29 }
  0x93   :  { %v36_v7 = vmul.f32 0.03125, %v30_v6 }
  0x95   :  { %v38_v8 = vsub.f32 %v23_v2, %v36_v7 }
  0x96   :  { %v34_v9 = vpop.xlane.xlu0 %33 }
  0x97   :  { %v37_v10 = vmul.f32 0.03125, %v34_v9  ;;  %v40_v11 = vmul.f32 %v38_v8, %v38_v8 }
  0x99   :  { %v39_v12 = vsub.f32 %v24_v3, %v37_v10  ;;  %v42_v13 = vsel %vm27_vm0, %v40_v11, 0.0 }
  0x9a   :  { %43 = vadd.xlane.f32.xlu1 %v42_v13 }
  0x9b   :  { %v41_v14 = vmul.f32 %v39_v12, %v39_v12 }
  0x9d   :  { %v45_v15 = vsel %vm31_vm1, %v41_v14, 0.0 }
  0x9e   :  { %46 = vadd.xlane.f32.xlu1 %v45_v15 }
 0x127   :  { %v44_v19 = vpop.xlane.xlu1 %43 }
 0x128   :  { %v48_v20 = vmul.f32 0.03125, %v44_v19 }
 0x12a   :  { %v50_v21 = vadd.f32 1e-05, %v48_v20 }
 0x12b   :  { %v47_v22 = vpop.xlane.xlu1 %46 }
 0x12c   :  { %181 = vrsqrt.f32 %v50_v21  ;;  %v49_v23 = vmul.f32 0.03125, %v47_v22 }
 0x12e   :  { %v51_v24 = vadd.f32 1e-05, %v49_v23 }
 0x130   :  { %183 = vrsqrt.f32 %v51_v24 }
 0x136   :  { %v182_v25 = vpop.eup %181 }
 0x137   :  { %v54_v26 = vmul.f32 %v182_v25, %v38_v8 }
 0x139   :  { %v62_v30 = vmul.f32 %v156_v27, %v54_v26 }
 0x13a   :  { %v184_v28 = vpop.eup %183 }
 0x13b   :  { %v55_v29 = vmul.f32 %v184_v28, %v39_v12  ;;  %v70_v33 = vadd.f32 %v157_v31, %v62_v30 }
 0x13d   :  { %v63_v32 = vmul.f32 %v156_v27, %v55_v29 }
 0x13f   :  { %v71_v34 = vadd.f32 %v157_v31, %v63_v32 }
 0x141   :  { %v76_v35 = vpack.c.bf16 %v71_v34, %v70_v33 }
 0x143   :  { %174 = vmatmul.mubr.msk.bf16.vlgmr.msra.gmra.mrb[0].mxu0 %vm27_vm0, %v76_v35 }
 0x216   :  { %v133_v37 = vpop.f32.mrb[0].mxu0 }
 0x217   :  { %v134_v38 = vadd.f32 %v158_v36, %v133_v37  ;;  %v175_v39 = vpop.f32.mrb[1].mxu0 }
 0x218   :  { %v136_v40 = vpop.f32.mrb[2].mxu0 }
 0x219   :  { %v164_v41 = vpack.c.bf16 %v134_v38, %v134_v38  ;;  %v137_v42 = vadd.f32 %v158_v36, %v136_v40  ;;  %v176_v43 = vpop.f32.mrb[3].mxu0 }
 0x21b   :  { %149 = vst.msk [vmem:[%s252_s5] sm:$0xf] %vm148_vm3, %v164_v41  ;;  %v165_v44 = vpack.c.bf16 %v137_v42, %v137_v42 }
 0x21d   :  { %151 = vst.msk [vmem:[%s252_s5 + $0x4] sm:$0x1] %vm150_vm4, %v165_v44 }

// kernel: _lambda_.9
= control target key start
LH: loop header
LB: loop body
LE: loop exit
PB: predicated region body
PF: predicated region fallthrough
CT: control target
= control target key end

     0   :  { %vm57_vm0 = vcmask 261120   ;;  %vm61_vm1 = vcmask 254976   ;;  %v2121_v17 = vmov 0.0   ;;  %vm2122_vm2 = vmmov 0   ;;  %s2126_s30 = smov 120   ;;  %s2128_s16 = smov 56   ;;  %s2564_s0 = inlined_call_operand.vmem [shape: bf16[10,32], index: 0, kind: input, shape index: {}]   ;;  %s2565_s3 = inlined_call_operand.vmem [shape: bf16[32,96], index: 3, kind: input, shape index: {}]   ;;  %s2566_s1 = inlined_call_operand.vmem [shape: f32[1,32], index: 1, kind: input, shape index: {}]   ;;  %s2567_s2 = inlined_call_operand.vmem [shape: f32[1,32], index: 2, kind: input, shape index: {}]   ;;  %s2568_s4 = inlined_call_operand.vmem [shape: f32[1,96], index: 4, kind: input, shape index: {}]   ;;  %s2569_s5 = inlined_call_operand.vmem [shape: bf16[32,32], index: 5, kind: input, shape index: {}]   ;;  %s2570_s6 = inlined_call_operand.vmem [shape: f32[1,32], index: 6, kind: input, shape index: {}]   ;;  %s2571_s7 = inlined_call_operand.vmem [shape: f32[1,32], index: 7, kind: input, shape index: {}]   ;;  %s2572_s10 = inlined_call_operand.vmem [shape: bf16[32,128], index: 10, kind: input, shape index: {}]   ;;  %s2573_s8 = inlined_call_operand.vmem [shape: f32[1,32], index: 8, kind: input, shape index: {}]   ;;  %s2574_s9 = inlined_call_operand.vmem [shape: f32[1,32], index: 9, kind: input, shape index: {}]   ;;  %s2575_s12 = inlined_call_operand.vmem [shape: bf16[128,32], index: 12, kind: input, shape index: {}]   ;;  %s2576_s11 = inlined_call_operand.vmem [shape: f32[1,128], index: 11, kind: input, shape index: {}]   ;;  %s2577_s13 = inlined_call_operand.vmem [shape: f32[1,32], index: 13, kind: input, shape index: {}]   ;;  %s2578_s14 = inlined_call_operand.vmem [shape: f32[1,32], index: 14, kind: input, shape index: {}]   ;;  %s2579_s15 = inlined_call_operand.vmem [shape: bf16[10,32], index: 15, kind: output, shape index: {}]  }
   0x1   :  { %v51_v0 = vld [vmem:[%s2564_s0] sm:$0xf]  ;;  %v52_v1 = vld [vmem:[%s2564_s0 + $0x4] sm:$0x1]  ;;  %1847 = vmatprep.subr.bf16.mxu1 %v2121_v17  ;;  %1873 = vmatprep.subr.bf16.mxu0 %v2121_v17  ;;  %v2066_v18 = vld [vmem:[%s2565_s3 + $0x8] sm:$0xff]   ;;  %vm178_vm3 = vcmask 64512  }
   0x2   :  { %v2221_v2 = vunpack.c.l.bf16 %v51_v0  ;;  %v2223_v3 = vunpack.c.l.bf16 %v52_v1  ;;  %v2065_v16 = vld [vmem:[%s2565_s3] sm:$0xff]   ;;  %1851 = vmatprep.mubr.msk.bf16.mxu1 %vm2122_vm2, %v2121_v17  ;;  %1875 = vmatprep.mubr.msk.bf16.mxu0 %vm2122_vm2, %v2121_v17  ;;  %vm225_vm4 = vcmask 36864   ;;  %vm244_vm5 = vcmask 1041408   ;;  %s2129_s17 = smov 112   ;;  %s2130_s18 = smov 80  }
   0x3   :  { %1848 = vmatpush3.bf16.msra.mxu1 %v2065_v16  ;;  %v1732_v27 = vld [vmem:[%s2566_s1] ss:$0 sm:$0xff]  ;;  %s2123_s1 = smov 96   ;;  %vm245_vm6 = vcmask 1042432   ;;  %v2127_v57 = vmov 65535   ;;  %vm240_vm7 = vcmask 39936  }
   0x4   :  { %v58_v4 = vsel %vm57_vm0, %v2221_v2, 0.0  ;;  %v62_v5 = vsel %vm61_vm1, %v2223_v3, 0.0  ;;  %1849 = vmatprep.subr.bf16.mxu1 %v2121_v17  ;;  %v1733_v31 = vld [vmem:[%s2567_s2] ss:$0 sm:$0xff]  ;;  %s2124_s2 = smov 88   ;;  %v246_v58 = vsel %vm244_vm5, 4294967295, %v2127_v57 }
   0x5   :  { %59 = vadd.xlane.f32.xlu0 %v58_v4  ;;  %v1734_v36 = vld [vmem:[%s2568_s4] ss:$0 sm:$0xff]  ;;  %s2125_s4 = smov 64   ;;  %v2279_v60 = vsel %vm245_vm6, %v246_v58, 0  ;;  %vm406_vm8 = vcmask 1043456   ;;  %s2131_s22 = smov 72  }
   0x6   :  { %s2132_s23 = smov 104   ;;  %s2133_s24 = smov 48   ;;  %vm1440_vm9 = vcmask 1044480   ;;  %vm1724_vm10 = vcmask 257024   ;;  %vm1726_vm11 = vcmask 253952  }
   0x7   :  { %1850 = vmatpush3.bf16.msra.mxu1 %v2066_v18  ;;  %s2134_s26 = smov 40  }
   0x8   :  { %1855 = vmatprep.subr.bf16.mxu1 %v2121_v17 }
   0x9   :  { %63 = vadd.xlane.f32.xlu0 %v62_v5 }
  0x92   :  { %v60_v6 = vpop.xlane.xlu0 %59 }
  0x93   :  { %v66_v7 = vmul.f32 0.03125, %v60_v6 }
  0x95   :  { %v68_v8 = vsub.f32 %v2221_v2, %v66_v7 }
  0x96   :  { %v64_v9 = vpop.xlane.xlu0 %63 }
  0x97   :  { %v67_v10 = vmul.f32 0.03125, %v64_v9  ;;  %v70_v11 = vmul.f32 %v68_v8, %v68_v8 }
  0x99   :  { %v69_v12 = vsub.f32 %v2223_v3, %v67_v10  ;;  %v72_v13 = vsel %vm57_vm0, %v70_v11, 0.0 }
  0x9a   :  { %73 = vadd.xlane.f32.xlu1 %v72_v13 }
  0x9b   :  { %v71_v14 = vmul.f32 %v69_v12, %v69_v12 }
  0x9d   :  { %v75_v15 = vsel %vm61_vm1, %v71_v14, 0.0 }
  0x9e   :  { %76 = vadd.xlane.f32.xlu1 %v75_v15 }
 0x127   :  { %v74_v19 = vpop.xlane.xlu1 %73 }
 0x128   :  { %v78_v20 = vmul.f32 0.03125, %v74_v19 }
 0x12a   :  { %v80_v21 = vadd.f32 1e-05, %v78_v20 }
 0x12b   :  { %v77_v22 = vpop.xlane.xlu1 %76 }
 0x12c   :  { %2077 = vrsqrt.f32 %v80_v21  ;;  %v79_v23 = vmul.f32 0.03125, %v77_v22 }
 0x12e   :  { %v81_v24 = vadd.f32 1e-05, %v79_v23 }
 0x130   :  { %2079 = vrsqrt.f32 %v81_v24 }
 0x136   :  { %v2078_v25 = vpop.eup %2077 }
 0x137   :  { %v84_v26 = vmul.f32 %v2078_v25, %v68_v8 }
 0x139   :  { %v92_v30 = vmul.f32 %v1732_v27, %v84_v26 }
 0x13a   :  { %v2080_v28 = vpop.eup %2079 }
 0x13b   :  { %v85_v29 = vmul.f32 %v2080_v28, %v69_v12  ;;  %v100_v33 = vadd.f32 %v1733_v31, %v92_v30 }
 0x13d   :  { %v93_v32 = vmul.f32 %v1732_v27, %v85_v29 }
 0x13f   :  { %v101_v34 = vadd.f32 %v1733_v31, %v93_v32  ;;  %v171_v31 = vld [vmem:[%s2569_s5 + $0x4] sm:$0xf] }
 0x140   :  { %v2315_v32 = vsel %vm406_vm8, %v171_v31, 0 }
 0x141   :  { %v106_v35 = vpack.c.bf16 %v101_v34, %v100_v33  ;;  %v170_v33 = vld [vmem:[%s2569_s5] sm:$0xf] }
 0x143   :  { %1852 = vmatmul.mubr.msk.bf16.vlgmr.msra.gmra.mrb[0].mxu1 %vm57_vm0, %v106_v35 }
 0x144   :  { %1857 = vmatprep.mubr.msk.bf16.mxu1 %vm2122_vm2, %v2121_v17 }
 0x216   :  { %v163_v37 = vpop.f32.mrb[0].mxu1 }
 0x217   :  { %v164_v38 = vadd.f32 %v1734_v36, %v163_v37  ;;  %v1853_v39 = vpop.f32.mrb[1].mxu1  ;;  %v2323_v37 = vsel %vm406_vm8, %v170_v33, 0 }
 0x218   :  { %v166_v40 = vpop.f32.mrb[2].mxu1 }
 0x219   :  { %v2259_v41 = vpack.c.bf16 %v164_v38, %v164_v38  ;;  %v167_v42 = vadd.f32 %v1734_v36, %v166_v40  ;;  %v1854_v43 = vpop.f32.mrb[3].mxu1 }
 0x21b   :  { %v2261_v44 = vpack.c.bf16 %v167_v42, %v164_v38  ;;  %176 = vrot.lane.b32.xlu0 %v2259_v41, %s2123_s1 }
 0x21f   :  { %294 = vrot.lane.b32.xlu0 %v2259_v41, %s2124_s2 }
 0x28d   :  { %v177_v45 = vpop.permute.xlu0 %176 }
 0x28e   :  { %v183_v46 = vsel %vm178_vm3, %v177_v45, 0 }
 0x28f   :  { %1856 = vmatpush3.bf16.xpose.msra.mxu1 %v183_v46 }
 0x290   :  { %1861 = vmatprep.subr.bf16.mxu1 %v2121_v17 }
 0x291   :  { %v295_v1 = vpop.permute.xlu0 %294 }
 0x292   :  { %v300_v5 = vsel %vm178_vm3, %v295_v1, 0 }
 0x296   :  { %1858 = vmatmul.mubr.msk.bf16.vlgmr.msra.gmra.mrb[4].mxu1 %vm178_vm3, %v2259_v41 }
 0x297   :  { %1863 = vmatprep.mubr.msk.bf16.mxu1 %vm2122_vm2, %v2121_v17 }
 0x369   :  { %v219_v47 = vpop.f32.mrb[4].mxu1 }
 0x36a   :  { %v1859_v48 = vpop.f32.mrb[5].mxu1  ;;  %v226_v49 = vsel %vm225_vm4, %v219_v47, -inf }
 0x36b   :  { %227 = vmax.xlane.f32.xlu1 %v226_v49  ;;  %v222_v50 = vpop.f32.mrb[6].mxu1 }
 0x36c   :  { %v1860_v51 = vpop.f32.mrb[7].mxu1 }
 0x3f8   :  { %v228_v52 = vpop.xlane.xlu1 %227 }
 0x3f9   :  { %v229_v53 = vsub.f32 %v219_v47, %v228_v52 }
 0x3fb   :  { %v230_v54 = vmul.f32 1.442695, %v229_v53 }
 0x3fd   :  { %2081 = vpow2.f32 %v230_v54 }
 0x407   :  { %v2082_v55 = vpop.eup %2081 }
 0x408   :  { %v232_v56 = vsel %vm225_vm4, %v2082_v55, 0.0 }
 0x409   :  { %233 = vadd.xlane.f32.xlu1 %v232_v56 }
 0x41a   :  { %238 = vrot.lane.b32.xlu1 %v2259_v41, %s2125_s4 }
 0x41e   :  { %292 = vrot.lane.b32.xlu1 %v2259_v41, %s2126_s30 }
 0x496   :  { %v234_v59 = vpop.xlane.xlu1 %233 }
 0x497   :  { %2083 = vrcp.f32 %v234_v59 }
 0x49a   :  { %v239_v61 = vpop.permute.xlu1 %238 }
 0x49b   :  { %v249_v62 = vand.u32 %v2279_v60, %v239_v61 }
 0x49d   :  { %1862 = vmatpush3.bf16.msra.mxu1 %v249_v62 }
 0x49e   :  { %1867 = vmatprep.subr.bf16.mxu1 %v2121_v17  ;;  %v293_v6 = vpop.permute.xlu1 %292 }
 0x4a1   :  { %v2084_v63 = vpop.eup %2083 }
 0x4a2   :  { %v236_v0 = vmul.f32 %v2084_v63, %v2082_v55  ;;  %v172_v63 = vld [vmem:[%s2569_s5 + $0x8] sm:$0xf] }
 0x4a4   :  { %v237_v4 = vpack.c.bf16 %v236_v0, %v236_v0  ;;  %v2357_v0 = vsel %vm406_vm8, %v172_v63, 0 }
 0x4a6   :  { %1864 = vmatmul.mubr.msk.bf16.vlgmr.msra.gmra.mrb[8].mxu1 %vm240_vm7, %v237_v4 }
 0x4a7   :  { %1868 = vmatpush3.bf16.xpose.msra.mxu1 %v300_v5  ;;  %1869 = vmatprep.mubr.msk.bf16.mxu1 %vm2122_vm2, %v2121_v17 }
 0x4a8   :  { %1879 = vmatprep.subr.bf16.mxu1 %v2121_v17 }
 0x4ae   :  { %1870 = vmatmul.mubr.msk.bf16.vlgmr.msra.gmra.mrb[12].mxu1 %vm178_vm3, %v293_v6 }
 0x4af   :  { %1881 = vmatprep.mubr.msk.bf16.mxu1 %vm2122_vm2, %v2121_v17  ;;  %1880 = vmatpush3.bf16.msra.mxu1 %v2315_v32 }
 0x4b0   :  { %1885 = vmatprep.subr.bf16.mxu1 %v2121_v17 }
 0x579   :  { %v2291_v7 = vpop.f32.mrb[8].mxu1 }
 0x57a   :  { %v1865_v8 = vpop.f32.mrb[9].mxu1  ;;  %v291_v47 = vpack.c.bf16 %v2291_v7, %v2291_v7 }
 0x57b   :  { %v288_v9 = vpop.f32.mrb[10].mxu1 }
 0x57c   :  { %v1866_v10 = vpop.f32.mrb[11].mxu1 }
 0x581   :  { %v336_v11 = vpop.f32.mrb[12].mxu1 }
 0x582   :  { %v1871_v12 = vpop.f32.mrb[13].mxu1  ;;  %v342_v13 = vsel %vm225_vm4, %v336_v11, -inf }
 0x583   :  { %343 = vmax.xlane.f32.xlu0 %v342_v13  ;;  %v339_v14 = vpop.f32.mrb[14].mxu1  ;;  %v814_v13 = vshrl.u32 %v2261_v44, 16 }
 0x584   :  { %v1872_v15 = vpop.f32.mrb[15].mxu1  ;;  %v817_v14 = vshll.u32 %v2261_v44, 16 }
 0x585   :  { %v816_v15 = vrot.slane %v814_v13, 2 }
 0x599   :  { %354 = vrot.lane.b32.xlu0 %v2259_v41, %s2128_s16 }
 0x59d   :  { %496 = vrot.lane.b32.xlu0 %v2259_v41, %s2129_s17 }
 0x610   :  { %v344_v16 = vpop.xlane.xlu0 %343 }
 0x611   :  { %v345_v18 = vsub.f32 %v336_v11, %v344_v16  ;;  %v819_v16 = vrot.slane %v817_v14, 3 }
 0x613   :  { %v346_v19 = vmul.f32 1.442695, %v345_v18  ;;  %v2369_v18 = vor.u32 %v819_v16, %v816_v15 }
 0x614   :  { %v355_v20 = vpop.permute.xlu0 %354 }
 0x615   :  { %2085 = vpow2.f32 %v346_v19  ;;  %v360_v21 = vand.u32 %v355_v20, %v2279_v60 }
 0x617   :  { %1874 = vmatpush3.bf16.msra.mxu0 %v360_v21 }
 0x618   :  { %1891 = vmatprep.subr.bf16.mxu0 %v2121_v17  ;;  %v497_v30 = vpop.permute.xlu0 %496 }
 0x61f   :  { %v2086_v22 = vpop.eup %2085 }
 0x620   :  { %v348_v23 = vsel %vm225_vm4, %v2086_v22, 0.0 }
 0x621   :  { %349 = vadd.xlane.f32.xlu1 %v348_v23 }
 0x632   :  { %498 = vrot.lane.b32.xlu1 %v2259_v41, %s2130_s18 }
 0x6ae   :  { %v350_v24 = vpop.xlane.xlu1 %349 }
 0x6af   :  { %2087 = vrcp.f32 %v350_v24 }
 0x6b2   :  { %v499_v27 = vpop.permute.xlu1 %498 }
 0x6b3   :  { %v504_v29 = vsel %vm178_vm3, %v499_v27, 0 }
 0x6b9   :  { %v2088_v25 = vpop.eup %2087 }
 0x6ba   :  { %v352_v26 = vmul.f32 %v2088_v25, %v2086_v22 }
 0x6bc   :  { %v353_v28 = vpack.c.bf16 %v352_v26, %v352_v26 }
 0x6be   :  { %1876 = vmatmul.mubr.msk.bf16.vlgmr.msra.gmra.mrb[0].mxu0 %vm240_vm7, %v353_v28  ;;  %v173_v28 = vld [vmem:[%s2569_s5 + $0xc] sm:$0xf] }
 0x6bf   :  { %1892 = vmatpush3.bf16.xpose.msra.mxu0 %v504_v29  ;;  %1893 = vmatprep.mubr.msk.bf16.mxu0 %vm2122_vm2, %v2121_v17  ;;  %v2388_v31 = vsel %vm406_vm8, %v173_v28, 0 }
 0x6c0   :  { %1897 = vmatprep.subr.bf16.mxu0 %v2121_v17 }
 0x6c6   :  { %1894 = vmatmul.mubr.msk.bf16.vlgmr.msra.gmra.mrb[4].mxu0 %vm178_vm3, %v497_v30 }
 0x6c7   :  { %1899 = vmatprep.mubr.msk.bf16.mxu0 %vm2122_vm2, %v2121_v17 }
 0x791   :  { %v396_v34 = vpop.f32.mrb[0].mxu0 }
 0x792   :  { %v402_v35 = vpack.c.bf16 %v396_v34, %v396_v34  ;;  %v1877_v36 = vpop.f32.mrb[1].mxu0 }
 0x793   :  { %v399_v38 = vpop.f32.mrb[2].mxu0 }
 0x794   :  { %v1878_v39 = vpop.f32.mrb[3].mxu0  ;;  %1882 = vmatmul.mubr.msk.bf16.vlgmr.msra.gmra.mrb[16].mxu1 %vm178_vm3, %v402_v35 }
 0x795   :  { %1886 = vmatpush3.bf16.msra.mxu1 %v2323_v37  ;;  %1887 = vmatprep.mubr.msk.bf16.mxu1 %vm2122_vm2, %v2121_v17 }
 0x796   :  { %1903 = vmatprep.subr.bf16.mxu1 %v2121_v17 }
 0x799   :  { %v540_v40 = vpop.f32.mrb[4].mxu0 }
 0x79a   :  { %v1895_v42 = vpop.f32.mrb[5].mxu0  ;;  %v546_v43 = vsel %vm225_vm4, %v540_v40, -inf }
 0x79b   :  { %547 = vmax.xlane.f32.xlu1 %v546_v43  ;;  %v543_v45 = vpop.f32.mrb[6].mxu0 }
 0x79c   :  { %v1896_v46 = vpop.f32.mrb[7].mxu0 }
 0x7a0   :  { %1888 = vmatmul.mubr.msk.bf16.vlgmr.msra.gmra.mrb[16].mxu1 %vm178_vm3, %v291_v47 }
 0x7a1   :  { %1905 = vmatprep.mubr.msk.bf16.mxu1 %vm2122_vm2, %v2121_v17  ;;  %1904 = vmatpush3.bf16.msra.mxu1 %v2357_v0 }
 0x7a2   :  { %1915 = vmatprep.subr.bf16.mxu1 %v2121_v17 }
 0x7ac   :  { %656 = vrot.lane.b32.xlu1 %v2259_v41, %s2131_s22 }
 0x7b0   :  { %654 = vrot.lane.b32.xlu1 %v2259_v41, %s2132_s23 }
 0x828   :  { %v548_v48 = vpop.xlane.xlu1 %547 }
 0x829   :  { %v549_v49 = vsub.f32 %v540_v40, %v548_v48 }
 0x82b   :  { %v550_v50 = vmul.f32 1.442695, %v549_v49 }
 0x82c   :  { %v657_v58 = vpop.permute.xlu1 %656 }
 0x82d   :  { %2089 = vpow2.f32 %v550_v50  ;;  %v662_v61 = vsel %vm178_vm3, %v657_v58, 0 }
 0x830   :  { %v655_v62 = vpop.permute.xlu1 %654 }
 0x837   :  { %v2090_v51 = vpop.eup %2089 }
 0x838   :  { %v552_v52 = vsel %vm225_vm4, %v2090_v51, 0.0 }
 0x839   :  { %553 = vadd.xlane.f32.xlu0 %v552_v52 }
 0x84f   :  { %558 = vrot.lane.b32.xlu0 %v2259_v41, %s2133_s24 }
 0x8c6   :  { %v554_v53 = vpop.xlane.xlu0 %553 }
 0x8c7   :  { %2091 = vrcp.f32 %v554_v53 }
 0x8ca   :  { %v559_v54 = vpop.permute.xlu0 %558 }
 0x8cb   :  { %v564_v55 = vand.u32 %v559_v54, %v2279_v60 }
 0x8cd   :  { %1898 = vmatpush3.bf16.msra.mxu0 %v564_v55 }
 0x8ce   :  { %1909 = vmatprep.subr.bf16.mxu0 %v2121_v17 }
 0x8d1   :  { %v2092_v56 = vpop.eup %2091 }
 0x8d2   :  { %v556_v57 = vmul.f32 %v2092_v56, %v2090_v51 }
 0x8d4   :  { %v557_v59 = vpack.c.bf16 %v556_v57, %v556_v57 }
 0x8d6   :  { %1900 = vmatmul.mubr.msk.bf16.vlgmr.msra.gmra.mrb[8].mxu0 %vm240_vm7, %v557_v59 }
 0x8d7   :  { %1910 = vmatpush3.bf16.xpose.msra.mxu0 %v662_v61  ;;  %1911 = vmatprep.mubr.msk.bf16.mxu0 %vm2122_vm2, %v2121_v17 }
 0x8d8   :  { %1927 = vmatprep.subr.bf16.mxu0 %v2121_v17 }
 0x8de   :  { %1912 = vmatmul.mubr.msk.bf16.vlgmr.msra.gmra.mrb[12].mxu0 %vm178_vm3, %v655_v62 }
 0x8df   :  { %1929 = vmatprep.mubr.msk.bf16.mxu0 %vm2122_vm2, %v2121_v17 }
 0x9a9   :  { %v600_v1 = vpop.f32.mrb[8].mxu0 }
 0x9aa   :  { %v606_v4 = vpack.c.bf16 %v600_v1, %v600_v1  ;;  %v1901_v5 = vpop.f32.mrb[9].mxu0 }
 0x9ab   :  { %v603_v6 = vpop.f32.mrb[10].mxu0 }
 0x9ac   :  { %v1902_v7 = vpop.f32.mrb[11].mxu0  ;;  %1906 = vmatmul.mubr.msk.bf16.vlgmr.msra.gmra.mrb[16].mxu1 %vm178_vm3, %v606_v4 }
 0x9ad   :  { %1917 = vmatprep.mubr.msk.bf16.mxu1 %vm2122_vm2, %v2121_v17 }
 0x9b1   :  { %v698_v8 = vpop.f32.mrb[12].mxu0 }
 0x9b2   :  { %v1913_v9 = vpop.f32.mrb[13].mxu0  ;;  %v704_v10 = vsel %vm225_vm4, %v698_v8, -inf }
 0x9b3   :  { %705 = vmax.xlane.f32.xlu0 %v704_v10  ;;  %v701_v11 = vpop.f32.mrb[14].mxu0 }
 0x9b4   :  { %v1914_v12 = vpop.f32.mrb[15].mxu0 }
 0x9c9   :  { %716 = vrot.lane.b32.xlu0 %v2259_v41, %s2134_s26 }
 0x9cd   :  { %932 = vrot.lane.b32.xlu0 %v2369_v18, %s2124_s2 }
 0xa40   :  { %v706_v19 = vpop.xlane.xlu0 %705 }
 0xa41   :  { %v707_v20 = vsub.f32 %v698_v8, %v706_v19 }
 0xa43   :  { %v708_v21 = vmul.f32 1.442695, %v707_v20 }
 0xa44   :  { %v717_v22 = vpop.permute.xlu0 %716 }
 0xa45   :  { %2093 = vpow2.f32 %v708_v21  ;;  %v722_v23 = vand.u32 %v717_v22, %v2279_v60 }
 0xa47   :  { %1916 = vmatpush3.bf16.msra.mxu1 %v722_v23 }
 0xa48   :  { %1921 = vmatprep.subr.bf16.mxu1 %v2121_v17  ;;  %v933_v36 = vpop.permute.xlu0 %932 }
 0xa49   :  { %v938_v46 = vsel %vm178_vm3, %v933_v36, 0 }
 0xa4f   :  { %v2094_v44 = vpop.eup %2093 }
 0xa50   :  { %v710_v24 = vsel %vm225_vm4, %v2094_v44, 0.0 }
 0xa51   :  { %711 = vadd.xlane.f32.xlu1 %v710_v24 }
 0xa62   :  { %821 = vrot.lane.b32.xlu1 %v2369_v18, %s2123_s1 }
 0xa66   :  { %930 = vrot.lane.b32.xlu1 %v2369_v18, %s2126_s30 }
 0xade   :  { %v712_v41 = vpop.xlane.xlu1 %711 }
 0xadf   :  { %2095 = vrcp.f32 %v712_v41 }
 0xae2   :  { %v822_v25 = vpop.permute.xlu1 %821 }
 0xae3   :  { %v827_v26 = vsel %vm178_vm3, %v822_v25, 0 }
 0xae4   :  { %1928 = vmatpush3.bf16.xpose.msra.mxu0 %v827_v26 }
 0xae5   :  { %1933 = vmatprep.subr.bf16.mxu0 %v2121_v17 }
 0xae6   :  { %v931_v48 = vpop.permute.xlu1 %930 }
 0xae9   :  { %v2096_v27 = vpop.eup %2095 }
 0xaea   :  { %v714_v29 = vmul.f32 %v2096_v27, %v2094_v44 }
 0xaeb   :  { %1930 = vmatmul.mubr.msk.bf16.vlgmr.msra.gmra.mrb[16].mxu0 %vm178_vm3, %v2369_v18 }
 0xaec   :  { %v715_v30 = vpack.c.bf16 %v714_v29, %v714_v29  ;;  %1935 = vmatprep.mubr.msk.bf16.mxu0 %vm2122_vm2, %v2121_v17 }
 0xaee   :  { %1918 = vmatmul.mubr.msk.bf16.vlgmr.msra.gmra.mrb[20].mxu1 %vm240_vm7, %v715_v30 }
 0xaef   :  { %1922 = vmatpush3.bf16.msra.mxu1 %v2388_v31  ;;  %1923 = vmatprep.mubr.msk.bf16.mxu1 %vm2122_vm2, %v2121_v17 }
 0xaf0   :  { %1939 = vmatprep.subr.bf16.mxu1 %v2121_v17 }
 0xbbe   :  { %v863_v33 = vpop.f32.mrb[16].mxu0 }
 0xbbf   :  { %v1931_v34 = vpop.f32.mrb[17].mxu0  ;;  %v869_v35 = vsel %vm225_vm4, %v863_v33, -inf }
 0xbc0   :  { %870 = vmax.xlane.f32.xlu0 %v869_v35  ;;  %v866_v38 = vpop.f32.mrb[18].mxu0 }
 0xbc1   :  { %v758_v39 = vpop.f32.mrb[20].mxu1  ;;  %v1932_v40 = vpop.f32.mrb[19].mxu0 }
 0xbc2   :  { %v764_v42 = vpack.c.bf16 %v758_v39, %v758_v39  ;;  %v1919_v43 = vpop.f32.mrb[21].mxu1 }
 0xbc3   :  { %v761_v45 = vpop.f32.mrb[22].mxu1 }
 0xbc4   :  { %v1920_v47 = vpop.f32.mrb[23].mxu1  ;;  %1924 = vmatmul.mubr.msk.bf16.vlgmr.msra.gmra.mrb[16].mxu1 %vm178_vm3, %v764_v42 }
 0xbc5   :  { %1940 = vmatpush3.bf16.xpose.msra.mxu1 %v938_v46  ;;  %1941 = vmatprep.mubr.msk.bf16.mxu1 %vm2122_vm2, %v2121_v17 }
 0xbc6   :  { %1951 = vmatprep.subr.bf16.mxu1 %v2121_v17 }
 0xbcc   :  { %1942 = vmatmul.mubr.msk.bf16.vlgmr.msra.gmra.mrb[24].mxu1 %vm178_vm3, %v931_v48 }
 0xbcd   :  { %1952 = vmatpush3.bf16.msra.mxu1 %v2315_v32  ;;  %1953 = vmatprep.mubr.msk.bf16.mxu1 %vm2122_vm2, %v2121_v17 }
 0xbce   :  { %1957 = vmatprep.subr.bf16.mxu1 %v2121_v17 }
 0xc4d   :  { %v871_v49 = vpop.xlane.xlu0 %870 }
 0xc4e   :  { %v872_v50 = vsub.f32 %v863_v33, %v871_v49 }
 0xc50   :  { %v873_v51 = vmul.f32 1.442695, %v872_v50 }
 0xc52   :  { %2097 = vpow2.f32 %v873_v51 }
 0xc5c   :  { %v2098_v52 = vpop.eup %2097 }
 0xc5d   :  { %v875_v53 = vsel %vm225_vm4, %v2098_v52, 0.0 }
 0xc5e   :  { %876 = vadd.xlane.f32.xlu0 %v875_v53 }
 0xc97   :  { %v2409_v54 = vpop.f32.mrb[16].mxu1 }
 0xc98   :  { %v1925_v55 = vpop.f32.mrb[17].mxu1 }
 0xc99   :  { %v808_v56 = vpop.f32.mrb[18].mxu1 }
 0xc9a   :  { %v1926_v57 = vpop.f32.mrb[19].mxu1 }
 0xc9f   :  { %v974_v58 = vpop.f32.mrb[24].mxu1 }
 0xca0   :  { %v1943_v32 = vpop.f32.mrb[25].mxu1  ;;  %v980_v59 = vsel %vm225_vm4, %v974_v58, -inf }
 0xca1   :  { %981 = vmax.xlane.f32.xlu1 %v980_v59  ;;  %v977_v61 = vpop.f32.mrb[26].mxu1 }
 0xca2   :  { %v1944_v62 = vpop.f32.mrb[27].mxu1 }
 0xcb2   :  { %992 = vrot.lane.b32.xlu1 %v2369_v18, %s2128_s16 }
 0xcb6   :  { %1129 = vrot.lane.b32.xlu1 %v2369_v18, %s2130_s18 }
 0xcba   :  { %1127 = vrot.lane.b32.xlu1 %v2369_v18, %s2129_s17 }
 0xceb   :  { %v877_v7 = vpop.xlane.xlu0 %876 }
 0xd2e   :  { %v982_v63 = vpop.xlane.xlu1 %981 }
 0xd2f   :  { %v983_v1 = vsub.f32 %v974_v58, %v982_v63 }
 0xd31   :  { %v984_v4 = vmul.f32 1.442695, %v983_v1 }
 0xd32   :  { %v993_v13 = vpop.permute.xlu1 %992 }
 0xd33   :  { %2099 = vpow2.f32 %v984_v4  ;;  %v998_v15 = vand.u32 %v993_v13, %v2279_v60 }
 0xd34   :  { %2101 = vrcp.f32 %v877_v7 }
 0xd36   :  { %v1130_v20 = vpop.permute.xlu1 %1129 }
 0xd37   :  { %v1135_v22 = vsel %vm178_vm3, %v1130_v20, 0 }
 0xd3a   :  { %v1128_v23 = vpop.permute.xlu1 %1127 }
 0xd3d   :  { %v2100_v5 = vpop.eup %2099 }
 0xd3e   :  { %v986_v6 = vsel %vm225_vm4, %v2100_v5, 0.0  ;;  %v2102_v9 = vpop.eup %2101 }
 0xd3f   :  { %987 = vadd.xlane.f32.xlu0 %v986_v6  ;;  %v879_v10 = vmul.f32 %v2102_v9, %v2098_v52 }
 0xd41   :  { %v880_v14 = vpack.c.bf16 %v879_v10, %v879_v10 }
 0xd55   :  { %881 = vrot.lane.b32.xlu0 %v2369_v18, %s2125_s4 }
 0xdcc   :  { %v988_v8 = vpop.xlane.xlu0 %987 }
 0xdcd   :  { %2103 = vrcp.f32 %v988_v8 }
 0xdd0   :  { %v882_v11 = vpop.permute.xlu0 %881 }
 0xdd1   :  { %v887_v12 = vand.u32 %v882_v11, %v2279_v60 }
 0xdd3   :  { %1934 = vmatpush3.bf16.msra.mxu0 %v887_v12 }
 0xdd4   :  { %1945 = vmatprep.subr.bf16.mxu0 %v2121_v17 }
 0xdd6   :  { %1936 = vmatmul.mubr.msk.bf16.vlgmr.msra.gmra.mrb[20].mxu0 %vm240_vm7, %v880_v14 }
 0xdd7   :  { %v2104_v16 = vpop.eup %2103  ;;  %1946 = vmatpush3.bf16.msra.mxu0 %v998_v15  ;;  %1947 = vmatprep.mubr.msk.bf16.mxu0 %vm2122_vm2, %v2121_v17 }
 0xdd8   :  { %v990_v19 = vmul.f32 %v2104_v16, %v2100_v5  ;;  %1963 = vmatprep.subr.bf16.mxu0 %v2121_v17 }
 0xdda   :  { %v991_v21 = vpack.c.bf16 %v990_v19, %v990_v19 }
 0xdde   :  { %1948 = vmatmul.mubr.msk.bf16.vlgmr.msra.gmra.mrb[24].mxu0 %vm240_vm7, %v991_v21  ;;  %v1762_v21 = vld [vmem:[%s2570_s6] ss:$0 sm:$0xff] }
 0xddf   :  { %1965 = vmatprep.mubr.msk.bf16.mxu0 %vm2122_vm2, %v2121_v17 }
 0xde0   :  { %1964 = vmatpush3.bf16.xpose.msra.mxu0 %v1135_v22 }
 0xde1   :  { %1969 = vmatprep.subr.bf16.mxu0 %v2121_v17 }
 0xde7   :  { %1966 = vmatmul.mubr.msk.bf16.vlgmr.msra.gmra.mrb[28].mxu0 %vm178_vm3, %v1128_v23 }
 0xde8   :  { %1971 = vmatprep.mubr.msk.bf16.mxu0 %vm2122_vm2, %v2121_v17 }
 0xea9   :  { %v923_v44 = vpop.f32.mrb[20].mxu0 }
 0xeaa   :  { %v1937_v24 = vpop.f32.mrb[21].mxu0  ;;  %v929_v39 = vpack.c.bf16 %v923_v44, %v923_v44 }
 0xeab   :  { %v926_v41 = vpop.f32.mrb[22].mxu0 }
 0xeac   :  { %v1938_v25 = vpop.f32.mrb[23].mxu0  ;;  %v1763_v41 = vld [vmem:[%s2571_s7] ss:$0 sm:$0xff] }
 0xeb1   :  { %v1034_v26 = vpop.f32.mrb[24].mxu0 }
 0xeb2   :  { %v1040_v27 = vpack.c.bf16 %v1034_v26, %v1034_v26  ;;  %v1949_v28 = vpop.f32.mrb[25].mxu0 }
 0xeb3   :  { %v1037_v29 = vpop.f32.mrb[26].mxu0 }
 0xeb4   :  { %v1950_v30 = vpop.f32.mrb[27].mxu0  ;;  %1954 = vmatmul.mubr.msk.bf16.vlgmr.msra.gmra.mrb[28].mxu1 %vm178_vm3, %v1040_v27 }
 0xeb5   :  { %1958 = vmatpush3.bf16.msra.mxu1 %v2323_v37  ;;  %1959 = vmatprep.mubr.msk.bf16.mxu1 %vm2122_vm2, %v2121_v17 }
 0xeb6   :  { %1975 = vmatprep.subr.bf16.mxu1 %v2121_v17 }
 0xeba   :  { %v1171_v33 = vpop.f32.mrb[28].mxu0 }
 0xebb   :  { %v1967_v34 = vpop.f32.mrb[29].mxu0  ;;  %v1177_v35 = vsel %vm225_vm4, %v1171_v33, -inf }
 0xebc   :  { %1178 = vmax.xlane.f32.xlu0 %v1177_v35  ;;  %v1174_v36 = vpop.f32.mrb[30].mxu0 }
 0xebd   :  { %v1968_v38 = vpop.f32.mrb[31].mxu0 }
 0xec0   :  { %1960 = vmatmul.mubr.msk.bf16.vlgmr.msra.gmra.mrb[28].mxu1 %vm178_vm3, %v929_v39 }
 0xec1   :  { %1976 = vmatpush3.bf16.msra.mxu1 %v2357_v0  ;;  %1977 = vmatprep.mubr.msk.bf16.mxu1 %vm2122_vm2, %v2121_v17 }
 0xec2   :  { %1987 = vmatprep.subr.bf16.mxu1 %v2121_v17 }
 0xed2   :  { %1189 = vrot.lane.b32.xlu0 %v2369_v18, %s2133_s24 }
 0xed6   :  { %1282 = vrot.lane.b32.xlu0 %v2369_v18, %s2132_s23 }
 0xf49   :  { %v1179_v37 = vpop.xlane.xlu0 %1178 }
 0xf4a   :  { %v1180_v40 = vsub.f32 %v1171_v33, %v1179_v37 }
 0xf4c   :  { %v1181_v42 = vmul.f32 1.442695, %v1180_v40 }
 0xf4d   :  { %v1190_v43 = vpop.permute.xlu0 %1189 }
 0xf4e   :  { %2105 = vpow2.f32 %v1181_v42  ;;  %v1195_v45 = vand.u32 %v1190_v43, %v2279_v60  ;;  %v2067_v43 = vld [vmem:[%s2572_s10] sm:$0xff]  }
 0xf50   :  { %1970 = vmatpush3.bf16.msra.mxu0 %v1195_v45  ;;  %v2068_v45 = vld [vmem:[%s2572_s10 + $0x8] sm:$0xff]  }
 0xf51   :  { %1981 = vmatprep.subr.bf16.mxu0 %v2121_v17  ;;  %v1283_v53 = vpop.permute.xlu0 %1282 }
 0xf58   :  { %v2106_v0 = vpop.eup %2105 }
 0xf59   :  { %v1183_v46 = vsel %vm225_vm4, %v2106_v0, 0.0 }
 0xf5a   :  { %1184 = vadd.xlane.f32.xlu1 %v1183_v46 }
 0xf6b   :  { %1284 = vrot.lane.b32.xlu1 %v2369_v18, %s2131_s22 }
 0xfe7   :  { %v1185_v47 = vpop.xlane.xlu1 %1184 }
 0xfe8   :  { %2107 = vrcp.f32 %v1185_v47 }
 0xfeb   :  { %v1285_v50 = vpop.permute.xlu1 %1284 }
 0xfec   :  { %v1290_v52 = vsel %vm178_vm3, %v1285_v50, 0 }
 0xff2   :  { %v2108_v48 = vpop.eup %2107 }
 0xff3   :  { %v1187_v49 = vmul.f32 %v2108_v48, %v2106_v0 }
 0xff5   :  { %v1188_v51 = vpack.c.bf16 %v1187_v49, %v1187_v49 }
 0xff7   :  { %1972 = vmatmul.mubr.msk.bf16.vlgmr.msra.gmra.mrb[32].mxu0 %vm240_vm7, %v1188_v51 }
 0xff8   :  { %1982 = vmatpush3.bf16.xpose.msra.mxu0 %v1290_v52  ;;  %1983 = vmatprep.mubr.msk.bf16.mxu0 %vm2122_vm2, %v2121_v17 }
 0xff9   :  { %1999 = vmatprep.subr.bf16.mxu0 %v2121_v17 }
 0xfff   :  { %1984 = vmatmul.mubr.msk.bf16.vlgmr.msra.gmra.mrb[36].mxu0 %vm178_vm3, %v1283_v53  ;;  %v1764_v53 = vld [vmem:[%s2573_s8] ss:$0 sm:$0xff] }
0x1000   :  { %2003 = vmatprep.mubr.msk.bf16.mxu0 %vm2122_vm2, %v2121_v17  ;;  %2000 = vmatpush3.bf16.msra.mxu0 %v2067_v43 }
0x1001   :  { %2001 = vmatprep.subr.bf16.mxu0 %v2121_v17 }
0x1004   :  { %2002 = vmatpush3.bf16.msra.mxu0 %v2068_v45 }
0x1005   :  { %2007 = vmatprep.subr.bf16.mxu0 %v2121_v17 }
0x10ca   :  { %v1231_v55 = vpop.f32.mrb[32].mxu0 }
0x10cb   :  { %v1237_v56 = vpack.c.bf16 %v1231_v55, %v1231_v55  ;;  %v1973_v57 = vpop.f32.mrb[33].mxu0 }
0x10cc   :  { %v1234_v58 = vpop.f32.mrb[34].mxu0 }
0x10cd   :  { %v1974_v32 = vpop.f32.mrb[35].mxu0  ;;  %1978 = vmatmul.mubr.msk.bf16.vlgmr.msra.gmra.mrb[28].mxu1 %vm178_vm3, %v1237_v56  ;;  %v1765_v58 = vld [vmem:[%s2574_s9] ss:$0 sm:$0xff] }
0x10ce   :  { %1989 = vmatprep.mubr.msk.bf16.mxu1 %vm2122_vm2, %v2121_v17 }
0x10d2   :  { %v1326_v59 = vpop.f32.mrb[36].mxu0 }
0x10d3   :  { %v1985_v61 = vpop.f32.mrb[37].mxu0  ;;  %v1332_v62 = vsel %vm225_vm4, %v1326_v59, -inf }
0x10d4   :  { %1333 = vmax.xlane.f32.xlu1 %v1332_v62  ;;  %v1329_v63 = vpop.f32.mrb[38].mxu0 }
0x10d5   :  { %v1986_v1 = vpop.f32.mrb[39].mxu0  ;;  %v2069_v63 = vld [vmem:[%s2575_s12] sm:$0xff]  }
0x10d6   :  { %v2070_v1 = vld [vmem:[%s2575_s12 + $0x8] sm:$0xff]  }
0x1161   :  { %v1334_v4 = vpop.xlane.xlu1 %1333 }
0x1162   :  { %v1335_v5 = vsub.f32 %v1326_v59, %v1334_v4  ;;  %v2071_v4 = vld [vmem:[%s2575_s12 + $0x10] sm:$0xff]  }
0x1164   :  { %v1336_v6 = vmul.f32 1.442695, %v1335_v5  ;;  %v2072_v5 = vld [vmem:[%s2575_s12 + $0x18] sm:$0xff]  }
0x1166   :  { %2109 = vpow2.f32 %v1336_v6  ;;  %v2073_v6 = vld [vmem:[%s2575_s12 + $0x20] sm:$0xff]  }
0x1170   :  { %v2110_v7 = vpop.eup %2109 }
0x1171   :  { %v1338_v8 = vsel %vm225_vm4, %v2110_v7, 0.0 }
0x1172   :  { %1339 = vadd.xlane.f32.xlu0 %v1338_v8  ;;  %v2075_v8 = vld [vmem:[%s2575_s12 + $0x30] sm:$0xff]  }
0x1188   :  { %1344 = vrot.lane.b32.xlu0 %v2369_v18, %s2134_s26 }
0x11ff   :  { %v1340_v9 = vpop.xlane.xlu0 %1339 }
0x1200   :  { %2111 = vrcp.f32 %v1340_v9  ;;  %v2076_v9 = vld [vmem:[%s2575_s12 + $0x38] sm:$0xff]  }
0x1203   :  { %v1345_v10 = vpop.permute.xlu0 %1344 }
0x1204   :  { %v1350_v11 = vand.u32 %v1345_v10, %v2279_v60  ;;  %v1766_v10 = vld [vmem:[%s2576_s11] ss:$0 sm:$0xff] }
0x1206   :  { %1988 = vmatpush3.bf16.msra.mxu1 %v1350_v11 }
0x1207   :  { %1993 = vmatprep.subr.bf16.mxu1 %v2121_v17 }
0x120a   :  { %v2112_v12 = vpop.eup %2111 }
0x120b   :  { %v1342_v13 = vmul.f32 %v2112_v12, %v2110_v7  ;;  %v2074_v7 = vld [vmem:[%s2575_s12 + $0x28] sm:$0xff]  }
0x120d   :  { %v1343_v14 = vpack.c.bf16 %v1342_v13, %v1342_v13 }
0x120f   :  { %1990 = vmatmul.mubr.msk.bf16.vlgmr.msra.gmra.mrb[32].mxu1 %vm240_vm7, %v1343_v14 }
0x1210   :  { %1994 = vmatpush3.bf16.msra.mxu1 %v2388_v31  ;;  %1995 = vmatprep.mubr.msk.bf16.mxu1 %vm2122_vm2, %v2121_v17 }
0x12e2   :  { %v1386_v15 = vpop.f32.mrb[32].mxu1 }
0x12e3   :  { %v1392_v18 = vpack.c.bf16 %v1386_v15, %v1386_v15  ;;  %v1991_v16 = vpop.f32.mrb[33].mxu1 }
0x12e4   :  { %v1389_v19 = vpop.f32.mrb[34].mxu1 }
0x12e5   :  { %v1992_v20 = vpop.f32.mrb[35].mxu1  ;;  %1996 = vmatmul.mubr.msk.bf16.vlgmr.msra.gmra.mrb[28].mxu1 %vm178_vm3, %v1392_v18 }
0x13b8   :  { %v1430_v60 = vpop.f32.mrb[28].mxu1 }
0x13b9   :  { %v1438_v22 = vrot.slane %v1430_v60, 3  ;;  %v1997_v23 = vpop.f32.mrb[29].mxu1 }
0x13ba   :  { %v1433_v44 = vpop.f32.mrb[30].mxu1 }
0x13bb   :  { %v1441_v31 = vsel %vm1440_vm9, %v2409_v54, %v1438_v22  ;;  %v1450_v24 = vadd.f32 %v1762_v21, %v1438_v22  ;;  %v1998_v25 = vpop.f32.mrb[31].mxu1 }
0x13bc   :  { %v1449_v26 = vadd.f32 %v1762_v21, %v1441_v31 }
0x13bd   :  { %v1459_v28 = vmul.f32 %v1763_v41, %v1450_v24 }
0x13be   :  { %v1458_v27 = vmul.f32 %v1763_v41, %v1449_v26 }
0x13bf   :  { %v2491_v33 = vadd.f32 %v1459_v28, %v2223_v3 }
0x13c0   :  { %v2486_v29 = vadd.f32 %v1458_v27, %v2221_v2 }
0x13c1   :  { %v1467_v54 = vsel %vm61_vm1, %v2491_v33, 0.0 }
0x13c2   :  { %v1464_v30 = vsel %vm57_vm0, %v2486_v29, 0.0 }
0x13c3   :  { %1465 = vadd.xlane.f32.xlu1 %v1464_v30 }
0x13c7   :  { %1468 = vadd.xlane.f32.xlu1 %v1467_v54 }
0x1450   :  { %v1466_v34 = vpop.xlane.xlu1 %1465 }
0x1451   :  { %v1470_v35 = vmul.f32 0.03125, %v1466_v34 }
0x1453   :  { %v1472_v36 = vsub.f32 %v2486_v29, %v1470_v35  ;;  %v1770_v35 = vld [vmem:[%s2577_s13] ss:$0 sm:$0xff] }
0x1454   :  { %v1469_v38 = vpop.xlane.xlu1 %1468 }
0x1455   :  { %v1471_v39 = vmul.f32 0.03125, %v1469_v38  ;;  %v1474_v37 = vmul.f32 %v1472_v36, %v1472_v36  ;;  %v1779_v38 = vld [vmem:[%s2578_s14] ss:$0 sm:$0xff] }
0x1457   :  { %v1473_v2 = vsub.f32 %v2491_v33, %v1471_v39  ;;  %v1476_v40 = vsel %vm57_vm0, %v1474_v37, 0.0 }
0x1458   :  { %1477 = vadd.xlane.f32.xlu1 %v1476_v40 }
0x1459   :  { %v1475_v42 = vmul.f32 %v1473_v2, %v1473_v2 }
0x145b   :  { %v1479_v3 = vsel %vm61_vm1, %v1475_v42, 0.0 }
0x145c   :  { %1480 = vadd.xlane.f32.xlu1 %v1479_v3 }
0x14e5   :  { %v1478_v0 = vpop.xlane.xlu1 %1477 }
0x14e6   :  { %v1482_v46 = vmul.f32 0.03125, %v1478_v0 }
0x14e8   :  { %v1484_v47 = vadd.f32 1e-05, %v1482_v46 }
0x14e9   :  { %v1481_v48 = vpop.xlane.xlu1 %1480 }
0x14ea   :  { %2113 = vrsqrt.f32 %v1484_v47  ;;  %v1483_v49 = vmul.f32 0.03125, %v1481_v48 }
0x14ec   :  { %v1485_v50 = vadd.f32 1e-05, %v1483_v49 }
0x14ee   :  { %2115 = vrsqrt.f32 %v1485_v50 }
0x14f4   :  { %v2114_v51 = vpop.eup %2113 }
0x14f5   :  { %v1488_v52 = vmul.f32 %v2114_v51, %v1472_v36 }
0x14f7   :  { %v1496_v56 = vmul.f32 %v1764_v53, %v1488_v52 }
0x14f8   :  { %v2116_v55 = vpop.eup %2115 }
0x14f9   :  { %v1489_v57 = vmul.f32 %v2116_v55, %v1473_v2  ;;  %v1504_v59 = vadd.f32 %v1765_v58, %v1496_v56 }
0x14fb   :  { %v1497_v32 = vmul.f32 %v1764_v53, %v1489_v57 }
0x14fd   :  { %v1505_v61 = vadd.f32 %v1765_v58, %v1497_v32 }
0x14ff   :  { %v1510_v62 = vpack.c.bf16 %v1505_v61, %v1504_v59 }
0x1501   :  { %2004 = vmatmul.mubr.msk.bf16.vlgmr.msra.gmra.mrb[40].mxu0 %vm57_vm0, %v1510_v62 }
0x1502   :  { %2023 = vmatprep.mubr.msk.bf16.mxu0 %vm2122_vm2, %v2121_v17  ;;  %2008 = vmatpush3.bf16.msra.mxu0 %v2069_v63 }
0x1503   :  { %2009 = vmatprep.subr.bf16.mxu0 %v2121_v17 }
0x1506   :  { %2010 = vmatpush3.bf16.msra.mxu0 %v2070_v1 }
0x1507   :  { %2011 = vmatprep.subr.bf16.mxu0 %v2121_v17 }
0x150a   :  { %2012 = vmatpush3.bf16.msra.mxu0 %v2071_v4 }
0x150b   :  { %2013 = vmatprep.subr.bf16.mxu0 %v2121_v17 }
0x150e   :  { %2014 = vmatpush3.bf16.msra.mxu0 %v2072_v5 }
0x150f   :  { %2015 = vmatprep.subr.bf16.mxu0 %v2121_v17 }
0x1512   :  { %2016 = vmatpush3.bf16.msra.mxu0 %v2073_v6 }
0x1513   :  { %2017 = vmatprep.subr.bf16.mxu0 %v2121_v17 }
0x1516   :  { %2018 = vmatpush3.bf16.msra.mxu0 %v2074_v7 }
0x1517   :  { %2019 = vmatprep.subr.bf16.mxu0 %v2121_v17 }
0x151a   :  { %2020 = vmatpush3.bf16.msra.mxu0 %v2075_v8 }
0x151b   :  { %2021 = vmatprep.subr.bf16.mxu0 %v2121_v17 }
0x151e   :  { %2022 = vmatpush3.bf16.msra.mxu0 %v2076_v9 }
0x15d4   :  { %v1567_v11 = vpop.f32.mrb[40].mxu0 }
0x15d5   :  { %v1568_v12 = vadd.f32 %v1766_v10, %v1567_v11  ;;  %v2005_v13 = vpop.f32.mrb[41].mxu0 }
0x15d6   :  { %v1570_v14 = vpop.f32.mrb[42].mxu0 }
0x15d7   :  { %v1576_v15 = vmul.f32 0.044715, %v1568_v12  ;;  %v1571_v18 = vadd.f32 %v1766_v10, %v1570_v14  ;;  %v2006_v16 = vpop.f32.mrb[43].mxu0  ;;  %v1574_v26 = vmul.f32 0.5, %v1568_v12 }
0x15d9   :  { %v1578_v19 = vmul.f32 %v1576_v15, %v1568_v12  ;;  %v1577_v20 = vmul.f32 0.044715, %v1571_v18  ;;  %v1575_v27 = vmul.f32 0.5, %v1571_v18 }
0x15db   :  { %v1580_v60 = vmul.f32 %v1578_v19, %v1568_v12  ;;  %v1579_v21 = vmul.f32 %v1577_v20, %v1571_v18 }
0x15dd   :  { %v1582_v22 = vadd.f32 %v1580_v60, %v1568_v12  ;;  %v1581_v23 = vmul.f32 %v1579_v21, %v1571_v18 }
0x15df   :  { %v1584_v44 = vmul.f32 0.7978846, %v1582_v22  ;;  %v1583_v17 = vadd.f32 %v1581_v23, %v1571_v18 }
0x15e1   :  { %2117 = vtanh.f32 %v1584_v44  ;;  %v1585_v31 = vmul.f32 0.7978846, %v1583_v17 }
0x15e3   :  { %2119 = vtanh.f32 %v1585_v31 }
0x15eb   :  { %v2118_v24 = vpop.eup %2117 }
0x15ec   :  { %v1588_v41 = vadd.f32 1.0, %v2118_v24 }
0x15ed   :  { %v2120_v25 = vpop.eup %2119 }
0x15ee   :  { %v1589_v28 = vadd.f32 1.0, %v2120_v25  ;;  %v1590_v30 = vmul.f32 %v1588_v41, %v1574_v26 }
0x15f0   :  { %v1591_v54 = vmul.f32 %v1589_v28, %v1575_v27 }
0x15f2   :  { %v1608_v34 = vpack.c.bf16 %v1591_v54, %v1590_v30 }
0x15f4   :  { %2024 = vmatmul.mubr.bf16.vlgmr.msra.gmra.mrb[44].mxu0 %v1608_v34 }
0x16c7   :  { %v1698_v36 = vpop.f32.mrb[44].mxu0 }
0x16c8   :  { %v1699_v39 = vadd.f32 %v1770_v35, %v1698_v36  ;;  %v2025_v37 = vpop.f32.mrb[45].mxu0 }
0x16c9   :  { %v1701_v2 = vpop.f32.mrb[46].mxu0 }
0x16ca   :  { %v1712_v40 = vmul.f32 %v1779_v38, %v1699_v39  ;;  %v1702_v42 = vadd.f32 %v1770_v35, %v1701_v2  ;;  %v2026_v3 = vpop.f32.mrb[47].mxu0 }
0x16cc   :  { %v1714_v43 = vadd.f32 %v1712_v40, %v2486_v29  ;;  %v1713_v45 = vmul.f32 %v1779_v38, %v1702_v42 }
0x16ce   :  { %v1782_v0 = vpack.c.bf16 %v1714_v43, %v1714_v43  ;;  %v1715_v46 = vadd.f32 %v1713_v45, %v2491_v33 }
0x16d0   :  { %1725 = vst.msk [vmem:[%s2579_s15] sm:$0xf] %vm1724_vm10, %v1782_v0  ;;  %v1783_v47 = vpack.c.bf16 %v1715_v46, %v1715_v46 }
0x16d2   :  { %1727 = vst.msk [vmem:[%s2579_s15 + $0x4] sm:$0x1] %vm1726_vm11, %v1783_v47 }

// kernel: _lambda_.14
= control target key start
LH: loop header
LB: loop body
LE: loop exit
PB: predicated region body
PF: predicated region fallthrough
CT: control target
= control target key end

     0   :  { %vm33_vm0 = vcmask 261120   ;;  %vm46_vm1 = vcmask 254976   ;;  %v281_v39 = vmov 0.0   ;;  %vm282_vm2 = vmmov 0   ;;  %s387_s0 = inlined_call_operand.vmem [shape: bf16[34,32], index: 0, kind: input, shape index: {}]   ;;  %s388_s3 = inlined_call_operand.vmem [shape: bf16[32,48], index: 3, kind: input, shape index: {}]   ;;  %s389_s1 = inlined_call_operand.vmem [shape: f32[1,32], index: 1, kind: input, shape index: {}]   ;;  %s390_s2 = inlined_call_operand.vmem [shape: f32[1,32], index: 2, kind: input, shape index: {}]   ;;  %s391_s4 = inlined_call_operand.vmem [shape: f32[1,48], index: 4, kind: input, shape index: {}]   ;;  %s392_s5 = inlined_call_operand.vmem [shape: f32[34,48], index: 5, kind: output, shape index: {}]  }
   0x1   :  { %v241_v0 = vld [vmem:[%s387_s0 + $0x8] sm:$0xff]   ;;  %v234_v1 = vld [vmem:[%s387_s0] sm:$0xff]   ;;  %v25_v5 = vld [vmem:[%s387_s0 + $0x10] sm:$0x1]  ;;  %263 = vmatprep.subr.bf16.mxu1 %v281_v39  ;;  %247 = vmatprep.subr.bf16.mxu0 %v281_v39  ;;  %vm214_vm3 = vcmask 392192   ;;  %vm219_vm4 = vcmask 386048  }
   0x2   :  { %v239_v2 = vunpack.c.l.bf16 %v241_v0  ;;  %v240_v3 = vunpack.c.h.bf16 %v241_v0  ;;  %v235_v4 = vunpack.c.l.bf16 %v234_v1  ;;  %v236_v6 = vunpack.c.h.bf16 %v234_v1  ;;  %v269_v38 = vld [vmem:[%s388_s3] sm:$0xff]   ;;  %v270_v40 = vld [vmem:[%s388_s3 + $0x8] sm:$0xff]   ;;  %255 = vmatprep.mubr.msk.bf16.mxu1 %vm282_vm2, %v281_v39  ;;  %251 = vmatprep.mubr.msk.bf16.mxu0 %vm282_vm2, %v281_v39 }
   0x3   :  { %v30_v10 = vunpack.c.l.bf16 %v25_v5  ;;  %265 = vmatpush3.bf16.msra.mxu1 %v269_v38  ;;  %248 = vmatpush3.bf16.msra.mxu0 %v269_v38  ;;  %v225_v58 = vld [vmem:[%s389_s1] ss:$0 sm:$0xff] }
   0x4   :  { %v40_v7 = vsel %vm33_vm0, %v239_v2, 0.0  ;;  %v34_v8 = vsel %vm33_vm0, %v235_v4, 0.0  ;;  %v43_v9 = vsel %vm33_vm0, %v240_v3, 0.0  ;;  %v37_v11 = vsel %vm33_vm0, %v236_v6, 0.0  ;;  %264 = vmatprep.subr.bf16.mxu1 %v281_v39  ;;  %249 = vmatprep.subr.bf16.mxu0 %v281_v39  ;;  %v226_v0 = vld [vmem:[%s390_s2] ss:$0 sm:$0xff] }
   0x5   :  { %41 = vadd.xlane.f32.xlu0 %v40_v7  ;;  %35 = vadd.xlane.f32.xlu1 %v34_v8  ;;  %v47_v12 = vsel %vm46_vm1, %v30_v10, 0.0 }
   0x7   :  { %266 = vmatpush3.bf16.msra.mxu1 %v270_v40  ;;  %250 = vmatpush3.bf16.msra.mxu0 %v270_v40 }
   0x9   :  { %44 = vadd.xlane.f32.xlu0 %v43_v9  ;;  %38 = vadd.xlane.f32.xlu1 %v37_v11 }
   0xd   :  { %48 = vadd.xlane.f32.xlu0 %v47_v12 }
  0x92   :  { %v42_v13 = vpop.xlane.xlu0 %41  ;;  %v36_v14 = vpop.xlane.xlu1 %35 }
  0x93   :  { %v53_v15 = vmul.f32 0.03125, %v42_v13  ;;  %v51_v16 = vmul.f32 0.03125, %v36_v14 }
  0x95   :  { %v327_v17 = vsub.f32 %v239_v2, %v53_v15  ;;  %v329_v18 = vsub.f32 %v235_v4, %v51_v16 }
  0x96   :  { %v45_v19 = vpop.xlane.xlu0 %44  ;;  %v39_v20 = vpop.xlane.xlu1 %38 }
  0x97   :  { %v54_v21 = vmul.f32 0.03125, %v45_v19  ;;  %v63_v22 = vmul.f32 %v327_v17, %v327_v17  ;;  %v52_v23 = vmul.f32 0.03125, %v39_v20  ;;  %v61_v24 = vmul.f32 %v329_v18, %v329_v18 }
  0x99   :  { %v59_v25 = vsub.f32 %v240_v3, %v54_v21  ;;  %v72_v26 = vsel %vm33_vm0, %v63_v22, 0.0  ;;  %v336_v27 = vsub.f32 %v236_v6, %v52_v23  ;;  %v66_v31 = vsel %vm33_vm0, %v61_v24, 0.0 }
  0x9a   :  { %v49_v28 = vpop.xlane.xlu0 %48  ;;  %73 = vadd.xlane.f32.xlu1 %v72_v26 }
  0x9b   :  { %v55_v29 = vmul.f32 0.03125, %v49_v28  ;;  %v64_v30 = vmul.f32 %v59_v25, %v59_v25  ;;  %v62_v32 = vmul.f32 %v336_v27, %v336_v27 }
  0x9d   :  { %v60_v33 = vsub.f32 %v30_v10, %v55_v29  ;;  %v75_v34 = vsel %vm33_vm0, %v64_v30, 0.0  ;;  %v69_v36 = vsel %vm33_vm0, %v62_v32, 0.0 }
  0x9e   :  { %76 = vadd.xlane.f32.xlu0 %v75_v34  ;;  %67 = vadd.xlane.f32.xlu1 %v66_v31 }
  0x9f   :  { %v65_v35 = vmul.f32 %v60_v33, %v60_v33 }
  0xa1   :  { %v78_v37 = vsel %vm46_vm1, %v65_v35, 0.0 }
  0xa2   :  { %79 = vadd.xlane.f32.xlu1 %v78_v37  ;;  %70 = vadd.xlane.f32.xlu0 %v69_v36 }
 0x127   :  { %v74_v41 = vpop.xlane.xlu1 %73 }
 0x128   :  { %v83_v42 = vmul.f32 0.03125, %v74_v41 }
 0x12a   :  { %v88_v43 = vadd.f32 1e-05, %v83_v42 }
 0x12b   :  { %v77_v44 = vpop.xlane.xlu0 %76  ;;  %v68_v45 = vpop.xlane.xlu1 %67 }
 0x12c   :  { %271 = vrsqrt.f32 %v88_v43  ;;  %v84_v46 = vmul.f32 0.03125, %v77_v44  ;;  %v81_v47 = vmul.f32 0.03125, %v68_v45 }
 0x12e   :  { %v89_v48 = vadd.f32 1e-05, %v84_v46  ;;  %v86_v49 = vadd.f32 1e-05, %v81_v47 }
 0x12f   :  { %v71_v50 = vpop.xlane.xlu0 %70  ;;  %v80_v51 = vpop.xlane.xlu1 %79 }
 0x130   :  { %273 = vrsqrt.f32 %v89_v48  ;;  %v82_v52 = vmul.f32 0.03125, %v71_v50  ;;  %v85_v53 = vmul.f32 0.03125, %v80_v51 }
 0x131   :  { %275 = vrsqrt.f32 %v86_v49 }
 0x132   :  { %v87_v54 = vadd.f32 1e-05, %v82_v52  ;;  %v90_v55 = vadd.f32 1e-05, %v85_v53 }
 0x134   :  { %277 = vrsqrt.f32 %v87_v54 }
 0x135   :  { %279 = vrsqrt.f32 %v90_v55 }
 0x136   :  { %v272_v56 = vpop.eup %271 }
 0x137   :  { %v98_v57 = vmul.f32 %v272_v56, %v327_v17  ;;  %v227_v17 = vld [vmem:[%s391_s4] ss:$0 sm:$0xff] }
 0x139   :  { %v109_v62 = vmul.f32 %v225_v58, %v98_v57 }
 0x13a   :  { %v274_v59 = vpop.eup %273 }
 0x13b   :  { %v276_v60 = vpop.eup %275  ;;  %v99_v61 = vmul.f32 %v274_v59, %v59_v25  ;;  %v120_v5 = vadd.f32 %v226_v0, %v109_v62 }
 0x13c   :  { %v96_v63 = vmul.f32 %v276_v60, %v329_v18 }
 0x13d   :  { %v110_v1 = vmul.f32 %v225_v58, %v99_v61 }
 0x13e   :  { %v278_v2 = vpop.eup %277  ;;  %v107_v7 = vmul.f32 %v225_v58, %v96_v63 }
 0x13f   :  { %v280_v3 = vpop.eup %279  ;;  %v97_v4 = vmul.f32 %v278_v2, %v336_v27  ;;  %v121_v6 = vadd.f32 %v226_v0, %v110_v1 }
 0x140   :  { %v100_v8 = vmul.f32 %v280_v3, %v60_v33  ;;  %v118_v12 = vadd.f32 %v226_v0, %v107_v7 }
 0x141   :  { %v128_v9 = vpack.c.bf16 %v121_v6, %v120_v5  ;;  %v108_v10 = vmul.f32 %v225_v58, %v97_v4 }
 0x142   :  { %v111_v11 = vmul.f32 %v225_v58, %v100_v8 }
 0x143   :  { %256 = vmatmul.mubr.msk.bf16.vlgmr.msra.gmra.mrb[0].mxu1 %vm33_vm0, %v128_v9  ;;  %v119_v13 = vadd.f32 %v226_v0, %v108_v10 }
 0x144   :  { %259 = vmatprep.mubr.msk.bf16.mxu1 %vm282_vm2, %v281_v39  ;;  %v122_v15 = vadd.f32 %v226_v0, %v111_v11 }
 0x145   :  { %v127_v14 = vpack.c.bf16 %v119_v13, %v118_v12 }
 0x146   :  { %v129_v16 = vpack.c.bf16 %v122_v15, %v122_v15 }
 0x147   :  { %252 = vmatmul.mubr.msk.bf16.vlgmr.msra.gmra.mrb[0].mxu0 %vm33_vm0, %v127_v14 }
 0x14b   :  { %260 = vmatmul.mubr.msk.bf16.gmra.mrb[4].mxu1 %vm33_vm0, %v129_v16 }
 0x216   :  { %v200_v18 = vpop.f32.mrb[0].mxu1 }
 0x217   :  { %v201_v19 = vadd.f32 %v227_v17, %v200_v18  ;;  %v257_v20 = vpop.f32.mrb[1].mxu1 }
 0x218   :  { %v203_v21 = vpop.f32.mrb[2].mxu1 }
 0x219   :  { %217 = vst.msk [vmem:[%s392_s5 + $0x10] sm:$0xff] %vm214_vm3, %v201_v19  ;;  %v204_v22 = vadd.f32 %v227_v17, %v203_v21  ;;  %v258_v23 = vpop.f32.mrb[3].mxu1 }
 0x21a   :  { %v192_v24 = vpop.f32.mrb[0].mxu0 }
 0x21b   :  { %218 = vst.msk [vmem:[%s392_s5 + $0x18] sm:$0xff] %vm214_vm3, %v204_v22  ;;  %v193_v25 = vadd.f32 %v227_v17, %v192_v24  ;;  %v253_v26 = vpop.f32.mrb[1].mxu0 }
 0x21c   :  { %v195_v27 = vpop.f32.mrb[2].mxu0 }
 0x21d   :  { %215 = vst.msk [vmem:[%s392_s5] sm:$0xff] %vm214_vm3, %v193_v25  ;;  %v196_v28 = vadd.f32 %v227_v17, %v195_v27  ;;  %v254_v29 = vpop.f32.mrb[3].mxu0 }
 0x21e   :  { %v208_v30 = vpop.f32.mrb[4].mxu1 }
 0x21f   :  { %216 = vst.msk [vmem:[%s392_s5 + $0x8] sm:$0xff] %vm214_vm3, %v196_v28  ;;  %v209_v31 = vadd.f32 %v227_v17, %v208_v30  ;;  %v261_v32 = vpop.f32.mrb[5].mxu1 }
 0x220   :  { %v211_v33 = vpop.f32.mrb[6].mxu1 }
 0x221   :  { %220 = vst.msk [vmem:[%s392_s5 + $0x20] sm:$0x3] %vm219_vm4, %v209_v31  ;;  %v262_v34 = vpop.f32.mrb[7].mxu1 }

// kernel: _lambda_.15
= control target key start
LH: loop header
LB: loop body
LE: loop exit
PB: predicated region body
PF: predicated region fallthrough
CT: control target
= control target key end

     0   :  { %s458_s15 = smov 0   ;;  %s489_s0 = inlined_call_operand.vmem [shape: f32[2,16,48], index: 0, kind: input, shape index: {}]   ;;  %s490_s1 = inlined_call_operand.vmem [shape: f32[2,16,48], index: 1, kind: input, shape index: {}]   ;;  %s491_s2 = inlined_call_operand.vmem [shape: f32[2,16,1], index: 2, kind: input, shape index: {}]   ;;  %s492_s3 = inlined_call_operand.vmem [shape: f32[2,1,1], index: 3, kind: output, shape index: {0}]   ;;  %s493_s4 = inlined_call_operand.vmem [shape: f32[2,1,1], index: 4, kind: output, shape index: {1}]  }
   0x1 LB: > { %s394_s16 = sadd.s32 4294967295, %s430_s15   ;;  %p398_p0 = scmp.ge.s32.totalorder %s430_s15, 1  ;;  %s430_s15 = sphi %s458_s15, %s15_s15  }
   0x2   : > { %p185_p1 = scmp.lt.s32.totalorder %s430_s15, 3 }
   0x4   : > { %p186_p2 = pnand %p398_p0, %p185_p1 }
   0x5   : > { %p222_p3 = scmp.lt.s32.totalorder (!%p186_p2), %s394_s16, 1  ;;  %v432_v0 = vmov (!%p186_p2), 0   ;;  %vm283_vm0 = vcmask (!%p186_p2), 7168   ;;  %vm265_vm1 = vcmask (!%p186_p2), 392192   ;;  %vm281_vm2 = vcmask (!%p186_p2), 0  }
   0x6   : > { %189 = sbr.rel (%p186_p2) target bundleno = 364 (0x16c), region = 32  ;;  %423 = vset.pattern.permute.xlu0 (!%p186_p2), %v432_v0 }
   0xd   : > { %s495_s16 = smov (!%p222_p3, %s394_s16), 1 }
   0xe   : > { %s407_s17 = sshll.u32 %s495_s16, 4  ;;  %s239_s30 = scalar_lea.vmem %s492_s3, %s495_s16 }
   0xf   : > { %s236_s20 = scalar_lea.vmem %s491_s2, %s407_s17  ;;  %s226_s23 = scalar_lea.vmem %s489_s0, %s407_s17 }
  0x10   : > { %v251_v1 = vld [vmem:[%s236_s20] sm:$0xff]  ;;  %v252_v2 = vld [vmem:[%s236_s20 + $0x8] sm:$0xff]  ;;  %s231_s26 = scalar_lea.vmem %s490_s1, %s407_s17  ;;  %s242_s7 = scalar_lea.vmem %s493_s4, %s495_s16 }
  0x11   : > { %255 = vperm.xlu0 %423, %v251_v1   ;;  %v284_v3 = vsel %vm283_vm0, %v251_v1, 0.0  ;;  %v285_v4 = vsel %vm283_vm0, %v252_v2, 0.0  ;;  %v243_v6 = vld [vmem:[%s226_s23] sm:$0xff]  ;;  %v244_v8 = vld [vmem:[%s226_s23 + $0x8] sm:$0xff] }
  0x12   : > { %v286_v5 = vadd.f32 %v285_v4, %v284_v3  ;;  %v245_v7 = vld [vmem:[%s231_s26] sm:$0xff]  ;;  %v246_v9 = vld [vmem:[%s231_s26 + $0x8] sm:$0xff] }
  0x13   : > { %v247_v10 = vsub.f32 %v243_v6, %v245_v7  ;;  %v248_v11 = vsub.f32 %v244_v8, %v246_v9 }
  0x15   : > { %260 = vperm.xlu0 %423, %v252_v2   ;;  %v249_v12 = vmul.f32 %v247_v10, %v247_v10  ;;  %v250_v14 = vmul.f32 %v248_v11, %v248_v11 }
  0x90   : > { %v256_v13 = vpop.permute.xlu0 %255 }
  0x91   : > { %v263_v15 = vmul.f32 %v256_v13, %v249_v12 }
  0x93   : > { %v266_v18 = vsel %vm265_vm1, %v263_v15, 0.0 }
  0x94   : > { %v261_v16 = vpop.permute.xlu0 %260 }
  0x95   : > { %v264_v17 = vmul.f32 %v261_v16, %v250_v14 }
  0x97   : > { %v267_v19 = vsel %vm265_vm1, %v264_v17, 0.0 }
  0x98   : > { %v268_v20 = vadd.f32 %v267_v19, %v266_v18 }
  0x9a   : > { %269 = vadd.xlane.f32.xlu1 %v268_v20 }
  0x9e   : > { %287 = vadd.xlane.f32.xlu1 %v286_v5 }
 0x127   : > { %v270_v21 = vpop.xlane.xlu1 %269 }
 0x128   : > { %v271_v22 = vrot.slane %v270_v21, 4 }
 0x12a   : > { %v272_v23 = vadd.f32 %v271_v22, %v270_v21 }
 0x12b   : > { %v288_v24 = vpop.xlane.xlu1 %287 }
 0x12c   : > { %v273_v25 = vrot.slane %v272_v23, 2  ;;  %v289_v26 = vrot.slane %v288_v24, 4 }
 0x12e   : > { %v290_v27 = vadd.f32 %v289_v26, %v288_v24  ;;  %v274_v28 = vadd.f32 %v273_v25, %v272_v23 }
 0x130   : > { %v291_v29 = vrot.slane %v290_v27, 2  ;;  %v275_v30 = vrot.slane %v274_v28, 1 }
 0x132   : > { %v292_v31 = vadd.f32 %v291_v29, %v290_v27  ;;  %v276_v32 = vadd.f32 %v275_v30, %v274_v28 }
 0x134   : > { %410 = vpush %v276_v32  ;;  %v293_v33 = vrot.slane %v292_v31, 1 }
 0x136   : > { %v294_v34 = vadd.f32 %v293_v33, %v292_v31 }
 0x138   : > { %412 = vpush %v294_v34 }
 0x165   : > { %s411_s27 = spop %410 }
 0x166   : > { %v278_v35 = vstv %s411_s27 }
 0x167   : > { %v280_v36 = vmul.f32 0.020833334, %v278_v35 }
 0x169   : > { %282 = vst.msk [vmem:[%s239_s30] sm:$0x1] %vm281_vm2, %v280_v36  ;;  %s413_s8 = spop %412 }
 0x16a   : > { %v296_v37 = vstv %s413_s8 }
 0x16b   : > { %297 = vst.msk [vmem:[%s242_s7] sm:$0x1] %vm281_vm2, %v296_v37 }
 0x16c PF: > { %s15_s15 = sadd.s32 1, %s430_s15  }
 0x16d   : > { %p12_p4 = scmp.ge.s32.totalorder %s15_s15, 4  }
 0x16f   :  { %14 = sbr.rel (!%p12_p4) target bundleno = 1 (0x1), region = 80 }

// kernel: _lambda_.12
= control target key start
LH: loop header
LB: loop body
LE: loop exit
PB: predicated region body
PF: predicated region fallthrough
CT: control target
= control target key end

     0   :  { %vm63_vm0 = vcmask 261120   ;;  %vm76_vm1 = vcmask 254976   ;;  %v3133_v33 = vmov 0.0   ;;  %vm3134_vm2 = vmmov 0   ;;  %s3135_s30 = smov 96   ;;  %s3137_s16 = smov 88   ;;  %s3842_s0 = inlined_call_operand.vmem [shape: bf16[34,32], index: 0, kind: input, shape index: {}]   ;;  %s3843_s3 = inlined_call_operand.vmem [shape: bf16[32,96], index: 3, kind: input, shape index: {}]   ;;  %s3844_s1 = inlined_call_operand.vmem [shape: f32[1,32], index: 1, kind: input, shape index: {}]   ;;  %s3845_s2 = inlined_call_operand.vmem [shape: f32[1,32], index: 2, kind: input, shape index: {}]   ;;  %s3846_s4 = inlined_call_operand.vmem [shape: f32[1,96], index: 4, kind: input, shape index: {}]   ;;  %s3847_s5 = inlined_call_operand.vmem [shape: bf16[32,32], index: 5, kind: input, shape index: {}]   ;;  %s3848_s6 = inlined_call_operand.vmem [shape: f32[1,32], index: 6, kind: input, shape index: {}]   ;;  %s3849_s7 = inlined_call_operand.vmem [shape: f32[1,32], index: 7, kind: input, shape index: {}]   ;;  %s3850_s10 = inlined_call_operand.vmem [shape: bf16[32,128], index: 10, kind: input, shape index: {}]   ;;  %s3851_s8 = inlined_call_operand.vmem [shape: f32[1,32], index: 8, kind: input, shape index: {}]   ;;  %s3852_s9 = inlined_call_operand.vmem [shape: f32[1,32], index: 9, kind: input, shape index: {}]   ;;  %s3853_s12 = inlined_call_operand.vmem [shape: bf16[128,32], index: 12, kind: input, shape index: {}]   ;;  %s3854_s11 = inlined_call_operand.vmem [shape: f32[1,128], index: 11, kind: input, shape index: {}]   ;;  %s3855_s13 = inlined_call_operand.vmem [shape: f32[1,32], index: 13, kind: input, shape index: {}]   ;;  %s3856_s14 = inlined_call_operand.vmem [shape: f32[1,32], index: 14, kind: input, shape index: {}]   ;;  %s3857_s15 = inlined_call_operand.vmem [shape: bf16[34,32], index: 15, kind: output, shape index: {}]  }
   0x1   :  { %v2592_v0 = vld [vmem:[%s3842_s0] sm:$0xff]   ;;  %v2599_v1 = vld [vmem:[%s3842_s0 + $0x8] sm:$0xff]   ;;  %v55_v22 = vld [vmem:[%s3842_s0 + $0x10] sm:$0x1]  ;;  %2709 = vmatprep.subr.bf16.mxu0 %v3133_v33  ;;  %2713 = vmatprep.mubr.msk.bf16.mxu0 %vm3134_vm2, %v3133_v33  ;;  %vm256_vm3 = vcmask 64512   ;;  %vm317_vm5 = vcmask 138240  }
   0x2   :  { %v3233_v2 = vunpack.c.l.bf16 %v2592_v0  ;;  %v3235_v3 = vunpack.c.l.bf16 %v2599_v1  ;;  %v3237_v4 = vunpack.c.h.bf16 %v2592_v0  ;;  %v3239_v5 = vunpack.c.h.bf16 %v2599_v1  ;;  %v2995_v34 = vld [vmem:[%s3843_s3] sm:$0xff]   ;;  %v2996_v35 = vld [vmem:[%s3843_s3 + $0x8] sm:$0xff]   ;;  %s3138_s17 = smov 64   ;;  %s3139_s18 = smov 56  }
   0x3   :  { %v3262_v28 = vunpack.c.l.bf16 %v55_v22  ;;  %2710 = vmatpush3.bf16.msra.mxu0 %v2995_v34  ;;  %v2505_v55 = vld [vmem:[%s3844_s1] ss:$0 sm:$0xff]  ;;  %vm1159_vm4 = vsmask.f32 7424  ;;  %vm324_vm6 = vcmask 131072   ;;  %vm594_vm7 = vcmask 1043456  }
   0x4   :  { %v64_v6 = vsel %vm63_vm0, %v3233_v2, 0.0  ;;  %v70_v7 = vsel %vm63_vm0, %v3235_v3, 0.0  ;;  %v67_v8 = vsel %vm63_vm0, %v3237_v4, 0.0  ;;  %v73_v9 = vsel %vm63_vm0, %v3239_v5, 0.0  ;;  %2711 = vmatprep.subr.bf16.mxu0 %v3133_v33  ;;  %v2506_v60 = vld [vmem:[%s3845_s2] ss:$0 sm:$0xff] }
   0x5   :  { %65 = vadd.xlane.f32.xlu0 %v64_v6  ;;  %71 = vadd.xlane.f32.xlu1 %v70_v7  ;;  %v77_v31 = vsel %vm76_vm1, %v3262_v28, 0.0  ;;  %s3140_s21 = smov 80   ;;  %s3141_s22 = smov 112   ;;  %vm365_vm8 = vcmask 1040384   ;;  %vm2494_vm9 = vcmask 257024   ;;  %vm2499_vm10 = vcmask 253952  }
   0x6   :  { %s3142_s23 = smov 72   ;;  %s3143_s0 = smov 104  }
   0x7   :  { %2712 = vmatpush3.bf16.msra.mxu0 %v2996_v35  ;;  %s3145_s26 = smov 48   ;;  %s3146_s3 = smov 40  }
   0x9   :  { %68 = vadd.xlane.f32.xlu0 %v67_v8  ;;  %74 = vadd.xlane.f32.xlu1 %v73_v9 }
  0x92   :  { %v66_v10 = vpop.xlane.xlu0 %65  ;;  %v72_v11 = vpop.xlane.xlu1 %71 }
  0x93   :  { %v81_v12 = vmul.f32 0.03125, %v66_v10  ;;  %v83_v13 = vmul.f32 0.03125, %v72_v11 }
  0x95   :  { %v86_v14 = vsub.f32 %v3233_v2, %v81_v12  ;;  %v3251_v15 = vsub.f32 %v3235_v3, %v83_v13 }
  0x96   :  { %v69_v16 = vpop.xlane.xlu0 %68  ;;  %v75_v17 = vpop.xlane.xlu1 %74 }
  0x97   :  { %v82_v18 = vmul.f32 0.03125, %v69_v16  ;;  %v84_v19 = vmul.f32 0.03125, %v75_v17  ;;  %v91_v20 = vmul.f32 %v86_v14, %v86_v14  ;;  %v93_v21 = vmul.f32 %v3251_v15, %v3251_v15 }
  0x99   :  { %v87_v23 = vsub.f32 %v3237_v4, %v82_v18  ;;  %v89_v24 = vsub.f32 %v3239_v5, %v84_v19  ;;  %v96_v25 = vsel %vm63_vm0, %v91_v20, 0.0  ;;  %v102_v26 = vsel %vm63_vm0, %v93_v21, 0.0  ;;  %v2507_v21 = vld [vmem:[%s3846_s4] ss:$0 sm:$0xff]  ;;  %s3136_s4 = smov 120  }
  0x9a   :  { %97 = vadd.xlane.f32.xlu0 %v96_v25 }
  0x9b   :  { %v92_v27 = vmul.f32 %v87_v23, %v87_v23  ;;  %v94_v29 = vmul.f32 %v89_v24, %v89_v24 }
  0x9d   :  { %v99_v30 = vsel %vm63_vm0, %v92_v27, 0.0  ;;  %v105_v32 = vsel %vm63_vm0, %v94_v29, 0.0 }
  0x9e   :  { %103 = vadd.xlane.f32.xlu0 %v102_v26  ;;  %100 = vadd.xlane.f32.xlu1 %v99_v30 }
  0xa2   :  { %78 = vadd.xlane.f32.xlu0 %v77_v31  ;;  %106 = vadd.xlane.f32.xlu1 %v105_v32 }
 0x127   :  { %v98_v36 = vpop.xlane.xlu0 %97 }
 0x128   :  { %v111_v37 = vmul.f32 0.03125, %v98_v36 }
 0x12a   :  { %v116_v38 = vadd.f32 1e-05, %v111_v37 }
 0x12b   :  { %v101_v39 = vpop.xlane.xlu1 %100  ;;  %v104_v40 = vpop.xlane.xlu0 %103 }
 0x12c   :  { %3007 = vrsqrt.f32 %v116_v38  ;;  %v112_v41 = vmul.f32 0.03125, %v101_v39  ;;  %v113_v42 = vmul.f32 0.03125, %v104_v40 }
 0x12e   :  { %v117_v43 = vadd.f32 1e-05, %v112_v41  ;;  %v118_v44 = vadd.f32 1e-05, %v113_v42 }
 0x12f   :  { %v107_v45 = vpop.xlane.xlu1 %106  ;;  %v79_v46 = vpop.xlane.xlu0 %78 }
 0x130   :  { %3009 = vrsqrt.f32 %v117_v43  ;;  %v114_v47 = vmul.f32 0.03125, %v107_v45  ;;  %v85_v48 = vmul.f32 0.03125, %v79_v46 }
 0x131   :  { %3011 = vrsqrt.f32 %v118_v44 }
 0x132   :  { %v119_v49 = vadd.f32 1e-05, %v114_v47  ;;  %v90_v50 = vsub.f32 %v3262_v28, %v85_v48 }
 0x134   :  { %3013 = vrsqrt.f32 %v119_v49  ;;  %v95_v51 = vmul.f32 %v90_v50, %v90_v50 }
 0x136   :  { %v3008_v52 = vpop.eup %3007  ;;  %v108_v53 = vsel %vm76_vm1, %v95_v51, 0.0 }
 0x137   :  { %109 = vadd.xlane.f32.xlu1 %v108_v53  ;;  %v126_v54 = vmul.f32 %v3008_v52, %v86_v14 }
 0x139   :  { %v137_v58 = vmul.f32 %v2505_v55, %v126_v54 }
 0x13a   :  { %v3010_v56 = vpop.eup %3009 }
 0x13b   :  { %v127_v57 = vmul.f32 %v3010_v56, %v87_v23  ;;  %v3012_v59 = vpop.eup %3011  ;;  %v148_v63 = vadd.f32 %v2506_v60, %v137_v58 }
 0x13c   :  { %v128_v1 = vmul.f32 %v3012_v59, %v3251_v15 }
 0x13d   :  { %v138_v61 = vmul.f32 %v2505_v55, %v127_v57 }
 0x13e   :  { %v3014_v62 = vpop.eup %3013  ;;  %v139_v9 = vmul.f32 %v2505_v55, %v128_v1 }
 0x13f   :  { %v149_v0 = vadd.f32 %v2506_v60, %v138_v61  ;;  %v129_v6 = vmul.f32 %v3014_v62, %v89_v24 }
 0x140   :  { %v150_v11 = vadd.f32 %v2506_v60, %v139_v9 }
 0x141   :  { %v157_v7 = vpack.c.bf16 %v149_v0, %v148_v63  ;;  %v140_v8 = vmul.f32 %v2505_v55, %v129_v6 }
 0x143   :  { %2714 = vmatmul.mubr.msk.bf16.vlgmr.msra.gmra.mrb[0].mxu0 %vm63_vm0, %v157_v7  ;;  %v151_v10 = vadd.f32 %v2506_v60, %v140_v8 }
 0x144   :  { %2717 = vmatprep.mubr.msk.bf16.mxu0 %vm3134_vm2, %v3133_v33 }
 0x145   :  { %v158_v12 = vpack.c.bf16 %v151_v10, %v150_v11 }
 0x14b   :  { %2718 = vmatmul.mubr.msk.bf16.gmra.mrb[4].mxu0 %vm63_vm0, %v158_v12 }
 0x14c   :  { %2721 = vmatprep.mubr.msk.bf16.mxu0 %vm3134_vm2, %v3133_v33 }
 0x1c4   :  { %v110_v13 = vpop.xlane.xlu1 %109 }
 0x1c5   :  { %v115_v14 = vmul.f32 0.03125, %v110_v13 }
 0x1c7   :  { %v120_v15 = vadd.f32 1e-05, %v115_v14 }
 0x1c9   :  { %3015 = vrsqrt.f32 %v120_v15 }
 0x1d3   :  { %v3016_v16 = vpop.eup %3015 }
 0x1d4   :  { %v130_v17 = vmul.f32 %v3016_v16, %v90_v50 }
 0x1d6   :  { %v141_v18 = vmul.f32 %v2505_v55, %v130_v17 }
 0x1d8   :  { %v152_v19 = vadd.f32 %v2506_v60, %v141_v18 }
 0x1da   :  { %v159_v20 = vpack.c.bf16 %v152_v19, %v152_v19 }
 0x1dc   :  { %2722 = vmatmul.mubr.msk.bf16.gmra.mrb[8].mxu0 %vm63_vm0, %v159_v20 }
 0x216   :  { %v222_v22 = vpop.f32.mrb[0].mxu0 }
 0x217   :  { %v2715_v23 = vpop.f32.mrb[1].mxu0  ;;  %v223_v25 = vadd.f32 %v2507_v21, %v222_v22 }
 0x218   :  { %v225_v24 = vpop.f32.mrb[2].mxu0 }
 0x219   :  { %v226_v26 = vadd.f32 %v2507_v21, %v225_v24  ;;  %v2716_v27 = vpop.f32.mrb[3].mxu0 }
 0x21b   :  { %v3297_v29 = vpack.c.bf16 %v226_v26, %v223_v25 }
 0x21d   :  { %252 = vrot.lane.b32.xlu0 %v3297_v29, %s3135_s30  ;;  %2729 = vmatprep.mubr.msk.bf16.mxu0 %vm256_vm3, %v3297_v29 }
 0x21e   :  { %v230_v30 = vpop.f32.mrb[4].mxu0 }
 0x21f   :  { %v231_v31 = vadd.f32 %v2507_v21, %v230_v30  ;;  %v2719_v32 = vpop.f32.mrb[5].mxu0 }
 0x220   :  { %v233_v34 = vpop.f32.mrb[6].mxu0 }
 0x221   :  { %v3303_v35 = vpack.c.bf16 %v231_v31, %v231_v31  ;;  %v234_v36 = vadd.f32 %v2507_v21, %v233_v34  ;;  %421 = vrot.lane.b32.xlu0 %v3297_v29, %s3136_s4  ;;  %v2720_v37 = vpop.f32.mrb[7].mxu0 }
 0x223   :  { %v1157_v38 = vpack.c.bf16 %v234_v36, %v231_v31  ;;  %254 = vrot.lane.b32.xlu1 %v3303_v35, %s3135_s30 }
 0x225   :  { %v1163_v48 = vshll.u32 %v1157_v38, 16  ;;  %v1161_v57 = vshrl.u32 %v1157_v38, 16 }
 0x227   :  { %425 = vrot.lane.b32.xlu1 %v3297_v29, %s3137_s16  ;;  %v1165_v54 = vrot.slane %v1163_v48, 1 }
 0x229   :  { %v1166_v59 = vor.u32 %v1165_v54, %v1161_v57 }
 0x22b   :  { %427 = vrot.lane.b32.xlu1 %v3303_v35, %s3137_s16 }
 0x22f   :  { %423 = vrot.lane.b32.xlu1 %v3303_v35, %s3136_s4 }
 0x28f   :  { %v253_v39 = vpop.permute.xlu0 %252 }
 0x290   :  { %2957 = vmatprep.subr.msk.bf16.mxu0 %vm256_vm3, %v253_v39  ;;  %v264_v40 = vsel %vm256_vm3, %v253_v39, 0 }
 0x291   :  { %2726 = vmatpush3.bf16.xpose.msra.mxu0 %v264_v40 }
 0x293   :  { %v422_v44 = vpop.permute.xlu0 %421 }
 0x295   :  { %v255_v41 = vpop.permute.xlu1 %254 }
 0x296   :  { %2958 = vmatprep.subr.msk.bf16.mxu0 %vm256_vm3, %v255_v41  ;;  %v267_v42 = vsel %vm256_vm3, %v255_v41, 0 }
 0x299   :  { %v426_v43 = vpop.permute.xlu1 %425  ;;  %2728 = vmatpush3.bf16.xpose.msra.mxu0 %v267_v42 }
 0x29a   :  { %2959 = vmatprep.subr.msk.bf16.mxu0 %vm256_vm3, %v426_v43  ;;  %v436_v45 = vsel %vm256_vm3, %v426_v43, 0 }
 0x29d   :  { %v428_v46 = vpop.permute.xlu1 %427 }
 0x29e   :  { %v439_v47 = vsel %vm256_vm3, %v428_v46, 0 }
 0x2a0   :  { %2730 = vmatmul.mubr.msk.bf16.vlgmr.msra.gmra.mrb[12].mxu0 %vm256_vm3, %v3303_v35 }
 0x2a1   :  { %2742 = vmatpush3.bf16.xpose.msra.mxu0 %v436_v45  ;;  %2745 = vmatprep.mubr.msk.bf16.mxu0 %vm256_vm3, %v422_v44  ;;  %v424_v49 = vpop.permute.xlu1 %423 }
 0x2a2   :  { %2960 = vmatprep.subr.msk.bf16.mxu0 %vm256_vm3, %v428_v46 }
 0x2a9   :  { %2744 = vmatpush3.bf16.xpose.msra.mxu0 %v439_v47 }
 0x2af   :  { %v238_v50 = vpop.f32.mrb[8].mxu0 }
 0x2b0   :  { %v239_v51 = vadd.f32 %v2507_v21, %v238_v50  ;;  %2746 = vmatmul.mubr.msk.bf16.vlgmr.msra.gmra.mrb[16].mxu0 %vm256_vm3, %v424_v49  ;;  %v2723_v52 = vpop.f32.mrb[9].mxu0  ;;  %v3366_v50 = vld [vmem:[%s3847_s5 + $0x4] sm:$0xf] }
 0x2b1   :  { %v241_v53 = vpop.f32.mrb[10].mxu0  ;;  %2961 = vmatprep.subr.msk.bf16.mxu0 %vm594_vm7, %v3366_v50 }
 0x2b2   :  { %v3327_v55 = vpack.c.bf16 %v239_v51, %v239_v51  ;;  %v2724_v56 = vpop.f32.mrb[11].mxu0  ;;  %v3372_v51 = vsel %vm594_vm7, %v3366_v50, 0 }
 0x2b3   :  { %2758 = vmatpush3.bf16.msra.mxu0 %v3372_v51 }
 0x2b4   :  { %v1168_v58 = vshll.u32 %v3327_v55, 16 }
 0x2b6   :  { %v1170_v60 = vrot.slane %v1168_v58, 1 }
 0x2b8   :  { %v3330_v61 = vsel %vm1159_vm4, %v1166_v59, %v1170_v60 }
 0x373   :  { %v2731_v62 = vpop.f32.mrb[12].mxu0 }
 0x374   :  { %v303_v63 = vpop.f32.mrb[13].mxu0  ;;  %v325_v8 = vsel %vm324_vm6, %v2731_v62, -inf }
 0x375   :  { %v2732_v0 = vpop.f32.mrb[14].mxu0  ;;  %v318_v1 = vsel %vm317_vm5, %v303_v63, -inf }
 0x376   :  { %319 = vmax.xlane.f32.xlu0 %v318_v1  ;;  %v306_v6 = vpop.f32.mrb[15].mxu0  ;;  %v3144_v0 = vmov 0  }
 0x377   :  { %v321_v7 = vsel %vm317_vm5, %v306_v6, -inf  ;;  %v3397_v1 = vsel %vm365_vm8, 65535, %v3144_v0 }
 0x378   :  { %322 = vmax.xlane.f32.xlu1 %v321_v7 }
 0x37a   :  { %326 = vmax.xlane.f32.xlu0 %v325_v8 }
 0x383   :  { %v2747_v9 = vpop.f32.mrb[16].mxu0 }
 0x384   :  { %v475_v10 = vpop.f32.mrb[17].mxu0  ;;  %v495_v11 = vsel %vm324_vm6, %v2747_v9, -inf }
 0x385   :  { %496 = vmax.xlane.f32.xlu1 %v495_v11  ;;  %v2748_v12 = vpop.f32.mrb[18].mxu0  ;;  %v489_v13 = vsel %vm317_vm5, %v475_v10, -inf }
 0x386   :  { %490 = vmax.xlane.f32.xlu0 %v489_v13  ;;  %v478_v14 = vpop.f32.mrb[19].mxu0 }
 0x387   :  { %v492_v15 = vsel %vm317_vm5, %v478_v14, -inf }
 0x38a   :  { %493 = vmax.xlane.f32.xlu0 %v492_v15 }
 0x403   :  { %v320_v16 = vpop.xlane.xlu0 %319 }
 0x404   :  { %v328_v18 = vsub.f32 %v303_v63, %v320_v16 }
 0x405   :  { %v323_v17 = vpop.xlane.xlu1 %322 }
 0x406   :  { %v329_v19 = vsub.f32 %v306_v6, %v323_v17  ;;  %v331_v23 = vmul.f32 1.442695, %v328_v18 }
 0x407   :  { %v327_v20 = vpop.xlane.xlu0 %326 }
 0x408   :  { %v333_v21 = vmul.f32 1.442695, %v329_v19  ;;  %v330_v22 = vsub.f32 %v2731_v62, %v327_v20 }
 0x40a   :  { %3017 = vpow2.f32 %v333_v21  ;;  %v335_v24 = vmul.f32 1.442695, %v330_v22 }
 0x40c   :  { %3019 = vpow2.f32 %v335_v24 }
 0x40d   :  { %3021 = vpow2.f32 %v331_v23 }
 0x412   :  { %v497_v25 = vpop.xlane.xlu1 %496 }
 0x413   :  { %v500_v26 = vsub.f32 %v2747_v9, %v497_v25  ;;  %v491_v27 = vpop.xlane.xlu0 %490  ;;  %v3413_v25 = vld [vmem:[%s3847_s5] sm:$0xf] }
 0x414   :  { %v3338_v30 = vpop.eup %3017  ;;  %v498_v31 = vsub.f32 %v475_v10, %v491_v27 }
 0x415   :  { %v505_v32 = vmul.f32 1.442695, %v500_v26  ;;  %v340_v34 = vsel %vm317_vm5, %v3338_v30, 0.0  ;;  %v3419_v26 = vsel %vm594_vm7, %v3413_v25, 0 }
 0x416   :  { %v3342_v36 = vpop.eup %3019  ;;  %v501_v37 = vmul.f32 1.442695, %v498_v31  ;;  %341 = vadd.xlane.f32.xlu1 %v340_v34 }
 0x417   :  { %3023 = vpow2.f32 %v505_v32  ;;  %v494_v38 = vpop.xlane.xlu0 %493  ;;  %v343_v39 = vsel %vm324_vm6, %v3342_v36, 0.0  ;;  %v3022_v40 = vpop.eup %3021 }
 0x418   :  { %v499_v41 = vsub.f32 %v478_v14, %v494_v38  ;;  %344 = vadd.xlane.f32.xlu0 %v343_v39  ;;  %3025 = vpow2.f32 %v501_v37  ;;  %v337_v43 = vsel %vm317_vm5, %v3022_v40, 0.0 }
 0x41a   :  { %v503_v42 = vmul.f32 1.442695, %v499_v41 }
 0x41c   :  { %3027 = vpow2.f32 %v503_v42  ;;  %338 = vadd.xlane.f32.xlu0 %v337_v43 }
 0x421   :  { %v3347_v44 = vpop.eup %3023 }
 0x422   :  { %v513_v45 = vsel %vm324_vm6, %v3347_v44, 0.0  ;;  %v3351_v46 = vpop.eup %3025 }
 0x423   :  { %514 = vadd.xlane.f32.xlu1 %v513_v45  ;;  %v507_v48 = vsel %vm317_vm5, %v3351_v46, 0.0 }
 0x426   :  { %v3353_v47 = vpop.eup %3027 }
 0x427   :  { %508 = vadd.xlane.f32.xlu1 %v507_v48  ;;  %v510_v49 = vsel %vm317_vm5, %v3353_v47, 0.0 }
 0x428   :  { %511 = vadd.xlane.f32.xlu0 %v510_v49 }
 0x438   :  { %356 = vrot.lane.b32.xlu1 %v3303_v35, %s3138_s17 }
 0x43c   :  { %524 = vrot.lane.b32.xlu1 %v3297_v29, %s3139_s18 }
 0x43e   :  { %354 = vrot.lane.b32.xlu0 %v3297_v29, %s3138_s17 }
 0x440   :  { %526 = vrot.lane.b32.xlu1 %v3303_v35, %s3139_s18 }
 0x442   :  { %707 = vrot.lane.b32.xlu0 %v3297_v29, %s3140_s21 }
 0x444   :  { %709 = vrot.lane.b32.xlu1 %v3303_v35, %s3140_s21 }
 0x446   :  { %703 = vrot.lane.b32.xlu0 %v3297_v29, %s3141_s22 }
 0x448   :  { %705 = vrot.lane.b32.xlu1 %v3303_v35, %s3141_s22 }
 0x44a   :  { %934 = vrot.lane.b32.xlu0 %v3297_v29, %s3142_s23 }
 0x44c   :  { %936 = vrot.lane.b32.xlu1 %v3303_v35, %s3142_s23 }
 0x44e   :  { %930 = vrot.lane.b32.xlu0 %v3297_v29, %s3143_s0 }
 0x450   :  { %932 = vrot.lane.b32.xlu1 %v3303_v35, %s3143_s0 }
 0x4a3   :  { %v342_v52 = vpop.xlane.xlu1 %341 }
 0x4a4   :  { %3029 = vrcp.f32 %v342_v52 }
 0x4a5   :  { %v345_v53 = vpop.xlane.xlu0 %344 }
 0x4a9   :  { %v339_v54 = vpop.xlane.xlu0 %338 }
 0x4aa   :  { %3031 = vrcp.f32 %v339_v54 }
 0x4ab   :  { %3033 = vrcp.f32 %v345_v53 }
 0x4ae   :  { %v3030_v57 = vpop.eup %3029 }
 0x4af   :  { %v350_v63 = vmul.f32 %v3030_v57, %v3338_v30 }
 0x4b0   :  { %v515_v56 = vpop.xlane.xlu1 %514 }
 0x4b4   :  { %v3032_v58 = vpop.eup %3031  ;;  %v509_v59 = vpop.xlane.xlu1 %508 }
 0x4b5   :  { %3035 = vrcp.f32 %v509_v59  ;;  %v512_v60 = vpop.xlane.xlu0 %511  ;;  %v349_v62 = vmul.f32 %v3032_v58, %v3022_v40  ;;  %v3034_v8 = vpop.eup %3033 }
 0x4b6   :  { %3037 = vrcp.f32 %v512_v60  ;;  %v351_v12 = vmul.f32 %v3034_v8, %v3342_v36 }
 0x4b7   :  { %3039 = vrcp.f32 %v515_v56  ;;  %v352_v6 = vpack.c.bf16 %v350_v63, %v349_v62 }
 0x4b8   :  { %v357_v7 = vpop.permute.xlu1 %356  ;;  %v353_v17 = vpack.c.bf16 %v351_v12, %v351_v12 }
 0x4b9   :  { %v369_v9 = vand.u32 %v3397_v1, %v357_v7  ;;  %2737 = vmatprep.mubr.msk.bf16.mxu1 %vm317_vm5, %v352_v6  ;;  %v355_v10 = vpop.permute.xlu0 %354 }
 0x4ba   :  { %2733 = vmatprep.subr.bf16.mxu1 %v355_v10 }
 0x4bb   :  { %2734 = vmatpush3.bf16.msra.mxu1 %v355_v10 }
 0x4bc   :  { %v525_v11 = vpop.permute.xlu1 %524  ;;  %2735 = vmatprep.subr.bf16.mxu1 %v369_v9 }
 0x4bd   :  { %v708_v13 = vpop.permute.xlu0 %707 }
 0x4be   :  { %2963 = vmatprep.subr.msk.bf16.mxu0 %vm256_vm3, %v708_v13  ;;  %v718_v43 = vsel %vm256_vm3, %v708_v13, 0 }
 0x4bf   :  { %v3036_v14 = vpop.eup %3035  ;;  %2736 = vmatpush3.bf16.msra.mxu1 %v369_v9 }
 0x4c0   :  { %v3038_v15 = vpop.eup %3037  ;;  %v527_v16 = vpop.permute.xlu1 %526  ;;  %2749 = vmatprep.subr.bf16.mxu1 %v525_v11  ;;  %v519_v18 = vmul.f32 %v3036_v14, %v3351_v46 }
 0x4c1   :  { %v3040_v19 = vpop.eup %3039  ;;  %v536_v20 = vand.u32 %v527_v16, %v3397_v1  ;;  %v520_v21 = vmul.f32 %v3038_v15, %v3353_v47 }
 0x4c2   :  { %2738 = vmatmul.mubr.msk.bf16.vlgmr.msra.gmra.mrb[0].mxu1 %vm317_vm5, %v353_v17  ;;  %v521_v23 = vmul.f32 %v3040_v19, %v3347_v44  ;;  %v704_v44 = vpop.permute.xlu0 %703 }
 0x4c3   :  { %2750 = vmatpush3.bf16.msra.mxu1 %v525_v11  ;;  %v522_v22 = vpack.c.bf16 %v520_v21, %v519_v18 }
 0x4c4   :  { %2751 = vmatprep.subr.bf16.mxu1 %v536_v20  ;;  %v523_v24 = vpack.c.bf16 %v521_v23, %v521_v23  ;;  %v710_v45 = vpop.permute.xlu1 %709 }
 0x4c5   :  { %2753 = vmatprep.mubr.msk.bf16.mxu1 %vm317_vm5, %v522_v22  ;;  %v721_v46 = vsel %vm256_vm3, %v710_v45, 0 }
 0x4c6   :  { %v935_v47 = vpop.permute.xlu0 %934 }
 0x4c7   :  { %2752 = vmatpush3.bf16.msra.mxu1 %v536_v20  ;;  %v945_v49 = vsel %vm256_vm3, %v935_v47, 0 }
 0x4c8   :  { %2962 = vmatprep.subr.msk.bf16.mxu1 %vm594_vm7, %v3413_v25  ;;  %v706_v48 = vpop.permute.xlu1 %705 }
 0x4ca   :  { %2754 = vmatmul.mubr.msk.bf16.vlgmr.msra.gmra.mrb[4].mxu1 %vm317_vm5, %v523_v24  ;;  %v931_v52 = vpop.permute.xlu0 %930 }
 0x4cb   :  { %2764 = vmatpush3.bf16.msra.mxu1 %v3419_v26 }
 0x4cc   :  { %v937_v53 = vpop.permute.xlu1 %936 }
 0x4cd   :  { %v948_v54 = vsel %vm256_vm3, %v937_v53, 0 }
 0x4d0   :  { %v933_v56 = vpop.permute.xlu1 %932 }
 0x595   :  { %v2739_v27 = vpop.f32.mrb[0].mxu1 }
 0x596   :  { %v405_v30 = vpop.f32.mrb[1].mxu1  ;;  %v420_v36 = vpack.c.bf16 %v2739_v27, %v2739_v27 }
 0x597   :  { %v2740_v31 = vpop.f32.mrb[2].mxu1 }
 0x598   :  { %v408_v32 = vpop.f32.mrb[3].mxu1 }
 0x599   :  { %v419_v34 = vpack.c.bf16 %v408_v32, %v405_v30 }
 0x59b   :  { %2765 = vmatprep.mubr.msk.bf16.mxu1 %vm256_vm3, %v419_v34 }
 0x59c   :  { %2766 = vmatmul.mubr.msk.bf16.vlgmr.msra.gmra.mrb[8].mxu1 %vm256_vm3, %v420_v36 }
 0x59d   :  { %v2755_v37 = vpop.f32.mrb[4].mxu1 }
 0x59e   :  { %v572_v38 = vpop.f32.mrb[5].mxu1  ;;  %v587_v42 = vpack.c.bf16 %v2755_v37, %v2755_v37 }
 0x59f   :  { %v2756_v39 = vpop.f32.mrb[6].mxu1 }
 0x5a0   :  { %v575_v40 = vpop.f32.mrb[7].mxu1 }
 0x5a1   :  { %v586_v41 = vpack.c.bf16 %v575_v40, %v572_v38 }
 0x5a3   :  { %2759 = vmatprep.mubr.msk.bf16.mxu0 %vm256_vm3, %v586_v41 }
 0x5a4   :  { %2760 = vmatmul.mubr.msk.bf16.vlgmr.msra.gmra.mrb[20].mxu0 %vm256_vm3, %v587_v42  ;;  %v3464_v42 = vshrl.u32 %v3327_v55, 16 }
 0x5a5   :  { %2770 = vmatpush3.bf16.xpose.msra.mxu0 %v718_v43  ;;  %2773 = vmatprep.mubr.msk.bf16.mxu0 %vm256_vm3, %v704_v44 }
 0x5a6   :  { %2964 = vmatprep.subr.msk.bf16.mxu0 %vm256_vm3, %v710_v45 }
 0x5ad   :  { %2772 = vmatpush3.bf16.xpose.msra.mxu0 %v721_v46 }
 0x5ae   :  { %2966 = vmatprep.subr.msk.bf16.mxu0 %vm256_vm3, %v935_v47 }
 0x5b4   :  { %2774 = vmatmul.mubr.msk.bf16.vlgmr.msra.gmra.mrb[24].mxu0 %vm256_vm3, %v706_v48 }
 0x5b5   :  { %2792 = vmatpush3.bf16.xpose.msra.mxu0 %v945_v49  ;;  %2795 = vmatprep.mubr.msk.bf16.mxu0 %vm256_vm3, %v931_v52 }
 0x5b6   :  { %2967 = vmatprep.subr.msk.bf16.mxu0 %vm256_vm3, %v937_v53 }
 0x5bd   :  { %2794 = vmatpush3.bf16.xpose.msra.mxu0 %v948_v54 }
 0x5c4   :  { %2796 = vmatmul.mubr.msk.bf16.vlgmr.msra.gmra.mrb[28].mxu0 %vm256_vm3, %v933_v56 }
 0x5c5   :  { %2817 = vmatprep.mubr.msk.bf16.mxu0 %vm256_vm3, %v3330_v61 }
 0x66f   :  { %v2767_v57 = vpop.f32.mrb[8].mxu1 }
 0x670   :  { %v689_v58 = vpop.f32.mrb[9].mxu1 }
 0x671   :  { %v2768_v59 = vpop.f32.mrb[10].mxu1 }
 0x672   :  { %v692_v60 = vpop.f32.mrb[11].mxu1 }
 0x677   :  { %v2761_v62 = vpop.f32.mrb[20].mxu0 }
 0x678   :  { %v3439_v63 = vadd.f32 %v2767_v57, %v2761_v62  ;;  %v632_v0 = vpop.f32.mrb[21].mxu0 }
 0x679   :  { %v3441_v6 = vadd.f32 %v689_v58, %v632_v0  ;;  %v2762_v7 = vpop.f32.mrb[22].mxu0 }
 0x67a   :  { %v635_v8 = vpop.f32.mrb[23].mxu0 }
 0x67b   :  { %v3443_v9 = vadd.f32 %v692_v60, %v635_v8 }
 0x687   :  { %v2775_v10 = vpop.f32.mrb[24].mxu0 }
 0x688   :  { %v757_v11 = vpop.f32.mrb[25].mxu0  ;;  %v777_v16 = vsel %vm324_vm6, %v2775_v10, -inf }
 0x689   :  { %v2776_v12 = vpop.f32.mrb[26].mxu0  ;;  %v771_v13 = vsel %vm317_vm5, %v757_v11, -inf }
 0x68a   :  { %772 = vmax.xlane.f32.xlu0 %v771_v13  ;;  %v760_v14 = vpop.f32.mrb[27].mxu0 }
 0x68b   :  { %v774_v15 = vsel %vm317_vm5, %v760_v14, -inf }
 0x68c   :  { %775 = vmax.xlane.f32.xlu1 %v774_v15 }
 0x68e   :  { %778 = vmax.xlane.f32.xlu0 %v777_v16 }
 0x697   :  { %v3448_v17 = vpop.f32.mrb[28].mxu0 }
 0x698   :  { %v3450_v18 = vpop.f32.mrb[29].mxu0  ;;  %v1004_v44 = vsel %vm324_vm6, %v3448_v17, -inf }
 0x699   :  { %v2798_v19 = vpop.f32.mrb[30].mxu0  ;;  %v998_v43 = vsel %vm317_vm5, %v3450_v18, -inf }
 0x69a   :  { %v3452_v20 = vpop.f32.mrb[31].mxu0 }
 0x69b   :  { %v1001_v45 = vsel %vm317_vm5, %v3452_v20, -inf }
 0x717   :  { %v773_v21 = vpop.xlane.xlu0 %772 }
 0x718   :  { %v780_v22 = vsub.f32 %v757_v11, %v773_v21 }
 0x719   :  { %v776_v23 = vpop.xlane.xlu1 %775 }
 0x71a   :  { %v783_v24 = vmul.f32 1.442695, %v780_v22  ;;  %v781_v27 = vsub.f32 %v760_v14, %v776_v23 }
 0x71b   :  { %v779_v30 = vpop.xlane.xlu0 %778 }
 0x71c   :  { %3041 = vpow2.f32 %v783_v24  ;;  %v785_v31 = vmul.f32 1.442695, %v781_v27  ;;  %v782_v32 = vsub.f32 %v2775_v10, %v779_v30 }
 0x71e   :  { %3043 = vpow2.f32 %v785_v31  ;;  %v787_v34 = vmul.f32 1.442695, %v782_v32 }
 0x720   :  { %3045 = vpow2.f32 %v787_v34 }
 0x726   :  { %v3042_v36 = vpop.eup %3041 }
 0x727   :  { %v789_v37 = vsel %vm317_vm5, %v3042_v36, 0.0 }
 0x728   :  { %v3044_v38 = vpop.eup %3043  ;;  %790 = vadd.xlane.f32.xlu0 %v789_v37 }
 0x729   :  { %v792_v40 = vsel %vm317_vm5, %v3044_v38, 0.0 }
 0x72a   :  { %v3046_v39 = vpop.eup %3045 }
 0x72b   :  { %v795_v41 = vsel %vm324_vm6, %v3046_v39, 0.0 }
 0x72c   :  { %793 = vadd.xlane.f32.xlu0 %v792_v40  ;;  %796 = vadd.xlane.f32.xlu1 %v795_v41 }
 0x73d   :  { %808 = vrot.lane.b32.xlu1 %v3303_v35, %s3145_s26 }
 0x741   :  { %1174 = vrot.lane.b32.xlu1 %v3330_v61, %s3135_s30 }
 0x742   :  { %806 = vrot.lane.b32.xlu0 %v3297_v29, %s3145_s26 }
 0x745   :  { %1176 = vrot.lane.b32.xlu1 %v3464_v42, %s3135_s30 }
 0x761   :  { %999 = vmax.xlane.f32.xlu0 %v998_v43 }
 0x765   :  { %1005 = vmax.xlane.f32.xlu0 %v1004_v44 }
 0x769   :  { %1002 = vmax.xlane.f32.xlu1 %v1001_v45 }
 0x7b5   :  { %v791_v46 = vpop.xlane.xlu0 %790 }
 0x7b6   :  { %3047 = vrcp.f32 %v791_v46 }
 0x7b9   :  { %v797_v47 = vpop.xlane.xlu1 %796  ;;  %v794_v55 = vpop.xlane.xlu0 %793 }
 0x7ba   :  { %3049 = vrcp.f32 %v797_v47 }
 0x7bb   :  { %3051 = vrcp.f32 %v794_v55 }
 0x7bd   :  { %v809_v48 = vpop.permute.xlu1 %808  ;;  %v807_v49 = vpop.permute.xlu0 %806 }
 0x7be   :  { %v818_v52 = vand.u32 %v809_v48, %v3397_v1  ;;  %2777 = vmatprep.subr.bf16.mxu1 %v807_v49 }
 0x7bf   :  { %2778 = vmatpush3.bf16.msra.mxu1 %v807_v49 }
 0x7c0   :  { %2779 = vmatprep.subr.bf16.mxu1 %v818_v52  ;;  %v3048_v56 = vpop.eup %3047 }
 0x7c1   :  { %v1175_v53 = vpop.permute.xlu1 %1174  ;;  %v801_v62 = vmul.f32 %v3048_v56, %v3042_v36 }
 0x7c2   :  { %v1185_v54 = vsel %vm256_vm3, %v1175_v53, 0  ;;  %2969 = vmatprep.subr.msk.bf16.mxu0 %vm256_vm3, %v1175_v53 }
 0x7c3   :  { %2780 = vmatpush3.bf16.msra.mxu1 %v818_v52  ;;  %2814 = vmatpush3.bf16.xpose.msra.mxu0 %v1185_v54 }
 0x7c4   :  { %v3050_v57 = vpop.eup %3049 }
 0x7c5   :  { %v3052_v58 = vpop.eup %3051  ;;  %v803_v59 = vmul.f32 %v3050_v57, %v3046_v39  ;;  %v1177_v60 = vpop.permute.xlu1 %1176 }
 0x7c6   :  { %2970 = vmatprep.subr.msk.bf16.mxu0 %vm256_vm3, %v1177_v60  ;;  %v802_v0 = vmul.f32 %v3052_v58, %v3044_v38  ;;  %v1188_v10 = vsel %vm256_vm3, %v1177_v60, 0 }
 0x7c7   :  { %v805_v7 = vpack.c.bf16 %v803_v59, %v803_v59 }
 0x7c8   :  { %v804_v8 = vpack.c.bf16 %v802_v0, %v801_v62  ;;  %v3516_v0 = vld [vmem:[%s3847_s5 + $0xc] sm:$0xf] }
 0x7ca   :  { %2781 = vmatprep.mubr.msk.bf16.mxu1 %vm317_vm5, %v804_v8 }
 0x7cb   :  { %2782 = vmatmul.mubr.msk.bf16.vlgmr.msra.gmra.mrb[12].mxu1 %vm317_vm5, %v805_v7  ;;  %2816 = vmatpush3.bf16.xpose.msra.mxu0 %v1188_v10  ;;  %v3522_v7 = vsel %vm594_vm7, %v3516_v0, 0 }
 0x7d2   :  { %2818 = vmatmul.mubr.msk.bf16.vlgmr.msra.gmra.mrb[32].mxu0 %vm256_vm3, %v3464_v42 }
 0x7ee   :  { %v1000_v11 = vpop.xlane.xlu0 %999 }
 0x7ef   :  { %v1007_v12 = vsub.f32 %v3450_v18, %v1000_v11 }
 0x7f1   :  { %v1010_v13 = vmul.f32 1.442695, %v1007_v12 }
 0x7f2   :  { %v1006_v14 = vpop.xlane.xlu0 %1005 }
 0x7f3   :  { %3053 = vpow2.f32 %v1010_v13  ;;  %v1009_v15 = vsub.f32 %v3448_v17, %v1006_v14  ;;  %v3494_v17 = vld [vmem:[%s3847_s5 + $0x8] sm:$0xf] }
 0x7f4   :  { %2965 = vmatprep.subr.msk.bf16.mxu1 %vm594_vm7, %v3494_v17 }
 0x7f5   :  { %v1014_v16 = vmul.f32 1.442695, %v1009_v15 }
 0x7f6   :  { %v1003_v19 = vpop.xlane.xlu1 %1002 }
 0x7f7   :  { %3055 = vpow2.f32 %v1014_v16  ;;  %v1008_v21 = vsub.f32 %v3452_v20, %v1003_v19  ;;  %v3500_v20 = vsel %vm594_vm7, %v3494_v17, 0 }
 0x7f8   :  { %2786 = vmatpush3.bf16.msra.mxu1 %v3500_v20 }
 0x7f9   :  { %v1012_v22 = vmul.f32 1.442695, %v1008_v21 }
 0x7fb   :  { %3057 = vpow2.f32 %v1012_v22 }
 0x7fd   :  { %v3054_v23 = vpop.eup %3053 }
 0x7fe   :  { %v1016_v24 = vsel %vm317_vm5, %v3054_v23, 0.0 }
 0x7ff   :  { %1017 = vadd.xlane.f32.xlu0 %v1016_v24 }
 0x801   :  { %v3056_v27 = vpop.eup %3055 }
 0x802   :  { %v1022_v30 = vsel %vm324_vm6, %v3056_v27, 0.0 }
 0x803   :  { %1023 = vadd.xlane.f32.xlu1 %v1022_v30 }
 0x805   :  { %v3058_v18 = vpop.eup %3057 }
 0x806   :  { %v1019_v31 = vsel %vm317_vm5, %v3058_v18, 0.0 }
 0x807   :  { %1020 = vadd.xlane.f32.xlu0 %v1019_v31 }
 0x814   :  { %1035 = vrot.lane.b32.xlu1 %v3303_v35, %s3146_s3 }
 0x81d   :  { %1033 = vrot.lane.b32.xlu0 %v3297_v29, %s3146_s3 }
 0x88c   :  { %v1018_v32 = vpop.xlane.xlu0 %1017 }
 0x88d   :  { %3059 = vrcp.f32 %v1018_v32 }
 0x890   :  { %v1024_v34 = vpop.xlane.xlu1 %1023 }
 0x894   :  { %v1021_v35 = vpop.xlane.xlu0 %1020  ;;  %v1036_v46 = vpop.permute.xlu1 %1035 }
 0x895   :  { %3061 = vrcp.f32 %v1021_v35  ;;  %v1045_v49 = vand.u32 %v1036_v46, %v3397_v1 }
 0x896   :  { %3063 = vrcp.f32 %v1024_v34 }
 0x897   :  { %v3060_v37 = vpop.eup %3059 }
 0x898   :  { %v1034_v36 = vpop.permute.xlu0 %1033  ;;  %v1028_v43 = vmul.f32 %v3060_v37, %v3054_v23 }
 0x899   :  { %2799 = vmatprep.subr.bf16.mxu1 %v1034_v36 }
 0x89e   :  { %v2783_v38 = vpop.f32.mrb[12].mxu1 }
 0x89f   :  { %v3062_v39 = vpop.eup %3061  ;;  %v854_v40 = vpop.f32.mrb[13].mxu1  ;;  %v869_v29 = vpack.c.bf16 %v2783_v38, %v2783_v38 }
 0x8a0   :  { %v2784_v41 = vpop.f32.mrb[14].mxu1  ;;  %v1029_v44 = vmul.f32 %v3062_v39, %v3058_v18  ;;  %v3064_v48 = vpop.eup %3063 }
 0x8a1   :  { %v857_v45 = vpop.f32.mrb[15].mxu1  ;;  %v1030_v54 = vmul.f32 %v3064_v48, %v3056_v27 }
 0x8a2   :  { %v868_v47 = vpack.c.bf16 %v857_v45, %v854_v40  ;;  %v1031_v55 = vpack.c.bf16 %v1029_v44, %v1028_v43 }
 0x8a3   :  { %v1032_v60 = vpack.c.bf16 %v1030_v54, %v1030_v54 }
 0x8a4   :  { %2787 = vmatprep.mubr.msk.bf16.mxu1 %vm256_vm3, %v868_v47 }
 0x8a5   :  { %2788 = vmatmul.mubr.msk.bf16.vlgmr.msra.gmra.mrb[16].mxu1 %vm256_vm3, %v869_v29  ;;  %v2819_v52 = vpop.f32.mrb[32].mxu0 }
 0x8a6   :  { %2800 = vmatpush3.bf16.msra.mxu1 %v1034_v36  ;;  %2803 = vmatprep.mubr.msk.bf16.mxu1 %vm317_vm5, %v1031_v55  ;;  %v1224_v53 = vpop.f32.mrb[33].mxu0  ;;  %v1244_v62 = vsel %vm324_vm6, %v2819_v52, -inf }
 0x8a7   :  { %2801 = vmatprep.subr.bf16.mxu1 %v1045_v49  ;;  %v2820_v56 = vpop.f32.mrb[34].mxu0  ;;  %v1238_v57 = vsel %vm317_vm5, %v1224_v53, -inf }
 0x8a8   :  { %v1227_v58 = vpop.f32.mrb[35].mxu0  ;;  %1239 = vmax.xlane.f32.xlu1 %v1238_v57 }
 0x8a9   :  { %v1241_v59 = vsel %vm317_vm5, %v1227_v58, -inf }
 0x8aa   :  { %2802 = vmatpush3.bf16.msra.mxu1 %v1045_v49  ;;  %1242 = vmax.xlane.f32.xlu0 %v1241_v59 }
 0x8ab   :  { %2968 = vmatprep.subr.msk.bf16.mxu1 %vm594_vm7, %v3516_v0 }
 0x8ad   :  { %2804 = vmatmul.mubr.msk.bf16.vlgmr.msra.gmra.mrb[20].mxu1 %vm317_vm5, %v1032_v60 }
 0x8ae   :  { %1245 = vmax.xlane.f32.xlu0 %v1244_v62  ;;  %2808 = vmatpush3.bf16.msra.mxu1 %v3522_v7 }
 0x935   :  { %v1240_v8 = vpop.xlane.xlu1 %1239 }
 0x936   :  { %v1247_v12 = vsub.f32 %v1224_v53, %v1240_v8 }
 0x937   :  { %v1243_v10 = vpop.xlane.xlu0 %1242 }
 0x938   :  { %v1248_v11 = vsub.f32 %v1227_v58, %v1243_v10  ;;  %v1250_v16 = vmul.f32 1.442695, %v1247_v12 }
 0x93a   :  { %v1252_v13 = vmul.f32 1.442695, %v1248_v11 }
 0x93b   :  { %v1246_v14 = vpop.xlane.xlu0 %1245 }
 0x93c   :  { %3065 = vpow2.f32 %v1252_v13  ;;  %v1249_v15 = vsub.f32 %v2819_v52, %v1246_v14 }
 0x93e   :  { %v1254_v19 = vmul.f32 1.442695, %v1249_v15 }
 0x940   :  { %3067 = vpow2.f32 %v1254_v19 }
 0x941   :  { %3069 = vpow2.f32 %v1250_v16 }
 0x946   :  { %v3066_v21 = vpop.eup %3065 }
 0x947   :  { %v1259_v22 = vsel %vm317_vm5, %v3066_v21, 0.0 }
 0x948   :  { %1260 = vadd.xlane.f32.xlu0 %v1259_v22 }
 0x94a   :  { %v3068_v23 = vpop.eup %3067 }
 0x94b   :  { %v1262_v24 = vsel %vm324_vm6, %v3068_v23, 0.0  ;;  %v3070_v27 = vpop.eup %3069 }
 0x94c   :  { %1263 = vadd.xlane.f32.xlu1 %v1262_v24  ;;  %v1256_v30 = vsel %vm317_vm5, %v3070_v27, 0.0 }
 0x950   :  { %1257 = vadd.xlane.f32.xlu1 %v1256_v30 }
 0x95e   :  { %1273 = vrot.lane.b32.xlu0 %v3330_v61, %s3138_s17 }
 0x961   :  { %1275 = vrot.lane.b32.xlu1 %v3464_v42, %s3138_s17 }
 0x962   :  { %1337 = vrot.lane.b32.xlu0 %v3330_v61, %s3136_s4 }
 0x965   :  { %1341 = vrot.lane.b32.xlu1 %v3330_v61, %s3137_s16 }
 0x966   :  { %1616 = vrot.lane.b32.xlu0 %v3330_v61, %s3140_s21 }
 0x969   :  { %1343 = vrot.lane.b32.xlu1 %v3464_v42, %s3137_s16 }
 0x96a   :  { %1612 = vrot.lane.b32.xlu0 %v3330_v61, %s3141_s22 }
 0x96d   :  { %1339 = vrot.lane.b32.xlu1 %v3464_v42, %s3136_s4 }
 0x971   :  { %1618 = vrot.lane.b32.xlu1 %v3464_v42, %s3140_s21 }
 0x975   :  { %1614 = vrot.lane.b32.xlu1 %v3464_v42, %s3141_s22 }
 0x978   :  { %v2789_v18 = vpop.f32.mrb[16].mxu1 }
 0x979   :  { %v929_v31 = vadd.f32 %v2789_v18, %v3439_v63  ;;  %v913_v32 = vpop.f32.mrb[17].mxu1 }
 0x97a   :  { %v927_v35 = vadd.f32 %v913_v32, %v3441_v6  ;;  %v2790_v34 = vpop.f32.mrb[18].mxu1 }
 0x97b   :  { %v916_v36 = vpop.f32.mrb[19].mxu1 }
 0x97c   :  { %v928_v37 = vadd.f32 %v916_v36, %v3443_v9 }
 0x980   :  { %v2805_v38 = vpop.f32.mrb[20].mxu1 }
 0x981   :  { %v1081_v39 = vpop.f32.mrb[21].mxu1  ;;  %v1096_v44 = vpack.c.bf16 %v2805_v38, %v2805_v38 }
 0x982   :  { %v2806_v40 = vpop.f32.mrb[22].mxu1 }
 0x983   :  { %v1084_v41 = vpop.f32.mrb[23].mxu1 }
 0x984   :  { %v1095_v43 = vpack.c.bf16 %v1084_v41, %v1081_v39 }
 0x986   :  { %2809 = vmatprep.mubr.msk.bf16.mxu1 %vm256_vm3, %v1095_v43 }
 0x987   :  { %2810 = vmatmul.mubr.msk.bf16.vlgmr.msra.gmra.mrb[24].mxu1 %vm256_vm3, %v1096_v44 }
 0x9d5   :  { %v1261_v45 = vpop.xlane.xlu0 %1260 }
 0x9d9   :  { %v1264_v46 = vpop.xlane.xlu1 %1263  ;;  %v1274_v63 = vpop.permute.xlu0 %1273 }
 0x9da   :  { %2821 = vmatprep.subr.bf16.mxu1 %v1274_v63  ;;  %3071 = vrcp.f32 %v1264_v46 }
 0x9db   :  { %2822 = vmatpush3.bf16.msra.mxu1 %v1274_v63  ;;  %3073 = vrcp.f32 %v1261_v45 }
 0x9dd   :  { %v1258_v6 = vpop.xlane.xlu1 %1257  ;;  %v1338_v58 = vpop.permute.xlu0 %1337 }
 0x9de   :  { %3075 = vrcp.f32 %v1258_v6 }
 0x9e1   :  { %v1276_v9 = vpop.permute.xlu1 %1275  ;;  %v1617_v8 = vpop.permute.xlu0 %1616 }
 0x9e2   :  { %v1285_v47 = vand.u32 %v1276_v9, %v3397_v1  ;;  %v1627_v11 = vsel %vm256_vm3, %v1617_v8, 0 }
 0x9e4   :  { %2823 = vmatprep.subr.bf16.mxu1 %v1285_v47  ;;  %v3072_v55 = vpop.eup %3071 }
 0x9e5   :  { %v1342_v29 = vpop.permute.xlu1 %1341  ;;  %2824 = vmatpush3.bf16.msra.mxu1 %v1285_v47  ;;  %v3074_v48 = vpop.eup %3073  ;;  %v1270_v52 = vmul.f32 %v3072_v55, %v3068_v23 }
 0x9e6   :  { %2971 = vmatprep.subr.msk.bf16.mxu1 %vm256_vm3, %v1342_v29  ;;  %v1269_v54 = vmul.f32 %v3074_v48, %v3066_v21  ;;  %v1352_v59 = vsel %vm256_vm3, %v1342_v29, 0  ;;  %v1613_v12 = vpop.permute.xlu0 %1612 }
 0x9e7   :  { %v1272_v57 = vpack.c.bf16 %v1270_v52, %v1270_v52 }
 0x9e8   :  { %v3076_v49 = vpop.eup %3075 }
 0x9e9   :  { %v1268_v53 = vmul.f32 %v3076_v49, %v3070_v27  ;;  %v1344_v60 = vpop.permute.xlu1 %1343 }
 0x9ea   :  { %v1355_v62 = vsel %vm256_vm3, %v1344_v60, 0 }
 0x9eb   :  { %v1271_v56 = vpack.c.bf16 %v1269_v54, %v1268_v53 }
 0x9ed   :  { %2825 = vmatprep.mubr.msk.bf16.mxu1 %vm317_vm5, %v1271_v56  ;;  %v1340_v10 = vpop.permute.xlu1 %1339 }
 0x9ee   :  { %2826 = vmatmul.mubr.msk.bf16.vlgmr.msra.gmra.mrb[28].mxu1 %vm317_vm5, %v1272_v57 }
 0x9ef   :  { %2830 = vmatpush3.bf16.xpose.msra.mxu1 %v1352_v59  ;;  %2833 = vmatprep.mubr.msk.bf16.mxu1 %vm256_vm3, %v1338_v58 }
 0x9f0   :  { %2972 = vmatprep.subr.msk.bf16.mxu1 %vm256_vm3, %v1344_v60 }
 0x9f1   :  { %v1619_v13 = vpop.permute.xlu1 %1618 }
 0x9f2   :  { %v1630_v14 = vsel %vm256_vm3, %v1619_v13, 0 }
 0x9f5   :  { %v1615_v15 = vpop.permute.xlu1 %1614 }
 0x9f7   :  { %2832 = vmatpush3.bf16.xpose.msra.mxu1 %v1355_v62 }
 0x9f8   :  { %2975 = vmatprep.subr.msk.bf16.mxu1 %vm256_vm3, %v1617_v8 }
 0x9fe   :  { %2834 = vmatmul.mubr.msk.bf16.vlgmr.msra.gmra.mrb[32].mxu1 %vm256_vm3, %v1340_v10 }
 0x9ff   :  { %2858 = vmatpush3.bf16.xpose.msra.mxu1 %v1627_v11  ;;  %2861 = vmatprep.mubr.msk.bf16.mxu1 %vm256_vm3, %v1613_v12 }
 0xa00   :  { %2976 = vmatprep.subr.msk.bf16.mxu1 %vm256_vm3, %v1619_v13 }
 0xa07   :  { %2860 = vmatpush3.bf16.xpose.msra.mxu1 %v1630_v14 }
 0xa0e   :  { %2862 = vmatmul.mubr.msk.bf16.vlgmr.msra.gmra.mrb[36].mxu1 %vm256_vm3, %v1615_v15 }
 0xa5a   :  { %v2811_v16 = vpop.f32.mrb[24].mxu1 }
 0xa5b   :  { %v3568_v19 = vadd.f32 %v2811_v16, %v929_v31  ;;  %v1140_v21 = vpop.f32.mrb[25].mxu1 }
 0xa5c   :  { %v3570_v22 = vadd.f32 %v1140_v21, %v927_v35  ;;  %v2812_v23 = vpop.f32.mrb[26].mxu1 }
 0xa5d   :  { %v1143_v24 = vpop.f32.mrb[27].mxu1 }
 0xa5e   :  { %v3572_v27 = vadd.f32 %v1143_v24, %v928_v37 }
 0xac1   :  { %v3574_v30 = vpop.f32.mrb[28].mxu1 }
 0xac2   :  { %v3576_v18 = vpop.f32.mrb[29].mxu1 }
 0xac3   :  { %v2828_v32 = vpop.f32.mrb[30].mxu1 }
 0xac4   :  { %v3578_v34 = vpop.f32.mrb[31].mxu1 }
 0xac5   :  { %v1335_v36 = vpack.c.bf16 %v3578_v34, %v3576_v18  ;;  %v1336_v34 = vpack.c.bf16 %v3574_v30, %v3574_v30 }
 0xad1   :  { %v2835_v38 = vpop.f32.mrb[32].mxu1 }
 0xad2   :  { %v1391_v31 = vpop.f32.mrb[33].mxu1  ;;  %v1411_v41 = vsel %vm324_vm6, %v2835_v38, -inf }
 0xad3   :  { %v2836_v39 = vpop.f32.mrb[34].mxu1  ;;  %v1405_v35 = vsel %vm317_vm5, %v1391_v31, -inf }
 0xad4   :  { %1406 = vmax.xlane.f32.xlu0 %v1405_v35  ;;  %v1394_v40 = vpop.f32.mrb[35].mxu1 }
 0xad5   :  { %v1408_v37 = vsel %vm317_vm5, %v1394_v40, -inf }
 0xad6   :  { %1409 = vmax.xlane.f32.xlu1 %v1408_v37 }
 0xad8   :  { %1412 = vmax.xlane.f32.xlu0 %v1411_v41 }
 0xae1   :  { %v3585_v43 = vpop.f32.mrb[36].mxu1 }
 0xae2   :  { %v3587_v44 = vpop.f32.mrb[37].mxu1  ;;  %v1686_v62 = vsel %vm324_vm6, %v3585_v43, -inf }
 0xae3   :  { %v2864_v45 = vpop.f32.mrb[38].mxu1  ;;  %v1680_v60 = vsel %vm317_vm5, %v3587_v44, -inf }
 0xae4   :  { %v3589_v46 = vpop.f32.mrb[39].mxu1 }
 0xae5   :  { %v1683_v8 = vsel %vm317_vm5, %v3589_v46, -inf }
 0xb61   :  { %v1407_v63 = vpop.xlane.xlu0 %1406 }
 0xb62   :  { %v1414_v6 = vsub.f32 %v1391_v31, %v1407_v63 }
 0xb63   :  { %v1410_v9 = vpop.xlane.xlu1 %1409 }
 0xb64   :  { %v1417_v47 = vmul.f32 1.442695, %v1414_v6  ;;  %v1415_v55 = vsub.f32 %v1394_v40, %v1410_v9 }
 0xb65   :  { %v1413_v29 = vpop.xlane.xlu0 %1412 }
 0xb66   :  { %3077 = vpow2.f32 %v1417_v47  ;;  %v1419_v48 = vmul.f32 1.442695, %v1415_v55  ;;  %v1416_v49 = vsub.f32 %v2835_v38, %v1413_v29 }
 0xb68   :  { %3079 = vpow2.f32 %v1419_v48  ;;  %v1421_v52 = vmul.f32 1.442695, %v1416_v49 }
 0xb6a   :  { %3081 = vpow2.f32 %v1421_v52 }
 0xb70   :  { %v3078_v53 = vpop.eup %3077 }
 0xb71   :  { %v1423_v54 = vsel %vm317_vm5, %v3078_v53, 0.0 }
 0xb72   :  { %v3080_v56 = vpop.eup %3079  ;;  %1424 = vadd.xlane.f32.xlu0 %v1423_v54 }
 0xb73   :  { %v1426_v58 = vsel %vm317_vm5, %v3080_v56, 0.0 }
 0xb74   :  { %v3082_v57 = vpop.eup %3081 }
 0xb75   :  { %v1429_v59 = vsel %vm324_vm6, %v3082_v57, 0.0 }
 0xb76   :  { %1427 = vadd.xlane.f32.xlu0 %v1426_v58  ;;  %1430 = vadd.xlane.f32.xlu1 %v1429_v59 }
 0xb87   :  { %1442 = vrot.lane.b32.xlu1 %v3464_v42, %s3139_s18 }
 0xb8b   :  { %1840 = vrot.lane.b32.xlu1 %v3330_v61, %s3142_s23 }
 0xb8c   :  { %1440 = vrot.lane.b32.xlu0 %v3330_v61, %s3139_s18 }
 0xb8f   :  { %1842 = vrot.lane.b32.xlu1 %v3464_v42, %s3142_s23 }
 0xb90   :  { %1836 = vrot.lane.b32.xlu0 %v3330_v61, %s3143_s0 }
 0xb93   :  { %1838 = vrot.lane.b32.xlu1 %v3464_v42, %s3143_s0 }
 0xbaf   :  { %1681 = vmax.xlane.f32.xlu0 %v1680_v60 }
 0xbb3   :  { %1687 = vmax.xlane.f32.xlu0 %v1686_v62 }
 0xbb7   :  { %1684 = vmax.xlane.f32.xlu1 %v1683_v8 }
 0xbff   :  { %v1425_v10 = vpop.xlane.xlu0 %1424 }
 0xc00   :  { %3083 = vrcp.f32 %v1425_v10 }
 0xc03   :  { %v1431_v11 = vpop.xlane.xlu1 %1430  ;;  %v1428_v12 = vpop.xlane.xlu0 %1427 }
 0xc04   :  { %3085 = vrcp.f32 %v1431_v11 }
 0xc05   :  { %3087 = vrcp.f32 %v1428_v12 }
 0xc07   :  { %v1443_v13 = vpop.permute.xlu1 %1442  ;;  %v1441_v14 = vpop.permute.xlu0 %1440 }
 0xc08   :  { %v1452_v15 = vand.u32 %v1443_v13, %v3397_v1  ;;  %2837 = vmatprep.subr.bf16.mxu0 %v1441_v14 }
 0xc09   :  { %2838 = vmatpush3.bf16.msra.mxu0 %v1441_v14 }
 0xc0a   :  { %2839 = vmatprep.subr.bf16.mxu0 %v1452_v15  ;;  %v3084_v24 = vpop.eup %3083 }
 0xc0b   :  { %v1841_v16 = vpop.permute.xlu1 %1840  ;;  %v1837_v21 = vpop.permute.xlu0 %1836  ;;  %v1435_v35 = vmul.f32 %v3084_v24, %v3078_v53 }
 0xc0c   :  { %v1851_v23 = vsel %vm256_vm3, %v1841_v16, 0  ;;  %2978 = vmatprep.subr.msk.bf16.mxu1 %vm256_vm3, %v1841_v16  ;;  %2883 = vmatprep.mubr.msk.bf16.mxu1 %vm256_vm3, %v1837_v21 }
 0xc0d   :  { %2840 = vmatpush3.bf16.msra.mxu0 %v1452_v15  ;;  %2880 = vmatpush3.bf16.xpose.msra.mxu1 %v1851_v23 }
 0xc0e   :  { %v3086_v32 = vpop.eup %3085  ;;  %2973 = vmatprep.subr.msk.bf16.mxu0 %vm594_vm7, %v3366_v50 }
 0xc0f   :  { %v3088_v38 = vpop.eup %3087  ;;  %v1437_v31 = vmul.f32 %v3086_v32, %v3082_v57  ;;  %v1843_v39 = vpop.permute.xlu1 %1842 }
 0xc10   :  { %2979 = vmatprep.subr.msk.bf16.mxu1 %vm256_vm3, %v1843_v39  ;;  %v1436_v40 = vmul.f32 %v3088_v38, %v3080_v56  ;;  %v1854_v45 = vsel %vm256_vm3, %v1843_v39, 0 }
 0xc11   :  { %v1439_v37 = vpack.c.bf16 %v1437_v31, %v1437_v31 }
 0xc12   :  { %v1438_v41 = vpack.c.bf16 %v1436_v40, %v1435_v35 }
 0xc13   :  { %v1839_v50 = vpop.permute.xlu1 %1838 }
 0xc14   :  { %2841 = vmatprep.mubr.msk.bf16.mxu0 %vm317_vm5, %v1438_v41 }
 0xc15   :  { %2842 = vmatmul.mubr.msk.bf16.vlgmr.msra.gmra.mrb[36].mxu0 %vm317_vm5, %v1439_v37  ;;  %2882 = vmatpush3.bf16.xpose.msra.mxu1 %v1854_v45 }
 0xc16   :  { %2846 = vmatpush3.bf16.msra.mxu0 %v3372_v51  ;;  %2901 = vmatprep.subr.bf16.mxu1 %v3133_v33 }
 0xc17   :  { %2974 = vmatprep.subr.msk.bf16.mxu0 %vm594_vm7, %v3413_v25 }
 0xc1c   :  { %2884 = vmatmul.mubr.msk.bf16.vlgmr.msra.gmra.mrb[40].mxu1 %vm256_vm3, %v1839_v50 }
 0xc1d   :  { %2905 = vmatprep.mubr.msk.bf16.mxu1 %vm3134_vm2, %v3133_v33 }
 0xc3c   :  { %v1682_v63 = vpop.xlane.xlu0 %1681 }
 0xc3d   :  { %v1689_v6 = vsub.f32 %v3587_v44, %v1682_v63 }
 0xc3f   :  { %v1692_v9 = vmul.f32 1.442695, %v1689_v6 }
 0xc40   :  { %v1688_v47 = vpop.xlane.xlu0 %1687 }
 0xc41   :  { %3089 = vpow2.f32 %v1692_v9  ;;  %v1691_v55 = vsub.f32 %v3585_v43, %v1688_v47 }
 0xc43   :  { %v1696_v51 = vmul.f32 1.442695, %v1691_v55 }
 0xc44   :  { %v1685_v29 = vpop.xlane.xlu1 %1684 }
 0xc45   :  { %3091 = vpow2.f32 %v1696_v51  ;;  %v1690_v48 = vsub.f32 %v3589_v46, %v1685_v29 }
 0xc47   :  { %v1694_v25 = vmul.f32 1.442695, %v1690_v48 }
 0xc49   :  { %3093 = vpow2.f32 %v1694_v25  ;;  %v3668_v25 = vld [vmem:[%s3848_s6] ss:$0 sm:$0xff] }
 0xc4b   :  { %v3090_v49 = vpop.eup %3089 }
 0xc4c   :  { %v1698_v52 = vsel %vm317_vm5, %v3090_v49, 0.0 }
 0xc4d   :  { %1699 = vadd.xlane.f32.xlu0 %v1698_v52  ;;  %v3675_v52 = vld [vmem:[%s3849_s7] ss:$0 sm:$0xff] }
 0xc4f   :  { %v3092_v53 = vpop.eup %3091 }
 0xc50   :  { %v1704_v54 = vsel %vm324_vm6, %v3092_v53, 0.0 }
 0xc51   :  { %1705 = vadd.xlane.f32.xlu1 %v1704_v54 }
 0xc53   :  { %v3094_v44 = vpop.eup %3093 }
 0xc54   :  { %v1701_v56 = vsel %vm317_vm5, %v3094_v44, 0.0 }
 0xc55   :  { %1702 = vadd.xlane.f32.xlu0 %v1701_v56 }
 0xc62   :  { %1717 = vrot.lane.b32.xlu1 %v3464_v42, %s3145_s26 }
 0xc6b   :  { %1715 = vrot.lane.b32.xlu0 %v3330_v61, %s3145_s26 }
 0xcda   :  { %v1700_v43 = vpop.xlane.xlu0 %1699 }
 0xcde   :  { %v1706_v8 = vpop.xlane.xlu1 %1705 }
 0xce2   :  { %v1703_v46 = vpop.xlane.xlu0 %1702  ;;  %v1718_v38 = vpop.permute.xlu1 %1717 }
 0xce3   :  { %3095 = vrcp.f32 %v1703_v46  ;;  %v1727_v39 = vand.u32 %v1718_v38, %v3397_v1 }
 0xce4   :  { %3097 = vrcp.f32 %v1700_v43 }
 0xce5   :  { %3099 = vrcp.f32 %v1706_v8 }
 0xce6   :  { %v1716_v12 = vpop.permute.xlu0 %1715 }
 0xce8   :  { %v2843_v57 = vpop.f32.mrb[36].mxu0 }
 0xce9   :  { %v1488_v58 = vpop.f32.mrb[37].mxu0  ;;  %v1503_v10 = vpack.c.bf16 %v2843_v57, %v2843_v57 }
 0xcea   :  { %v2844_v59 = vpop.f32.mrb[38].mxu0 }
 0xceb   :  { %v1491_v60 = vpop.f32.mrb[39].mxu0 }
 0xcec   :  { %v1502_v62 = vpack.c.bf16 %v1491_v60, %v1488_v58 }
 0xced   :  { %v3096_v21 = vpop.eup %3095 }
 0xcee   :  { %2847 = vmatprep.mubr.msk.bf16.mxu0 %vm256_vm3, %v1502_v62  ;;  %v3098_v24 = vpop.eup %3097  ;;  %v1711_v32 = vmul.f32 %v3096_v21, %v3094_v44 }
 0xcef   :  { %2848 = vmatmul.mubr.msk.bf16.vlgmr.msra.gmra.mrb[40].mxu0 %vm256_vm3, %v1503_v10  ;;  %v2885_v11 = vpop.f32.mrb[40].mxu1  ;;  %v1710_v18 = vmul.f32 %v3098_v24, %v3090_v49  ;;  %v2080_v49 = vadd.f32 %v3668_v25, %v3572_v27 }
 0xcf0   :  { %2852 = vmatpush3.bf16.msra.mxu0 %v3419_v26  ;;  %2853 = vmatprep.mubr.msk.bf16.mxu0 %vm256_vm3, %v1335_v36  ;;  %v1890_v13 = vpop.f32.mrb[41].mxu1  ;;  %v1910_v26 = vsel %vm324_vm6, %v2885_v11, -inf  ;;  %v3100_v36 = vpop.eup %3099 }
 0xcf1   :  { %2865 = vmatprep.subr.bf16.mxu0 %v1716_v12  ;;  %v2886_v14 = vpop.f32.mrb[42].mxu1  ;;  %v1904_v15 = vsel %vm317_vm5, %v1890_v13, -inf  ;;  %v1713_v31 = vpack.c.bf16 %v1711_v32, %v1710_v18  ;;  %v1712_v35 = vmul.f32 %v3100_v36, %v3092_v53  ;;  %v2092_v53 = vmul.f32 %v3675_v52, %v2080_v49 }
 0xcf2   :  { %v1893_v16 = vpop.f32.mrb[43].mxu1  ;;  %1905 = vmax.xlane.f32.xlu1 %v1904_v15 }
 0xcf3   :  { %v1907_v23 = vsel %vm317_vm5, %v1893_v16, -inf  ;;  %v1714_v40 = vpack.c.bf16 %v1712_v35, %v1712_v35 }
 0xcf4   :  { %1908 = vmax.xlane.f32.xlu0 %v1907_v23 }
 0xcf8   :  { %1911 = vmax.xlane.f32.xlu0 %v1910_v26 }
 0xcfb   :  { %2854 = vmatmul.mubr.msk.bf16.vlgmr.msra.gmra.mrb[40].mxu0 %vm256_vm3, %v1336_v34 }
 0xcfc   :  { %2866 = vmatpush3.bf16.msra.mxu0 %v1716_v12  ;;  %2869 = vmatprep.mubr.msk.bf16.mxu0 %vm317_vm5, %v1713_v31 }
 0xcfd   :  { %2867 = vmatprep.subr.bf16.mxu0 %v1727_v39 }
 0xd00   :  { %2868 = vmatpush3.bf16.msra.mxu0 %v1727_v39 }
 0xd01   :  { %2977 = vmatprep.subr.msk.bf16.mxu0 %vm594_vm7, %v3494_v17 }
 0xd03   :  { %2870 = vmatmul.mubr.msk.bf16.vlgmr.msra.gmra.mrb[44].mxu0 %vm317_vm5, %v1714_v40 }
 0xd04   :  { %2874 = vmatpush3.bf16.msra.mxu0 %v3500_v20 }
 0xd7f   :  { %v1906_v30 = vpop.xlane.xlu1 %1905 }
 0xd80   :  { %v1913_v45 = vsub.f32 %v1890_v13, %v1906_v30 }
 0xd81   :  { %v1909_v37 = vpop.xlane.xlu0 %1908 }
 0xd82   :  { %v1914_v41 = vsub.f32 %v1893_v16, %v1909_v37  ;;  %v1916_v9 = vmul.f32 1.442695, %v1913_v45 }
 0xd84   :  { %v1918_v50 = vmul.f32 1.442695, %v1914_v41 }
 0xd85   :  { %v1912_v63 = vpop.xlane.xlu0 %1911 }
 0xd86   :  { %3101 = vpow2.f32 %v1918_v50  ;;  %v1915_v6 = vsub.f32 %v2885_v11, %v1912_v63 }
 0xd88   :  { %v1920_v47 = vmul.f32 1.442695, %v1915_v6 }
 0xd8a   :  { %3103 = vpow2.f32 %v1920_v47 }
 0xd8b   :  { %3105 = vpow2.f32 %v1916_v9 }
 0xd90   :  { %v3102_v55 = vpop.eup %3101 }
 0xd91   :  { %v1925_v51 = vsel %vm317_vm5, %v3102_v55, 0.0 }
 0xd92   :  { %1926 = vadd.xlane.f32.xlu0 %v1925_v51 }
 0xd94   :  { %v3104_v17 = vpop.eup %3103 }
 0xd95   :  { %v1928_v29 = vsel %vm324_vm6, %v3104_v17, 0.0  ;;  %v3106_v20 = vpop.eup %3105 }
 0xd96   :  { %1929 = vadd.xlane.f32.xlu1 %v1928_v29  ;;  %v1922_v48 = vsel %vm317_vm5, %v3106_v20, 0.0 }
 0xd9a   :  { %1923 = vadd.xlane.f32.xlu1 %v1922_v48 }
 0xda8   :  { %1939 = vrot.lane.b32.xlu0 %v3330_v61, %s3146_s3  ;;  %v2079_v61 = vadd.f32 %v3668_v25, %v3570_v22 }
 0xdaa   :  { %v2091_v54 = vmul.f32 %v3675_v52, %v2079_v61 }
 0xdab   :  { %1941 = vrot.lane.b32.xlu1 %v3464_v42, %s3146_s3  ;;  %v3681_v42 = vadd.f32 %v3237_v4, %v2092_v53 }
 0xdac   :  { %v3687_v27 = vadd.f32 %v3233_v2, %v2091_v54 }
 0xdad   :  { %v2106_v44 = vsel %vm63_vm0, %v3681_v42, 0.0 }
 0xdae   :  { %v2103_v56 = vsel %vm63_vm0, %v3687_v27, 0.0 }
 0xdc7   :  { %2107 = vadd.xlane.f32.xlu0 %v2106_v44  ;;  %v2998_v44 = vld [vmem:[%s3850_s10 + $0x8] sm:$0xff]  }
 0xdcf   :  { %2104 = vadd.xlane.f32.xlu1 %v2103_v56 }
 0xdd6   :  { %v2871_v43 = vpop.f32.mrb[44].mxu0 }
 0xdd7   :  { %v1763_v46 = vpop.f32.mrb[45].mxu0  ;;  %v1778_v4 = vpack.c.bf16 %v2871_v43, %v2871_v43 }
 0xdd8   :  { %v2872_v57 = vpop.f32.mrb[46].mxu0 }
 0xdd9   :  { %v1766_v22 = vpop.f32.mrb[47].mxu0 }
 0xdda   :  { %v1777_v58 = vpack.c.bf16 %v1766_v22, %v1763_v46 }
 0xddc   :  { %2875 = vmatprep.mubr.msk.bf16.mxu0 %vm256_vm3, %v1777_v58 }
 0xddd   :  { %2876 = vmatmul.mubr.msk.bf16.vlgmr.msra.gmra.mrb[40].mxu0 %vm256_vm3, %v1778_v4 }
 0xe1f   :  { %v1927_v59 = vpop.xlane.xlu0 %1926 }
 0xe23   :  { %v1930_v60 = vpop.xlane.xlu1 %1929  ;;  %v1940_v62 = vpop.permute.xlu0 %1939 }
 0xe24   :  { %2887 = vmatprep.subr.bf16.mxu0 %v1940_v62  ;;  %3107 = vrcp.f32 %v1930_v60 }
 0xe25   :  { %2888 = vmatpush3.bf16.msra.mxu0 %v1940_v62  ;;  %3109 = vrcp.f32 %v1927_v59 }
 0xe27   :  { %v1924_v2 = vpop.xlane.xlu1 %1923 }
 0xe28   :  { %3111 = vrcp.f32 %v1924_v2 }
 0xe2b   :  { %v1942_v8 = vpop.permute.xlu1 %1941 }
 0xe2c   :  { %v1951_v10 = vand.u32 %v1942_v8, %v3397_v1 }
 0xe2e   :  { %2889 = vmatprep.subr.bf16.mxu0 %v1951_v10  ;;  %v3108_v11 = vpop.eup %3107 }
 0xe2f   :  { %2890 = vmatpush3.bf16.msra.mxu0 %v1951_v10  ;;  %v3110_v12 = vpop.eup %3109  ;;  %v1936_v14 = vmul.f32 %v3108_v11, %v3104_v17 }
 0xe30   :  { %2980 = vmatprep.subr.msk.bf16.mxu0 %vm594_vm7, %v3516_v0  ;;  %v1935_v16 = vmul.f32 %v3110_v12, %v3102_v55 }
 0xe31   :  { %v1938_v23 = vpack.c.bf16 %v1936_v14, %v1936_v14 }
 0xe32   :  { %v3112_v13 = vpop.eup %3111 }
 0xe33   :  { %v1934_v15 = vmul.f32 %v3112_v13, %v3106_v20 }
 0xe35   :  { %v1937_v21 = vpack.c.bf16 %v1935_v16, %v1934_v15 }
 0xe37   :  { %2891 = vmatprep.mubr.msk.bf16.mxu0 %vm317_vm5, %v1937_v21 }
 0xe38   :  { %2892 = vmatmul.mubr.msk.bf16.vlgmr.msra.gmra.mrb[48].mxu0 %vm317_vm5, %v1938_v23 }
 0xe39   :  { %2896 = vmatpush3.bf16.msra.mxu0 %v3522_v7 }
 0xe54   :  { %v2108_v40 = vpop.xlane.xlu0 %2107 }
 0xe55   :  { %v2119_v6 = vmul.f32 0.03125, %v2108_v40  ;;  %v3000_v40 = vld [vmem:[%s3853_s12 + $0x8] sm:$0xff]  }
 0xe57   :  { %v2124_v20 = vsub.f32 %v3681_v42, %v2119_v6 }
 0xe5c   :  { %v2105_v36 = vpop.xlane.xlu1 %2104 }
 0xe5d   :  { %v2118_v41 = vmul.f32 0.03125, %v2105_v36 }
 0xe5f   :  { %v2123_v51 = vsub.f32 %v3687_v27, %v2118_v41  ;;  %v3004_v41 = vld [vmem:[%s3853_s12 + $0x28] sm:$0xff]  }
 0xe61   :  { %v2128_v61 = vmul.f32 %v2123_v51, %v2123_v51 }
 0xe63   :  { %v2133_v54 = vsel %vm63_vm0, %v2128_v61, 0.0 }
 0xf0b   :  { %v2893_v1 = vpop.f32.mrb[48].mxu0 }
 0xf0c   :  { %v1987_v24 = vpop.f32.mrb[49].mxu0  ;;  %v2002_v18 = vpack.c.bf16 %v2893_v1, %v2893_v1 }
 0xf0d   :  { %v2894_v32 = vpop.f32.mrb[50].mxu0 }
 0xf0e   :  { %v1990_v26 = vpop.f32.mrb[51].mxu0 }
 0xf0f   :  { %v2001_v38 = vpack.c.bf16 %v1990_v26, %v1987_v24  ;;  %v2563_v24 = vld [vmem:[%s3851_s8] ss:$0 sm:$0xff] }
 0xf11   :  { %2897 = vmatprep.mubr.msk.bf16.mxu0 %vm256_vm3, %v2001_v38 }
 0xf12   :  { %2898 = vmatmul.mubr.msk.bf16.vlgmr.msra.gmra.mrb[40].mxu0 %vm256_vm3, %v2002_v18 }
 0xfe5   :  { %v2899_v0 = vpop.f32.mrb[40].mxu0 }
 0xfe6   :  { %v2043_v34 = vpop.f32.mrb[41].mxu0  ;;  %v2066_v30 = vrot.slane %v2899_v0, 7  ;;  %v2564_v0 = vld [vmem:[%s3852_s9] ss:$0 sm:$0xff] }
 0xfe7   :  { %v2063_v31 = vrot.slane %v2043_v34, 7  ;;  %v2900_v39 = vpop.f32.mrb[42].mxu0 }
 0xfe8   :  { %v2046_v35 = vpop.f32.mrb[43].mxu0 }
 0xfe9   :  { %v2071_v7 = vsel %vm365_vm8, %v3568_v19, %v2063_v31  ;;  %v2064_v37 = vrot.slane %v2046_v35, 7  ;;  %v2999_v35 = vld [vmem:[%s3853_s12] sm:$0xff]  }
 0xfea   :  { %v2081_v45 = vadd.f32 %v3668_v25, %v2071_v7  ;;  %v3002_v7 = vld [vmem:[%s3853_s12 + $0x18] sm:$0xff]  }
 0xfeb   :  { %v2065_v50 = vsel %vm365_vm8, %v2063_v31, %v2064_v37  ;;  %v2067_v63 = vsel %vm365_vm8, %v2064_v37, %v2066_v30  ;;  %v3001_v30 = vld [vmem:[%s3853_s12 + $0x10] sm:$0xff]   ;;  %v3003_v37 = vld [vmem:[%s3853_s12 + $0x20] sm:$0xff]  }
 0xfec   :  { %v2093_v9 = vmul.f32 %v3675_v52, %v2081_v45  ;;  %v2082_v47 = vadd.f32 %v3668_v25, %v2065_v50  ;;  %v2083_v55 = vadd.f32 %v3668_v25, %v2067_v63  ;;  %v3005_v45 = vld [vmem:[%s3853_s12 + $0x30] sm:$0xff]   ;;  %v3006_v50 = vld [vmem:[%s3853_s12 + $0x38] sm:$0xff]  }
 0xfee   :  { %v2094_v17 = vmul.f32 %v3675_v52, %v2082_v47  ;;  %v2095_v19 = vmul.f32 %v3675_v52, %v2083_v55  ;;  %v3713_v29 = vadd.f32 %v3235_v3, %v2093_v9  ;;  %v2129_v52 = vmul.f32 %v2124_v20, %v2124_v20 }
 0xff0   :  { %v2109_v48 = vsel %vm63_vm0, %v3713_v29, 0.0  ;;  %v3719_v49 = vadd.f32 %v3239_v5, %v2094_v17  ;;  %v3722_v53 = vadd.f32 %v2095_v19, %v3262_v28  ;;  %v2136_v5 = vsel %vm63_vm0, %v2129_v52, 0.0  ;;  %v2997_v28 = vld [vmem:[%s3850_s10] sm:$0xff]  }
 0xff1   :  { %2110 = vadd.xlane.f32.xlu0 %v2109_v48  ;;  %2902 = vmatpush3.bf16.msra.mxu1 %v2997_v28 }
 0xff2   :  { %v2112_v25 = vsel %vm63_vm0, %v3719_v49, 0.0  ;;  %v2115_v3 = vsel %vm76_vm1, %v3722_v53, 0.0  ;;  %2903 = vmatprep.subr.bf16.mxu1 %v3133_v33 }
 0xff3   :  { %2113 = vadd.xlane.f32.xlu1 %v2112_v25 }
 0xff5   :  { %2116 = vadd.xlane.f32.xlu0 %v2115_v3  ;;  %2904 = vmatpush3.bf16.msra.mxu1 %v2998_v44 }
 0xff6   :  { %2917 = vmatprep.subr.bf16.mxu1 %v3133_v33 }
 0xff7   :  { %2134 = vadd.xlane.f32.xlu1 %v2133_v54 }
 0xff9   :  { %2137 = vadd.xlane.f32.xlu0 %v2136_v5 }
0x107e   :  { %v2111_v56 = vpop.xlane.xlu0 %2110 }
0x107f   :  { %v2120_v43 = vmul.f32 0.03125, %v2111_v56 }
0x1080   :  { %v2114_v46 = vpop.xlane.xlu1 %2113 }
0x1081   :  { %v3739_v57 = vsub.f32 %v3713_v29, %v2120_v43  ;;  %v2121_v22 = vmul.f32 0.03125, %v2114_v46 }
0x1082   :  { %v2117_v58 = vpop.xlane.xlu0 %2116 }
0x1083   :  { %v3742_v4 = vsub.f32 %v3719_v49, %v2121_v22  ;;  %v2122_v59 = vmul.f32 0.03125, %v2117_v58  ;;  %v2130_v60 = vmul.f32 %v3739_v57, %v3739_v57 }
0x1084   :  { %v2135_v62 = vpop.xlane.xlu1 %2134 }
0x1085   :  { %v3747_v2 = vsub.f32 %v3722_v53, %v2122_v59  ;;  %v2148_v8 = vmul.f32 0.03125, %v2135_v62  ;;  %v2139_v10 = vsel %vm63_vm0, %v2130_v60, 0.0  ;;  %v2131_v11 = vmul.f32 %v3742_v4, %v3742_v4 }
0x1086   :  { %2140 = vadd.xlane.f32.xlu1 %v2139_v10  ;;  %v2138_v12 = vpop.xlane.xlu0 %2137 }
0x1087   :  { %v2153_v13 = vadd.f32 1e-05, %v2148_v8  ;;  %v2149_v14 = vmul.f32 0.03125, %v2138_v12  ;;  %v2142_v15 = vsel %vm63_vm0, %v2131_v11, 0.0  ;;  %v2132_v16 = vmul.f32 %v3747_v2, %v3747_v2 }
0x1088   :  { %2143 = vadd.xlane.f32.xlu0 %v2142_v15 }
0x1089   :  { %3113 = vrsqrt.f32 %v2153_v13  ;;  %v2154_v21 = vadd.f32 1e-05, %v2149_v14  ;;  %v2145_v23 = vsel %vm76_vm1, %v2132_v16, 0.0 }
0x108a   :  { %2146 = vadd.xlane.f32.xlu1 %v2145_v23 }
0x108b   :  { %3115 = vrsqrt.f32 %v2154_v21 }
0x1093   :  { %v3114_v1 = vpop.eup %3113 }
0x1094   :  { %v2163_v32 = vmul.f32 %v3114_v1, %v2123_v51 }
0x1095   :  { %v3116_v26 = vpop.eup %3115 }
0x1096   :  { %v2174_v38 = vmul.f32 %v2563_v24, %v2163_v32  ;;  %v2164_v18 = vmul.f32 %v3116_v26, %v2124_v20 }
0x1098   :  { %v2175_v34 = vmul.f32 %v2563_v24, %v2164_v18  ;;  %v2185_v36 = vadd.f32 %v2564_v0, %v2174_v38 }
0x109a   :  { %v2186_v31 = vadd.f32 %v2564_v0, %v2175_v34 }
0x109c   :  { %v2194_v39 = vpack.c.bf16 %v2186_v31, %v2185_v36 }
0x109e   :  { %2906 = vmatmul.mubr.msk.bf16.vlgmr.msra.gmra.mrb[44].mxu1 %vm63_vm0, %v2194_v39 }
0x109f   :  { %2909 = vmatprep.mubr.msk.bf16.mxu1 %vm3134_vm2, %v3133_v33  ;;  %2918 = vmatpush3.bf16.msra.mxu1 %v2999_v35 }
0x10a0   :  { %2919 = vmatprep.subr.bf16.mxu1 %v3133_v33 }
0x10a3   :  { %2920 = vmatpush3.bf16.msra.mxu1 %v3000_v40 }
0x10a4   :  { %2921 = vmatprep.subr.bf16.mxu1 %v3133_v33 }
0x10a7   :  { %2922 = vmatpush3.bf16.msra.mxu1 %v3001_v30 }
0x10a8   :  { %2923 = vmatprep.subr.bf16.mxu1 %v3133_v33 }
0x10ab   :  { %2924 = vmatpush3.bf16.msra.mxu1 %v3002_v7 }
0x10ac   :  { %2925 = vmatprep.subr.bf16.mxu1 %v3133_v33 }
0x10af   :  { %2926 = vmatpush3.bf16.msra.mxu1 %v3003_v37 }
0x10b0   :  { %2927 = vmatprep.subr.bf16.mxu1 %v3133_v33 }
0x10b3   :  { %2928 = vmatpush3.bf16.msra.mxu1 %v3004_v41 }
0x10b4   :  { %2929 = vmatprep.subr.bf16.mxu1 %v3133_v33 }
0x10b7   :  { %2930 = vmatpush3.bf16.msra.mxu1 %v3005_v45 }
0x10b8   :  { %2931 = vmatprep.subr.bf16.mxu1 %v3133_v33 }
0x10bb   :  { %2932 = vmatpush3.bf16.msra.mxu1 %v3006_v50 }
0x1113   :  { %v2141_v63 = vpop.xlane.xlu1 %2140 }
0x1114   :  { %v2150_v6 = vmul.f32 0.03125, %v2141_v63 }
0x1115   :  { %v2144_v9 = vpop.xlane.xlu0 %2143 }
0x1116   :  { %v2155_v47 = vadd.f32 1e-05, %v2150_v6  ;;  %v2151_v55 = vmul.f32 0.03125, %v2144_v9 }
0x1117   :  { %v2147_v51 = vpop.xlane.xlu1 %2146 }
0x1118   :  { %3117 = vrsqrt.f32 %v2155_v47  ;;  %v2156_v17 = vadd.f32 1e-05, %v2151_v55  ;;  %v2152_v19 = vmul.f32 0.03125, %v2147_v51 }
0x111a   :  { %3119 = vrsqrt.f32 %v2156_v17  ;;  %v2157_v20 = vadd.f32 1e-05, %v2152_v19 }
0x111c   :  { %3121 = vrsqrt.f32 %v2157_v20 }
0x1122   :  { %v3118_v48 = vpop.eup %3117 }
0x1123   :  { %v2165_v25 = vmul.f32 %v3118_v48, %v3739_v57  ;;  %v2565_v57 = vld [vmem:[%s3854_s11] ss:$0 sm:$0xff] }
0x1124   :  { %v3120_v61 = vpop.eup %3119 }
0x1125   :  { %v2166_v3 = vmul.f32 %v3120_v61, %v3742_v4  ;;  %v2176_v52 = vmul.f32 %v2563_v24, %v2165_v25 }
0x1126   :  { %v3122_v54 = vpop.eup %3121 }
0x1127   :  { %v2167_v5 = vmul.f32 %v3122_v54, %v3747_v2  ;;  %v2177_v28 = vmul.f32 %v2563_v24, %v2166_v3  ;;  %v2187_v44 = vadd.f32 %v2564_v0, %v2176_v52 }
0x1129   :  { %v2188_v56 = vadd.f32 %v2564_v0, %v2177_v28  ;;  %v2178_v46 = vmul.f32 %v2563_v24, %v2167_v5 }
0x112b   :  { %v2195_v43 = vpack.c.bf16 %v2188_v56, %v2187_v44  ;;  %v2189_v22 = vadd.f32 %v2564_v0, %v2178_v46 }
0x112d   :  { %2910 = vmatmul.mubr.msk.bf16.gmra.mrb[48].mxu1 %vm63_vm0, %v2195_v43  ;;  %v2196_v58 = vpack.c.bf16 %v2189_v22, %v2189_v22 }
0x112e   :  { %2913 = vmatprep.mubr.msk.bf16.mxu1 %vm3134_vm2, %v3133_v33 }
0x1135   :  { %2914 = vmatmul.mubr.msk.bf16.gmra.mrb[52].mxu1 %vm63_vm0, %v2196_v58 }
0x1136   :  { %2933 = vmatprep.mubr.msk.bf16.mxu1 %vm3134_vm2, %v3133_v33 }
0x1171   :  { %v2259_v4 = vpop.f32.mrb[44].mxu1 }
0x1172   :  { %v2260_v59 = vadd.f32 %v2565_v57, %v2259_v4  ;;  %v2907_v60 = vpop.f32.mrb[45].mxu1 }
0x1173   :  { %v2262_v62 = vpop.f32.mrb[46].mxu1 }
0x1174   :  { %v2286_v2 = vmul.f32 0.044715, %v2260_v59  ;;  %v2263_v8 = vadd.f32 %v2565_v57, %v2262_v62  ;;  %v2908_v10 = vpop.f32.mrb[47].mxu1  ;;  %v2281_v38 = vmul.f32 0.5, %v2260_v59 }
0x1176   :  { %v2291_v11 = vmul.f32 %v2286_v2, %v2260_v59  ;;  %v2287_v12 = vmul.f32 0.044715, %v2263_v8  ;;  %v2282_v18 = vmul.f32 0.5, %v2263_v8 }
0x1178   :  { %v2296_v13 = vmul.f32 %v2291_v11, %v2260_v59  ;;  %v2292_v14 = vmul.f32 %v2287_v12, %v2263_v8  ;;  %v2571_v11 = vld [vmem:[%s3855_s13] ss:$0 sm:$0xff] }
0x117a   :  { %v2301_v15 = vadd.f32 %v2296_v13, %v2260_v59  ;;  %v2297_v16 = vmul.f32 %v2292_v14, %v2263_v8  ;;  %v2580_v13 = vld [vmem:[%s3856_s14] ss:$0 sm:$0xff] }
0x117c   :  { %v2306_v21 = vmul.f32 0.7978846, %v2301_v15  ;;  %v2302_v23 = vadd.f32 %v2297_v16, %v2263_v8 }
0x117e   :  { %3123 = vtanh.f32 %v2306_v21  ;;  %v2307_v1 = vmul.f32 0.7978846, %v2302_v23 }
0x1180   :  { %3125 = vtanh.f32 %v2307_v1 }
0x1188   :  { %v3124_v24 = vpop.eup %3123 }
0x1189   :  { %v2316_v32 = vadd.f32 1.0, %v3124_v24 }
0x118a   :  { %v3126_v26 = vpop.eup %3125 }
0x118b   :  { %v2317_v0 = vadd.f32 1.0, %v3126_v26  ;;  %v2321_v34 = vmul.f32 %v2316_v32, %v2281_v38 }
0x118d   :  { %v2322_v36 = vmul.f32 %v2317_v0, %v2282_v18 }
0x118f   :  { %v2342_v31 = vpack.c.bf16 %v2322_v36, %v2321_v34 }
0x1191   :  { %2934 = vmatmul.mubr.bf16.vlgmr.msra.gmra.mrb[56].mxu1 %v2342_v31 }
0x1192   :  { %2937 = vmatprep.mubr.msk.bf16.mxu1 %vm3134_vm2, %v3133_v33 }
0x1200   :  { %v2267_v39 = vpop.f32.mrb[48].mxu1 }
0x1201   :  { %v2268_v35 = vadd.f32 %v2565_v57, %v2267_v39  ;;  %v2911_v40 = vpop.f32.mrb[49].mxu1 }
0x1202   :  { %v2270_v30 = vpop.f32.mrb[50].mxu1 }
0x1203   :  { %v2288_v7 = vmul.f32 0.044715, %v2268_v35  ;;  %v2271_v37 = vadd.f32 %v2565_v57, %v2270_v30  ;;  %v2912_v41 = vpop.f32.mrb[51].mxu1  ;;  %v2283_v46 = vmul.f32 0.5, %v2268_v35 }
0x1205   :  { %v2293_v45 = vmul.f32 %v2288_v7, %v2268_v35  ;;  %v2289_v50 = vmul.f32 0.044715, %v2271_v37  ;;  %v2284_v22 = vmul.f32 0.5, %v2271_v37 }
0x1207   :  { %v2298_v63 = vmul.f32 %v2293_v45, %v2268_v35  ;;  %v2294_v6 = vmul.f32 %v2289_v50, %v2271_v37 }
0x1208   :  { %v2275_v9 = vpop.f32.mrb[52].mxu1 }
0x1209   :  { %v2299_v47 = vmul.f32 %v2294_v6, %v2271_v37  ;;  %v2276_v55 = vadd.f32 %v2565_v57, %v2275_v9  ;;  %v2915_v51 = vpop.f32.mrb[53].mxu1  ;;  %v2303_v17 = vadd.f32 %v2298_v63, %v2268_v35 }
0x120a   :  { %v2278_v19 = vpop.f32.mrb[54].mxu1 }
0x120b   :  { %v2290_v20 = vmul.f32 0.044715, %v2276_v55  ;;  %v2916_v48 = vpop.f32.mrb[55].mxu1  ;;  %v2304_v25 = vadd.f32 %v2299_v47, %v2271_v37  ;;  %v2308_v61 = vmul.f32 0.7978846, %v2303_v17  ;;  %v2285_v62 = vmul.f32 0.5, %v2276_v55 }
0x120d   :  { %v2295_v3 = vmul.f32 %v2290_v20, %v2276_v55  ;;  %v2309_v52 = vmul.f32 0.7978846, %v2304_v25  ;;  %3127 = vtanh.f32 %v2308_v61 }
0x120f   :  { %3129 = vtanh.f32 %v2309_v52  ;;  %v2300_v54 = vmul.f32 %v2295_v3, %v2276_v55 }
0x1211   :  { %v2305_v5 = vadd.f32 %v2300_v54, %v2276_v55 }
0x1213   :  { %v2310_v28 = vmul.f32 0.7978846, %v2305_v5 }
0x1215   :  { %3131 = vtanh.f32 %v2310_v28 }
0x1217   :  { %v3128_v44 = vpop.eup %3127 }
0x1218   :  { %v2318_v56 = vadd.f32 1.0, %v3128_v44 }
0x1219   :  { %v3130_v43 = vpop.eup %3129 }
0x121a   :  { %v2319_v58 = vadd.f32 1.0, %v3130_v43  ;;  %v2323_v57 = vmul.f32 %v2318_v56, %v2283_v46 }
0x121c   :  { %v2324_v4 = vmul.f32 %v2319_v58, %v2284_v22 }
0x121e   :  { %v2343_v59 = vpack.c.bf16 %v2324_v4, %v2323_v57 }
0x121f   :  { %v3132_v60 = vpop.eup %3131 }
0x1220   :  { %2938 = vmatmul.mubr.bf16.gmra.mrb[60].mxu1 %v2343_v59  ;;  %v2320_v2 = vadd.f32 1.0, %v3132_v60 }
0x1221   :  { %2941 = vmatprep.mubr.msk.bf16.mxu1 %vm3134_vm2, %v3133_v33 }
0x1222   :  { %v2325_v8 = vmul.f32 %v2320_v2, %v2285_v62 }
0x1224   :  { %v2344_v10 = vpack.c.bf16 %v2325_v8, %v2325_v8 }
0x1228   :  { %2942 = vmatmul.mubr.bf16.gmra.mrb[64].mxu1 %v2344_v10 }
0x1264   :  { %v2434_v12 = vpop.f32.mrb[56].mxu1 }
0x1265   :  { %v2435_v14 = vadd.f32 %v2571_v11, %v2434_v12  ;;  %v2935_v15 = vpop.f32.mrb[57].mxu1 }
0x1266   :  { %v2437_v16 = vpop.f32.mrb[58].mxu1 }
0x1267   :  { %v2463_v21 = vmul.f32 %v2580_v13, %v2435_v14  ;;  %v2438_v23 = vadd.f32 %v2571_v11, %v2437_v16  ;;  %v2936_v1 = vpop.f32.mrb[59].mxu1 }
0x1269   :  { %v2468_v33 = vadd.f32 %v2463_v21, %v3687_v27  ;;  %v2464_v24 = vmul.f32 %v2580_v13, %v2438_v23 }
0x126b   :  { %v2586_v32 = vpack.c.bf16 %v2468_v33, %v2468_v33  ;;  %v2469_v26 = vadd.f32 %v2464_v24, %v3681_v42 }
0x126d   :  { %2495 = vst.msk [vmem:[%s3857_s15] sm:$0xf] %vm2494_vm9, %v2586_v32  ;;  %v2587_v38 = vpack.c.bf16 %v2469_v26, %v2469_v26 }
0x126f   :  { %2496 = vst.msk [vmem:[%s3857_s15 + $0x4] sm:$0xf] %vm2494_vm9, %v2587_v38 }
0x12f3   :  { %v2442_v18 = vpop.f32.mrb[60].mxu1 }
0x12f4   :  { %v2443_v0 = vadd.f32 %v2571_v11, %v2442_v18  ;;  %v2939_v34 = vpop.f32.mrb[61].mxu1 }
0x12f5   :  { %v2445_v27 = vpop.f32.mrb[62].mxu1 }
0x12f6   :  { %v2465_v36 = vmul.f32 %v2580_v13, %v2443_v0  ;;  %v2446_v31 = vadd.f32 %v2571_v11, %v2445_v27  ;;  %v2940_v39 = vpop.f32.mrb[63].mxu1 }
0x12f8   :  { %v2470_v42 = vadd.f32 %v2465_v36, %v3713_v29  ;;  %v2466_v35 = vmul.f32 %v2580_v13, %v2446_v31 }
0x12fa   :  { %v2588_v40 = vpack.c.bf16 %v2470_v42, %v2470_v42  ;;  %v2471_v30 = vadd.f32 %v2466_v35, %v3719_v49 }
0x12fb   :  { %v2450_v7 = vpop.f32.mrb[64].mxu1 }
0x12fc   :  { %2497 = vst.msk [vmem:[%s3857_s15 + $0x8] sm:$0xf] %vm2494_vm9, %v2588_v40  ;;  %v2589_v37 = vpack.c.bf16 %v2471_v30, %v2471_v30  ;;  %v2451_v41 = vadd.f32 %v2571_v11, %v2450_v7  ;;  %v2943_v45 = vpop.f32.mrb[65].mxu1 }
0x12fd   :  { %v2453_v50 = vpop.f32.mrb[66].mxu1 }
0x12fe   :  { %2498 = vst.msk [vmem:[%s3857_s15 + $0xc] sm:$0xf] %vm2494_vm9, %v2589_v37  ;;  %v2467_v29 = vmul.f32 %v2580_v13, %v2451_v41  ;;  %v2944_v63 = vpop.f32.mrb[67].mxu1 }
0x1300   :  { %v2472_v6 = vadd.f32 %v2467_v29, %v3722_v53 }
0x1302   :  { %v2590_v49 = vpack.c.bf16 %v2472_v6, %v2472_v6 }
0x1304   :  { %2500 = vst.msk [vmem:[%s3857_s15 + $0x10] sm:$0x1] %vm2499_vm10, %v2590_v49 }

</bundles_post_ra>
